<compile_context>
chip_gen: v6e
topology: v6e:2x2x1
jax: 0.10.0
libtpu: 0.0.40
codegen_flags: <defaults>
</compile_context>

<pallas_src>
import math

import jax
import jax.numpy as jnp
from jax.experimental import pallas as pl
from jax.experimental.pallas import tpu as pltpu

_EPS = 1e-6
# Tile targets (collapse to full dims at toy scale; divide FLUX shapes):
_TL = 512         # sequence tile (sublane axis, multiple of 8)
_TQ = 1024        # flash-attention q tile
_TKV = 512        # flash-attention kv tile
_TN = 1024        # output-feature tile (lane axis, multiple of 128)
_TK = 2048        # reduction tile (multiple of 128)
# Budgeted so every kernel's double-buffered live VMEM stays <= ~40 MiB;
# 48 MiB is safe on v7x (64 MiB physical) and well above v5e/v6e defaults.
_VMEM_LIMIT = 48 * 1024 * 1024


def _cp(sem):
    return pltpu.CompilerParams(dimension_semantics=sem,
                                vmem_limit_bytes=_VMEM_LIMIT)


def _pick_tile(n, target, mult):
    """Largest tile <= target that divides n and is a multiple of `mult`;
    falls back to the full dimension (always a legal block)."""
    if n <= target:
        return n
    t = (target // mult) * mult
    while t >= mult:
        if n % t == 0:
            return t
        t -= mult
    return n


def _ln_modulate(x, scale, shift):
    """LayerNorm(eps=1e-6, no affine) then (1+scale)*x + shift, in f32."""
    mean = jnp.mean(x, axis=-1, keepdims=True)
    var = jnp.mean(jnp.square(x - mean), axis=-1, keepdims=True)
    y = (x - mean) * jax.lax.rsqrt(var + _EPS)
    return (1.0 + scale) * y + shift


# ----------------------------- Pallas kernels ------------------------------

def _modulation_kernel(x_ref, w_ref, b_ref, o_ref):
    # Merged img+txt modulation GEMV: silu(vec) computed once in glue.
    o_ref[...] = (jnp.dot(x_ref[...], w_ref[...],
                          preferred_element_type=jnp.float32) + b_ref[...])


def _ln_mod_qkv_rope_kernel(x_ref, scale_ref, shift_ref, w_ref, b_ref,
                            qks_ref, cos_ref, sin_ref,
                            q_ref, k_ref, v_ref, xm_ref):
    # grid = (B, L-tiles, H); H innermost so the LN+modulated x tile (bf16
    # VMEM scratch) is computed once per (b, l) and reused for every head.
    h = pl.program_id(2)

    @pl.when(h == 0)
    def _():
        xm = _ln_modulate(x_ref[0], scale_ref[0], shift_ref[0])
        xm_ref[...] = xm.astype(jnp.bfloat16)

    dh = q_ref.shape[-1]
    half = dh // 2
    # Per-head fused QKV matmul: (tl, D) @ (D, 3*Dh), LoRA already merged in w.
    qkv = jnp.dot(xm_ref[...], w_ref[0],
                  preferred_element_type=jnp.float32) + b_ref[0]
    q = qkv[:, :dh]
    k = qkv[:, dh:2 * dh]
    v = qkv[:, 2 * dh:]

    # QKNorm (per-head RMSNorm, eps=1e-6, learnable scale).  The 1/sqrt(Dh)
    # softmax scale is pre-folded into qks[0] (q scale) in prepare_params.
    qks = qks_ref[...]
    q = q * jax.lax.rsqrt(jnp.mean(q * q, axis=-1, keepdims=True) + _EPS) * qks[0:1]
    k = k * jax.lax.rsqrt(jnp.mean(k * k, axis=-1, keepdims=True) + _EPS) * qks[1:2]

    # RoPE, fused.  q/k head-dims are stored de-interleaved (even dims first,
    # odd dims second; permutation baked into the weights), so interleaved
    # FLUX RoPE becomes a split-half rotation with (tl, Dh/2) cos/sin tiles.
    cos = cos_ref[...]
    sin = sin_ref[...]
    q1, q2 = q[:, :half], q[:, half:]
    k1, k2 = k[:, :half], k[:, half:]
    q = jnp.concatenate([q1 * cos - q2 * sin, q1 * sin + q2 * cos], axis=-1)
    k = jnp.concatenate([k1 * cos - k2 * sin, k1 * sin + k2 * cos], axis=-1)

    q_ref[...] = q[None, None].astype(q_ref.dtype)   # bf16 outputs
    k_ref[...] = k[None, None].astype(k_ref.dtype)
    v_ref[...] = v[None, None].astype(v_ref.dtype)


def _flash_attn_kernel(q_ref, k_ref, v_ref, o_ref, m_sc, l_sc, acc_sc):
    # Online-softmax attention; grid = (B, H, q-tiles, kv-tiles), kv last.
    # q is pre-scaled (1/sqrt(Dh) folded into the q RMSNorm scale) and all
    # operands arrive bf16, so the inner loop is pure MXU + exp.
    kv = pl.program_id(3)

    @pl.when(kv == 0)
    def _():
        m_sc[...] = jnp.full(m_sc.shape, -jnp.inf, jnp.float32)
        l_sc[...] = jnp.zeros(l_sc.shape, jnp.float32)
        acc_sc[...] = jnp.zeros(acc_sc.shape, jnp.float32)

    q = q_ref[0, 0]                                  # (tq, Dh) bf16
    k = k_ref[0, 0]                                  # (tk, Dh) bf16
    s = jax.lax.dot_general(q, k, (((1,), (1,)), ((), ())),
                            preferred_element_type=jnp.float32)
    m_prev = m_sc[...]
    m_new = jnp.maximum(m_prev, jnp.max(s, axis=-1, keepdims=True))
    alpha = jnp.exp(m_prev - m_new)
    p = jnp.exp(s - m_new)
    l_sc[...] = alpha * l_sc[...] + jnp.sum(p, axis=-1, keepdims=True)
    # TODO(synk): pair heads for the p@v dot so Dh=128 does not half-idle the
    # 256x256 MXUs on v6e/v7x.
    acc_sc[...] = alpha * acc_sc[...] + jnp.dot(
        p.astype(jnp.bfloat16), v_ref[0, 0], preferred_element_type=jnp.float32)
    m_sc[...] = m_new

    @pl.when(kv == pl.num_programs(3) - 1)
    def _():
        inv_l = pl.reciprocal(l_sc[...], approx=True)
        o_ref[...] = (acc_sc[...] * inv_l)[None, None].astype(o_ref.dtype)


def _attn_proj_kernel(x_ref, w_ref, b_ref, gate_ref, res_ref, o_ref):
    # out = res + gate * (attn @ W_proj_eff + b).  Full head reduction done
    # in-kernel (grid = (B, N-tiles, L-tiles), L innermost so the weight tile
    # stays VMEM-resident across the whole sequence).  Heads are paired
    # (g = 2 when H is even) so the MXU contraction depth is 2*Dh.
    hg = w_ref.shape[0]
    nheads = x_ref.shape[1]
    g = nheads // hg
    acc = jnp.zeros(o_ref.shape[1:], jnp.float32)
    for i in range(hg):
        if g == 1:
            xh = x_ref[0, i]
        else:
            xh = jnp.concatenate([x_ref[0, i * g + r] for r in range(g)], axis=-1)
        acc = acc + jnp.dot(xh, w_ref[i], preferred_element_type=jnp.float32)
    out = acc + b_ref[...]
    o_ref[...] = (res_ref[0] + gate_ref[0] * out)[None]


def _ln_mod_mlp1_kernel(x_ref, scale_ref, shift_ref, w_ref, b_ref, o_ref, xm_ref):
    # gelu_tanh(ln_modulate(x) @ W1 + b1); grid = (B, L-tiles, N-tiles).
    j = pl.program_id(2)

    @pl.when(j == 0)
    def _():
        xm = _ln_modulate(x_ref[0], scale_ref[0], shift_ref[0])
        xm_ref[...] = xm.astype(jnp.bfloat16)

    h = jnp.dot(xm_ref[...], w_ref[...],
                preferred_element_type=jnp.float32) + b_ref[...]
    c = 0.7978845608028654                          # sqrt(2/pi), GELU tanh
    h = 0.5 * h * (1.0 + jnp.tanh(c * (h + 0.044715 * h * h * h)))
    o_ref[...] = h[None].astype(o_ref.dtype)


def _matmul_gated_res_kernel(x_ref, w_ref, b_ref, gate_ref, res_ref, o_ref, acc_ref):
    # out = res + gate * (x @ W + b); grid = (B, L, N, K), K last.
    k = pl.program_id(3)

    @pl.when(k == 0)
    def _():
        acc_ref[...] = jnp.zeros(acc_ref.shape, acc_ref.dtype)

    acc_ref[...] += jnp.dot(x_ref[0].astype(jnp.bfloat16), w_ref[...],
                            preferred_element_type=jnp.float32)

    @pl.when(k == pl.num_programs(3) - 1)
    def _():
        out = acc_ref[...] + b_ref[...]
        o_ref[...] = (res_ref[0] + gate_ref[0] * out)[None]


# ------------------------------- wrappers ----------------------------------

def pallas_modulation(vec_silu, w, b):
    B, D = vec_silu.shape
    N = w.shape[1]
    tn = _pick_tile(N, _TN, 128)
    return pl.pallas_call(
        _modulation_kernel,
        out_shape=jax.ShapeDtypeStruct((B, N), jnp.float32),
        grid=(N // tn,),
        in_specs=[pl.BlockSpec((B, D), lambda j: (0, 0)),
                  pl.BlockSpec((D, tn), lambda j: (0, j)),
                  pl.BlockSpec((1, tn), lambda j: (0, j))],
        out_specs=pl.BlockSpec((B, tn), lambda j: (0, j)),
        compiler_params=_cp(("parallel",)),
    )(vec_silu, w, b)


def pallas_ln_mod_qkv(x, scale, shift, w3, b3, qk_scale, cos, sin, *,
                      pos_block_offset, tl):
    B, L, D = x.shape
    H = w3.shape[0]
    Dh = w3.shape[2] // 3
    half = Dh // 2
    out_sds = jax.ShapeDtypeStruct((B, H, L, Dh), jnp.bfloat16)
    out_spec = pl.BlockSpec((1, 1, tl, Dh), lambda b, l, h: (b, h, l, 0))
    return pl.pallas_call(
        _ln_mod_qkv_rope_kernel,
        out_shape=(out_sds, out_sds, out_sds),
        grid=(B, L // tl, H),
        in_specs=[
            pl.BlockSpec((1, tl, D), lambda b, l, h: (b, l, 0)),
            pl.BlockSpec((1, 1, D), lambda b, l, h: (b, 0, 0)),
            pl.BlockSpec((1, 1, D), lambda b, l, h: (b, 0, 0)),
            pl.BlockSpec((1, D, 3 * Dh), lambda b, l, h: (h, 0, 0)),
            pl.BlockSpec((1, 1, 3 * Dh), lambda b, l, h: (h, 0, 0)),
            pl.BlockSpec((2, Dh), lambda b, l, h: (0, 0)),
            pl.BlockSpec((tl, half), lambda b, l, h: (l + pos_block_offset, 0)),
            pl.BlockSpec((tl, half), lambda b, l, h: (l + pos_block_offset, 0)),
        ],
        out_specs=(out_spec, out_spec, out_spec),
        scratch_shapes=[pltpu.VMEM((tl, D), jnp.bfloat16)],
        compiler_params=_cp(("parallel", "parallel", "arbitrary")),
    )(x, scale, shift, w3, b3, qk_scale, cos, sin)


def pallas_flash_attention(q, k, v):
    B, H, L, Dh = q.shape
    tq = _pick_tile(L, _TQ, 8)
    tk = _pick_tile(L, _TKV, 8)
    return pl.pallas_call(
        _flash_attn_kernel,
        out_shape=jax.ShapeDtypeStruct((B, H, L, Dh), jnp.bfloat16),
        grid=(B, H, L // tq, L // tk),
        in_specs=[pl.BlockSpec((1, 1, tq, Dh), lambda b, h, qi, ki: (b, h, qi, 0)),
                  pl.BlockSpec((1, 1, tk, Dh), lambda b, h, qi, ki: (b, h, ki, 0)),
                  pl.BlockSpec((1, 1, tk, Dh), lambda b, h, qi, ki: (b, h, ki, 0))],
        out_specs=pl.BlockSpec((1, 1, tq, Dh), lambda b, h, qi, ki: (b, h, qi, 0)),
        scratch_shapes=[pltpu.VMEM((tq, 1), jnp.float32),
                        pltpu.VMEM((tq, 1), jnp.float32),
                        pltpu.VMEM((tq, Dh), jnp.float32)],
        compiler_params=_cp(("parallel", "parallel", "parallel", "arbitrary")),
    )(q, k, v)


def pallas_attn_proj(attn, w_g, b, gate, res, *, l_block_offset, tl):
    B, H, Ltot, Dh = attn.shape
    Ls, N = res.shape[1], res.shape[2]
    Hg, gDh = w_g.shape[0], w_g.shape[1]
    tn = _pick_tile(N, _TN, 128)
    return pl.pallas_call(
        _attn_proj_kernel,
        out_shape=jax.ShapeDtypeStruct((B, Ls, N), jnp.float32),
        grid=(B, N // tn, Ls // tl),
        in_specs=[
            pl.BlockSpec((1, H, tl, Dh),
                         lambda b, j, l: (b, 0, l + l_block_offset, 0)),
            pl.BlockSpec((Hg, gDh, tn), lambda b, j, l: (0, 0, j)),
            pl.BlockSpec((1, tn), lambda b, j, l: (0, j)),
            pl.BlockSpec((1, 1, tn), lambda b, j, l: (b, 0, j)),
            pl.BlockSpec((1, tl, tn), lambda b, j, l: (b, l, j)),
        ],
        out_specs=pl.BlockSpec((1, tl, tn), lambda b, j, l: (b, l, j)),
        compiler_params=_cp(("parallel", "parallel", "arbitrary")),
    )(attn, w_g, b, gate, res)


def pallas_ln_mod_mlp1(x, scale, shift, w1, b1):
    B, L, D = x.shape
    N = w1.shape[1]
    tl = _pick_tile(L, _TL, 8)
    tn = _pick_tile(N, _TN, 128)
    return pl.pallas_call(
        _ln_mod_mlp1_kernel,
        out_shape=jax.ShapeDtypeStruct((B, L, N), jnp.bfloat16),
        grid=(B, L // tl, N // tn),
        in_specs=[pl.BlockSpec((1, tl, D), lambda b, l, j: (b, l, 0)),
                  pl.BlockSpec((1, 1, D), lambda b, l, j: (b, 0, 0)),
                  pl.BlockSpec((1, 1, D), lambda b, l, j: (b, 0, 0)),
                  pl.BlockSpec((D, tn), lambda b, l, j: (0, j)),
                  pl.BlockSpec((1, tn), lambda b, l, j: (0, j))],
        out_specs=pl.BlockSpec((1, tl, tn), lambda b, l, j: (b, l, j)),
        scratch_shapes=[pltpu.VMEM((tl, D), jnp.bfloat16)],
        compiler_params=_cp(("parallel", "parallel", "arbitrary")),
    )(x, scale, shift, w1, b1)


def pallas_matmul_gated_res(x, w, b, gate, res):
    B, L, K = x.shape
    N = w.shape[1]
    tl = _pick_tile(L, _TL, 8)
    tn = _pick_tile(N, _TN, 128)
    tk = _pick_tile(K, _TK, 128)
    return pl.pallas_call(
        _matmul_gated_res_kernel,
        out_shape=jax.ShapeDtypeStruct((B, L, N), jnp.float32),
        grid=(B, L // tl, N // tn, K // tk),
        in_specs=[pl.BlockSpec((1, tl, tk), lambda b, l, j, k: (b, l, k)),
                  pl.BlockSpec((tk, tn), lambda b, l, j, k: (k, j)),
                  pl.BlockSpec((1, tn), lambda b, l, j, k: (0, j)),
                  pl.BlockSpec((1, 1, tn), lambda b, l, j, k: (b, 0, j)),
                  pl.BlockSpec((1, tl, tn), lambda b, l, j, k: (b, l, j))],
        out_specs=pl.BlockSpec((1, tl, tn), lambda b, l, j, k: (b, l, j)),
        scratch_shapes=[pltpu.VMEM((tl, tn), jnp.float32)],
        compiler_params=_cp(("parallel", "parallel", "parallel", "arbitrary")),
    )(x, w, b, gate, res)


# ------------------------------ JAX glue ------------------------------------

def build_pe(L, head_dim, theta=10000.0):
    # flux rope(): (1, 1, L, head_dim//2, 2, 2) rotation matrices
    half = head_dim // 2
    scale = jnp.arange(0, head_dim, 2, dtype=jnp.float32) / head_dim
    omega = 1.0 / (theta ** scale)                                   # (half,)
    out = jnp.arange(L, dtype=jnp.float32)[:, None] * omega[None, :]
    cos, sin = jnp.cos(out), jnp.sin(out)
    rot = jnp.stack([cos, -sin, sin, cos], axis=-1).reshape(L, half, 2, 2)
    return rot[None, None]


def double_stream_lora_forward(params, img, txt, vec, pe):
    B, L_img, D = img.shape
    L_txt = txt.shape[1]

    # --- modulation: one merged GEMV for both streams, SiLU done once here ---
    vec_s = (vec * jax.nn.sigmoid(vec)).astype(jnp.bfloat16)
    mod = pallas_modulation(vec_s, params["mod_w"], params["mod_b"])  # (B, 12D)
    img_mod = mod[:, :6 * D].reshape(B, 6, 1, D)
    txt_mod = mod[:, 6 * D:].reshape(B, 6, 1, D)
    i_shift1, i_scale1, i_gate1 = img_mod[:, 0], img_mod[:, 1], img_mod[:, 2]
    i_shift2, i_scale2, i_gate2 = img_mod[:, 3], img_mod[:, 4], img_mod[:, 5]
    t_shift1, t_scale1, t_gate1 = txt_mod[:, 0], txt_mod[:, 1], txt_mod[:, 2]
    t_shift2, t_scale2, t_gate2 = txt_mod[:, 3], txt_mod[:, 4], txt_mod[:, 5]

    # --- RoPE tables from pe (tiny glue); rotation itself is fused in-kernel.
    cos = pe[0, 0, :, :, 0, 0].astype(jnp.float32)   # (Ltot, Dh/2)
    sin = pe[0, 0, :, :, 1, 0].astype(jnp.float32)

    # Shared sequence tile so txt/img offsets are whole block counts.
    tl = _pick_tile(math.gcd(L_txt, L_img), _TL, 8)
    txt_off = 0
    img_off = L_txt // tl

    # Fused LN+modulate -> qkv(+merged LoRA) -> QK-RMSNorm -> RoPE, bf16 out.
    txt_q, txt_k, txt_v = pallas_ln_mod_qkv(
        txt, t_scale1, t_shift1, params["txt_qkv_w3"], params["txt_qkv_b3"],
        params["txt_qk_scale"], cos, sin, pos_block_offset=txt_off, tl=tl)
    img_q, img_k, img_v = pallas_ln_mod_qkv(
        img, i_scale1, i_shift1, params["img_qkv_w3"], params["img_qkv_b3"],
        params["img_qk_scale"], cos, sin, pos_block_offset=img_off, tl=tl)

    # TODO(synk): write q/k/v of both streams directly into one (B,H,Ltot,Dh)
    # buffer (io-aliased block-offset writes) to remove this bf16 concat too.
    q = jnp.concatenate([txt_q, img_q], axis=2)
    k = jnp.concatenate([txt_k, img_k], axis=2)
    v = jnp.concatenate([txt_v, img_v], axis=2)

    attn = pallas_flash_attention(q, k, v)           # (B, H, Ltot, Dh) bf16

    # ---- img stream ----
    img = pallas_attn_proj(attn, params["img_proj_w3"], params["img_proj_b"],
                           i_gate1, img, l_block_offset=img_off, tl=tl)
    img_h = pallas_ln_mod_mlp1(img, i_scale2, i_shift2,
                               params["img_mlp_w1"], params["img_mlp_b1"])
    img = pallas_matmul_gated_res(img_h, params["img_mlp_w2"],
                                  params["img_mlp_b2"], i_gate2, img)

    # ---- txt stream ----
    txt = pallas_attn_proj(attn, params["txt_proj_w3"], params["txt_proj_b"],
                           t_gate1, txt, l_block_offset=txt_off, tl=tl)
    txt_h = pallas_ln_mod_mlp1(txt, t_scale2, t_shift2,
                               params["txt_mlp_w1"], params["txt_mlp_b1"])
    txt = pallas_matmul_gated_res(txt_h, params["txt_mlp_w2"],
                                  params["txt_mlp_b2"], t_gate2, txt)
    return img, txt


# --------------------------- parameter handling ------------------------------

def init_params(key, dim, num_heads, rank):
    """Raw f32 parameters, weights stored (in_features, out_features)."""
    keys = iter(jax.random.split(key, 32))

    def nrm(shape, std=0.02):
        return jax.random.normal(next(keys), shape, dtype=jnp.float32) * std

    p = {}
    for pre in ("img", "txt"):
        p[f"{pre}_mod_w"] = nrm((dim, 6 * dim))
        p[f"{pre}_mod_b"] = jnp.zeros((1, 6 * dim), jnp.float32)
        p[f"{pre}_qkv_w"] = nrm((dim, 3 * dim))
        p[f"{pre}_qkv_b"] = jnp.zeros((1, 3 * dim), jnp.float32)
        p[f"{pre}_q_scale"] = jnp.ones((dim // num_heads,), jnp.float32)
        p[f"{pre}_k_scale"] = jnp.ones((dim // num_heads,), jnp.float32)
        p[f"{pre}_proj_w"] = nrm((dim, dim))
        p[f"{pre}_proj_b"] = jnp.zeros((1, dim), jnp.float32)
        p[f"{pre}_mlp_w1"] = nrm((dim, 4 * dim))
        p[f"{pre}_mlp_b1"] = jnp.zeros((1, 4 * dim), jnp.float32)
        p[f"{pre}_mlp_w2"] = nrm((4 * dim, dim))
        p[f"{pre}_mlp_b2"] = jnp.zeros((1, dim), jnp.float32)
    # LoRA (rank=4, network_alpha=None).  NOTE: diffusers zero-inits `up`;
    # small random init here so the LoRA path contributes non-trivially.
    p["qkv_lora1_down"] = nrm((dim, rank), 1.0 / rank)
    p["qkv_lora1_up"] = nrm((rank, 3 * dim))
    p["proj_lora1_down"] = nrm((dim, rank), 1.0 / rank)
    p["proj_lora1_up"] = nrm((rank, dim))
    p["qkv_lora2_down"] = nrm((dim, rank), 1.0 / rank)
    p["qkv_lora2_up"] = nrm((rank, 3 * dim))
    p["proj_lora2_down"] = nrm((dim, rank), 1.0 / rank)
    p["proj_lora2_up"] = nrm((rank, dim))
    return p


def prepare_params(raw, dim, num_heads, lora_weight):
    """Merge LoRA (W_eff = W + lw*down@up), cast weights to bf16, pre-layout
    qkv/proj weights for the fused kernels, bake the RoPE even/odd head-dim
    permutation into q/k columns, and fold 1/sqrt(Dh) into the q scale."""
    H = num_heads
    Dh = dim // H
    lw = float(lora_weight)
    sm_scale = 1.0 / math.sqrt(Dh)
    # De-interleave permutation: even head-dims first, odd second.  Applied to
    # q and k only; invariant for q.k dot products, enables split-half RoPE.
    perm = jnp.concatenate([jnp.arange(0, Dh, 2), jnp.arange(1, Dh, 2)])
    g = 2 if H % 2 == 0 else 1                      # head pairing for proj

    p = {}
    # Merged img+txt modulation GEMV.
    p["mod_w"] = jnp.concatenate([raw["img_mod_w"], raw["txt_mod_w"]],
                                 axis=1).astype(jnp.bfloat16)
    p["mod_b"] = jnp.concatenate([raw["img_mod_b"], raw["txt_mod_b"]], axis=1)

    lora = {"img": ("qkv_lora1", "proj_lora1"), "txt": ("qkv_lora2", "proj_lora2")}
    for pre in ("img", "txt"):
        qk_name, pj_name = lora[pre]

        qkv_w = raw[f"{pre}_qkv_w"] + lw * (raw[f"{qk_name}_down"] @ raw[f"{qk_name}_up"])
        qkv_w = qkv_w.reshape(dim, 3, H, Dh)        # columns ordered (K, H, D)
        qkv_w = jnp.stack([qkv_w[:, 0][..., perm],  # q: permuted
                           qkv_w[:, 1][..., perm],  # k: permuted
                           qkv_w[:, 2]], axis=1)    # v: untouched
        p[f"{pre}_qkv_w3"] = (qkv_w.transpose(2, 0, 1, 3)
                              .reshape(H, dim, 3 * Dh).astype(jnp.bfloat16))
        qkv_b = raw[f"{pre}_qkv_b"].reshape(3, H, Dh)
        qkv_b = jnp.stack([qkv_b[0][..., perm], qkv_b[1][..., perm], qkv_b[2]],
                          axis=0)
        p[f"{pre}_qkv_b3"] = qkv_b.transpose(1, 0, 2).reshape(H, 1, 3 * Dh)
        # 1/sqrt(Dh) softmax scale folded into the (permuted) learnable q scale.
        p[f"{pre}_qk_scale"] = jnp.stack(
            [raw[f"{pre}_q_scale"][perm] * sm_scale,
             raw[f"{pre}_k_scale"][perm]], axis=0)  # (2, Dh)

        proj_w = raw[f"{pre}_proj_w"] + lw * (raw[f"{pj_name}_down"] @ raw[f"{pj_name}_up"])
        # input features ordered (h, d); pair consecutive heads -> (H/g, g*Dh, D)
        p[f"{pre}_proj_w3"] = proj_w.reshape(H // g, g * Dh, dim).astype(jnp.bfloat16)
        p[f"{pre}_proj_b"] = raw[f"{pre}_proj_b"]

        p[f"{pre}_mlp_w1"] = raw[f"{pre}_mlp_w1"].astype(jnp.bfloat16)
        p[f"{pre}_mlp_b1"] = raw[f"{pre}_mlp_b1"]
        p[f"{pre}_mlp_w2"] = raw[f"{pre}_mlp_w2"].astype(jnp.bfloat16)
        p[f"{pre}_mlp_b2"] = raw[f"{pre}_mlp_b2"]
    return p


# ---------------------------------- main -------------------------------------

if __name__ == "__main__":
    dim, num_heads, rank = 32, 2, 4
    B, L_img, L_txt = 2, 8, 8
    head_dim = dim // num_heads

    key = jax.random.PRNGKey(0)
    k_img, k_txt, k_vec, k_param = jax.random.split(key, 4)
    img = jax.random.normal(k_img, (B, L_img, dim), jnp.float32)
    txt = jax.random.normal(k_txt, (B, L_txt, dim), jnp.float32)
    vec = jax.random.normal(k_vec, (B, dim), jnp.float32)
    pe = build_pe(L_txt + L_img, head_dim)

    raw = init_params(k_param, dim, num_heads, rank)
    params = prepare_params(raw, dim, num_heads, lora_weight=1.0)

    fwd = jax.jit(double_stream_lora_forward)
    img_out, txt_out = fwd(params, img, txt, vec, pe)
    jax.block_until_ready((img_out, txt_out))

    assert img_out.shape == (B, L_img, dim)
    assert txt_out.shape == (B, L_txt, dim)
    assert bool(jnp.isfinite(img_out).all()) and bool(jnp.isfinite(txt_out).all())
    print("KERNEL_OK")
</pallas_src>

<mosaic_0001>
module attributes {stable_mosaic.version = 11 : i64} {
  func.func @_modulation_kernel(%arg0: i32, %arg1: memref<2x32xbf16, #tpu.memory_space<vmem>>, %arg2: memref<32x384xbf16, #tpu.memory_space<vmem>>, %arg3: memref<1x384xf32, #tpu.memory_space<vmem>>, %arg4: memref<2x384xf32, #tpu.memory_space<vmem>>) attributes {dimension_semantics = [#tpu.dimension_semantics<parallel>], iteration_bounds = array<i64: 1>, scalar_prefetch = 0 : i64, scratch_operands = 0 : i64, tpu.core_type = #tpu.core_type<tc>, window_params = [{pipeline_mode = #tpu.pipeline_mode<synchronous>, transform_indices = @transform_0, window_bounds = array<i64: 2, 32>}, {transform_indices = @transform_1, window_bounds = array<i64: 32, 384>}, {transform_indices = @transform_2, window_bounds = array<i64: 1, 384>}, {transform_indices = @transform_3, window_bounds = array<i64: 2, 384>}]} {
    %c0 = arith.constant 0 : index
    %c0_0 = arith.constant 0 : index
    %0 = vector.load %arg1[%c0, %c0_0] : memref<2x32xbf16, #tpu.memory_space<vmem>>, vector<2x32xbf16>
    %c0_1 = arith.constant 0 : index
    %c0_2 = arith.constant 0 : index
    %1 = vector.load %arg2[%c0_1, %c0_2] : memref<32x384xbf16, #tpu.memory_space<vmem>>, vector<32x384xbf16>
    %cst = arith.constant dense<0.000000e+00> : vector<2x384xf32>
    %2 = tpu.matmul %0, %1, %cst {dimension_numbers = #tpu.dot_dimension_numbers<[1], [0], [0], [1], [0, 0, 1, 1], [], []>} : vector<2x32xbf16>, vector<32x384xbf16>, vector<2x384xf32> -> vector<2x384xf32>
    %c0_3 = arith.constant 0 : index
    %c0_4 = arith.constant 0 : index
    %3 = vector.load %arg3[%c0_3, %c0_4] : memref<1x384xf32, #tpu.memory_space<vmem>>, vector<1x384xf32>
    %4 = vector.broadcast %3 : vector<1x384xf32> to vector<2x384xf32>
    %5 = arith.addf %2, %4 : vector<2x384xf32>
    %c0_5 = arith.constant 0 : index
    %c0_6 = arith.constant 0 : index
    %6 = vector.load %arg4[%c0_5, %c0_6] : memref<2x384xf32, #tpu.memory_space<vmem>>, vector<2x384xf32>
    tpu.vector_store %arg4[%c0_5, %c0_6], %5 {strides = array<i32>} : memref<2x384xf32, #tpu.memory_space<vmem>>, vector<2x384xf32>,
    return
  }
  func.func @transform_0(%arg0: i32) -> (i32, i32) {
    %c0_i32 = arith.constant 0 : i32
    %c0_i32_0 = arith.constant 0 : i32
    %c0_i32_1 = arith.constant 0 : i32
    return %c0_i32, %c0_i32_0 : i32, i32
  }
  func.func @transform_1(%arg0: i32) -> (i32, i32) {
    %c0_i32 = arith.constant 0 : i32
    %c0_i32_0 = arith.constant 0 : i32
    return %c0_i32, %arg0 : i32, i32
  }
  func.func @transform_2(%arg0: i32) -> (i32, i32) {
    %c0_i32 = arith.constant 0 : i32
    %c0_i32_0 = arith.constant 0 : i32
    return %c0_i32, %arg0 : i32, i32
  }
  func.func @transform_3(%arg0: i32) -> (i32, i32) {
    %c0_i32 = arith.constant 0 : i32
    %c0_i32_0 = arith.constant 0 : i32
    return %c0_i32, %arg0 : i32, i32
  }
}

module attributes {stable_mosaic.version = 11 : i64} {
  func.func @_ln_mod_qkv_rope_kernel(%arg0: i32, %arg1: i32, %arg2: i32, %arg3: memref<1x8x32xf32, #tpu.memory_space<vmem>>, %arg4: memref<1x1x32xf32, #tpu.memory_space<vmem>>, %arg5: memref<1x1x32xf32, #tpu.memory_space<vmem>>, %arg6: memref<1x32x48xbf16, #tpu.memory_space<vmem>>, %arg7: memref<1x1x48xf32, #tpu.memory_space<vmem>>, %arg8: memref<2x16xf32, #tpu.memory_space<vmem>>, %arg9: memref<8x8xf32, #tpu.memory_space<vmem>>, %arg10: memref<8x8xf32, #tpu.memory_space<vmem>>, %arg11: memref<1x1x8x16xbf16, #tpu.memory_space<vmem>>, %arg12: memref<1x1x8x16xbf16, #tpu.memory_space<vmem>>, %arg13: memref<1x1x8x16xbf16, #tpu.memory_space<vmem>>, %arg14: memref<8x32xbf16, #tpu.memory_space<vmem>>) attributes {dimension_semantics = [#tpu.dimension_semantics<parallel>, #tpu.dimension_semantics<parallel>, #tpu.dimension_semantics<arbitrary>], iteration_bounds = array<i64: 2, 1, 2>, scalar_prefetch = 0 : i64, scratch_operands = 1 : i64, tpu.core_type = #tpu.core_type<tc>, window_params = [{transform_indices = @transform_0, window_bounds = array<i64: 1, 8, 32>}, {transform_indices = @transform_1, window_bounds = array<i64: 1, 1, 32>}, {transform_indices = @transform_2, window_bounds = array<i64: 1, 1, 32>}, {transform_indices = @transform_3, window_bounds = array<i64: 1, 32, 48>}, {transform_indices = @transform_4, window_bounds = array<i64: 1, 1, 48>}, {pipeline_mode = #tpu.pipeline_mode<synchronous>, transform_indices = @transform_5, window_bounds = array<i64: 2, 16>}, {transform_indices = @transform_6, window_bounds = array<i64: 8, 8>}, {transform_indices = @transform_7, window_bounds = array<i64: 8, 8>}, {transform_indices = @transform_8, window_bounds = array<i64: 1, 1, 8, 16>}, {transform_indices = @transform_9, window_bounds = array<i64: 1, 1, 8, 16>}, {transform_indices = @transform_10, window_bounds = array<i64: 1, 1, 8, 16>}]} {
    %c0_i32 = arith.constant 0 : i32
    %0 = arith.cmpi eq, %arg2, %c0_i32 : i32
    %1 = arith.extui %0 : i1 to i32
    %c0_i32_0 = arith.constant 0 : i32
    %2 = arith.cmpi ne, %1, %c0_i32_0 : i32
    scf.if %2 {
      %c0_32 = arith.constant 0 : index
      %c0_33 = arith.constant 0 : index
      %c0_34 = arith.constant 0 : index
      %70 = vector.load %arg3[%c0_32, %c0_33, %c0_34] : memref<1x8x32xf32, #tpu.memory_space<vmem>>, vector<1x8x32xf32>
      %71 = vector.shape_cast %70 : vector<1x8x32xf32> to vector<8x32xf32>
      %c0_35 = arith.constant 0 : index
      %c0_36 = arith.constant 0 : index
      %c0_37 = arith.constant 0 : index
      %72 = vector.load %arg4[%c0_35, %c0_36, %c0_37] : memref<1x1x32xf32, #tpu.memory_space<vmem>>, vector<1x1x32xf32>
      %73 = vector.shape_cast %72 : vector<1x1x32xf32> to vector<1x32xf32>
      %c0_38 = arith.constant 0 : index
      %c0_39 = arith.constant 0 : index
      %c0_40 = arith.constant 0 : index
      %74 = vector.load %arg5[%c0_38, %c0_39, %c0_40] : memref<1x1x32xf32, #tpu.memory_space<vmem>>, vector<1x1x32xf32>
      %75 = vector.shape_cast %74 : vector<1x1x32xf32> to vector<1x32xf32>
      %cst_41 = arith.constant dense<0.000000e+00> : vector<8xf32>
      %76 = vector.multi_reduction <add>, %71, %cst_41 [1] : vector<8x32xf32> to vector<8xf32>
      %77 = vector.shape_cast %76 : vector<8xf32> to vector<8x1xf32>
      %cst_42 = arith.constant 3.200000e+01 : f32
      %78 = vector.broadcast %cst_42 : f32 to vector<8x1xf32>
      %79 = arith.divf %77, %78 : vector<8x1xf32>
      %80 = vector.broadcast %79 : vector<8x1xf32> to vector<8x32xf32>
      %81 = arith.subf %71, %80 : vector<8x32xf32>
      %82 = arith.mulf %81, %81 : vector<8x32xf32>
      %cst_43 = arith.constant dense<0.000000e+00> : vector<8xf32>
      %83 = vector.multi_reduction <add>, %82, %cst_43 [1] : vector<8x32xf32> to vector<8xf32>
      %84 = vector.shape_cast %83 : vector<8xf32> to vector<8x1xf32>
      %cst_44 = arith.constant 3.200000e+01 : f32
      %85 = vector.broadcast %cst_44 : f32 to vector<8x1xf32>
      %86 = arith.divf %84, %85 : vector<8x1xf32>
      %87 = vector.broadcast %79 : vector<8x1xf32> to vector<8x32xf32>
      %88 = arith.subf %71, %87 : vector<8x32xf32>
      %cst_45 = arith.constant 9.99999997E-7 : f32
      %89 = vector.broadcast %cst_45 : f32 to vector<8x1xf32>
      %90 = arith.addf %86, %89 : vector<8x1xf32>
      %91 = math.rsqrt %90 : vector<8x1xf32>
      %92 = vector.broadcast %91 : vector<8x1xf32> to vector<8x32xf32>
      %93 = arith.mulf %88, %92 : vector<8x32xf32>
      %cst_46 = arith.constant 1.000000e+00 : f32
      %94 = vector.broadcast %cst_46 : f32 to vector<1x32xf32>
      %95 = arith.addf %94, %73 : vector<1x32xf32>
      %96 = vector.broadcast %95 : vector<1x32xf32> to vector<8x32xf32>
      %97 = arith.mulf %96, %93 : vector<8x32xf32>
      %98 = vector.broadcast %75 : vector<1x32xf32> to vector<8x32xf32>
      %99 = arith.addf %97, %98 : vector<8x32xf32>
      %100 = arith.truncf %99 : vector<8x32xf32> to vector<8x32xbf16>
      %c0_47 = arith.constant 0 : index
      %c0_48 = arith.constant 0 : index
      %101 = vector.load %arg14[%c0_47, %c0_48] : memref<8x32xbf16, #tpu.memory_space<vmem>>, vector<8x32xbf16>
      tpu.vector_store %arg14[%c0_47, %c0_48], %100 {strides = array<i32>} : memref<8x32xbf16, #tpu.memory_space<vmem>>, vector<8x32xbf16>,
    } else {
    }
    %c0 = arith.constant 0 : index
    %c0_1 = arith.constant 0 : index
    %3 = vector.load %arg14[%c0, %c0_1] : memref<8x32xbf16, #tpu.memory_space<vmem>>, vector<8x32xbf16>
    %c0_2 = arith.constant 0 : index
    %c0_3 = arith.constant 0 : index
    %c0_4 = arith.constant 0 : index
    %4 = vector.load %arg6[%c0_2, %c0_3, %c0_4] : memref<1x32x48xbf16, #tpu.memory_space<vmem>>, vector<1x32x48xbf16>
    %5 = vector.shape_cast %4 : vector<1x32x48xbf16> to vector<32x48xbf16>
    %cst = arith.constant dense<0.000000e+00> : vector<8x48xf32>
    %6 = tpu.matmul %3, %5, %cst {dimension_numbers = #tpu.dot_dimension_numbers<[1], [0], [0], [1], [0, 0, 1, 1], [], []>} : vector<8x32xbf16>, vector<32x48xbf16>, vector<8x48xf32> -> vector<8x48xf32>
    %c0_5 = arith.constant 0 : index
    %c0_6 = arith.constant 0 : index
    %c0_7 = arith.constant 0 : index
    %7 = vector.load %arg7[%c0_5, %c0_6, %c0_7] : memref<1x1x48xf32, #tpu.memory_space<vmem>>, vector<1x1x48xf32>
    %8 = vector.shape_cast %7 : vector<1x1x48xf32> to vector<1x48xf32>
    %9 = vector.broadcast %8 : vector<1x48xf32> to vector<8x48xf32>
    %10 = arith.addf %6, %9 : vector<8x48xf32>
    %11 = vector.extract_strided_slice %10 {offsets = [0, 0], sizes = [8, 16], strides = [1, 1]} : vector<8x48xf32> to vector<8x16xf32>
    %12 = vector.extract_strided_slice %10 {offsets = [0, 16], sizes = [8, 16], strides = [1, 1]} : vector<8x48xf32> to vector<8x16xf32>
    %13 = vector.extract_strided_slice %10 {offsets = [0, 32], sizes = [8, 16], strides = [1, 1]} : vector<8x48xf32> to vector<8x16xf32>
    %c0_8 = arith.constant 0 : index
    %c0_9 = arith.constant 0 : index
    %14 = vector.load %arg8[%c0_8, %c0_9] : memref<2x16xf32, #tpu.memory_space<vmem>>, vector<2x16xf32>
    %15 = arith.mulf %11, %11 : vector<8x16xf32>
    %cst_10 = arith.constant dense<0.000000e+00> : vector<8xf32>
    %16 = vector.multi_reduction <add>, %15, %cst_10 [1] : vector<8x16xf32> to vector<8xf32>
    %17 = vector.shape_cast %16 : vector<8xf32> to vector<8x1xf32>
    %cst_11 = arith.constant 1.600000e+01 : f32
    %18 = vector.broadcast %cst_11 : f32 to vector<8x1xf32>
    %19 = arith.divf %17, %18 : vector<8x1xf32>
    %cst_12 = arith.constant 9.99999997E-7 : f32
    %20 = vector.broadcast %cst_12 : f32 to vector<8x1xf32>
    %21 = arith.addf %19, %20 : vector<8x1xf32>
    %22 = math.rsqrt %21 : vector<8x1xf32>
    %23 = vector.broadcast %22 : vector<8x1xf32> to vector<8x16xf32>
    %24 = arith.mulf %11, %23 : vector<8x16xf32>
    %25 = vector.extract_strided_slice %14 {offsets = [0, 0], sizes = [1, 16], strides = [1, 1]} : vector<2x16xf32> to vector<1x16xf32>
    %26 = vector.broadcast %25 : vector<1x16xf32> to vector<8x16xf32>
    %27 = arith.mulf %24, %26 : vector<8x16xf32>
    %28 = arith.mulf %12, %12 : vector<8x16xf32>
    %cst_13 = arith.constant dense<0.000000e+00> : vector<8xf32>
    %29 = vector.multi_reduction <add>, %28, %cst_13 [1] : vector<8x16xf32> to vector<8xf32>
    %30 = vector.shape_cast %29 : vector<8xf32> to vector<8x1xf32>
    %cst_14 = arith.constant 1.600000e+01 : f32
    %31 = vector.broadcast %cst_14 : f32 to vector<8x1xf32>
    %32 = arith.divf %30, %31 : vector<8x1xf32>
    %cst_15 = arith.constant 9.99999997E-7 : f32
    %33 = vector.broadcast %cst_15 : f32 to vector<8x1xf32>
    %34 = arith.addf %32, %33 : vector<8x1xf32>
    %35 = math.rsqrt %34 : vector<8x1xf32>
    %36 = vector.broadcast %35 : vector<8x1xf32> to vector<8x16xf32>
    %37 = arith.mulf %12, %36 : vector<8x16xf32>
    %38 = vector.extract_strided_slice %14 {offsets = [1, 0], sizes = [1, 16], strides = [1, 1]} : vector<2x16xf32> to vector<1x16xf32>
    %39 = vector.broadcast %38 : vector<1x16xf32> to vector<8x16xf32>
    %40 = arith.mulf %37, %39 : vector<8x16xf32>
    %c0_16 = arith.constant 0 : index
    %c0_17 = arith.constant 0 : index
    %41 = vector.load %arg9[%c0_16, %c0_17] : memref<8x8xf32, #tpu.memory_space<vmem>>, vector<8x8xf32>
    %c0_18 = arith.constant 0 : index
    %c0_19 = arith.constant 0 : index
    %42 = vector.load %arg10[%c0_18, %c0_19] : memref<8x8xf32, #tpu.memory_space<vmem>>, vector<8x8xf32>
    %43 = vector.extract_strided_slice %27 {offsets = [0, 0], sizes = [8, 8], strides = [1, 1]} : vector<8x16xf32> to vector<8x8xf32>
    %44 = vector.extract_strided_slice %27 {offsets = [0, 8], sizes = [8, 8], strides = [1, 1]} : vector<8x16xf32> to vector<8x8xf32>
    %45 = vector.extract_strided_slice %40 {offsets = [0, 0], sizes = [8, 8], strides = [1, 1]} : vector<8x16xf32> to vector<8x8xf32>
    %46 = vector.extract_strided_slice %40 {offsets = [0, 8], sizes = [8, 8], strides = [1, 1]} : vector<8x16xf32> to vector<8x8xf32>
    %47 = arith.mulf %43, %41 : vector<8x8xf32>
    %48 = arith.mulf %44, %42 : vector<8x8xf32>
    %49 = arith.subf %47, %48 : vector<8x8xf32>
    %50 = arith.mulf %43, %42 : vector<8x8xf32>
    %51 = arith.mulf %44, %41 : vector<8x8xf32>
    %52 = arith.addf %50, %51 : vector<8x8xf32>
    %53 = tpu.concatenate %49, %52 in 1 : vector<8x8xf32>, vector<8x8xf32> -> vector<8x16xf32>
    %54 = arith.mulf %45, %41 : vector<8x8xf32>
    %55 = arith.mulf %46, %42 : vector<8x8xf32>
    %56 = arith.subf %54, %55 : vector<8x8xf32>
    %57 = arith.mulf %45, %42 : vector<8x8xf32>
    %58 = arith.mulf %46, %41 : vector<8x8xf32>
    %59 = arith.addf %57, %58 : vector<8x8xf32>
    %60 = tpu.concatenate %56, %59 in 1 : vector<8x8xf32>, vector<8x8xf32> -> vector<8x16xf32>
    %61 = vector.shape_cast %53 : vector<8x16xf32> to vector<1x1x8x16xf32>
    %62 = arith.truncf %61 : vector<1x1x8x16xf32> to vector<1x1x8x16xbf16>
    %c0_20 = arith.constant 0 : index
    %c0_21 = arith.constant 0 : index
    %c0_22 = arith.constant 0 : index
    %c0_23 = arith.constant 0 : index
    %63 = vector.load %arg11[%c0_20, %c0_21, %c0_22, %c0_23] : memref<1x1x8x16xbf16, #tpu.memory_space<vmem>>, vector<1x1x8x16xbf16>
    tpu.vector_store %arg11[%c0_20, %c0_21, %c0_22, %c0_23], %62 {strides = array<i32>} : memref<1x1x8x16xbf16, #tpu.memory_space<vmem>>, vector<1x1x8x16xbf16>,
    %64 = vector.shape_cast %60 : vector<8x16xf32> to vector<1x1x8x16xf32>
    %65 = arith.truncf %64 : vector<1x1x8x16xf32> to vector<1x1x8x16xbf16>
    %c0_24 = arith.constant 0 : index
    %c0_25 = arith.constant 0 : index
    %c0_26 = arith.constant 0 : index
    %c0_27 = arith.constant 0 : index
    %66 = vector.load %arg12[%c0_24, %c0_25, %c0_26, %c0_27] : memref<1x1x8x16xbf16, #tpu.memory_space<vmem>>, vector<1x1x8x16xbf16>
    tpu.vector_store %arg12[%c0_24, %c0_25, %c0_26, %c0_27], %65 {strides = array<i32>} : memref<1x1x8x16xbf16, #tpu.memory_space<vmem>>, vector<1x1x8x16xbf16>,
    %67 = vector.shape_cast %13 : vector<8x16xf32> to vector<1x1x8x16xf32>
    %68 = arith.truncf %67 : vector<1x1x8x16xf32> to vector<1x1x8x16xbf16>
    %c0_28 = arith.constant 0 : index
    %c0_29 = arith.constant 0 : index
    %c0_30 = arith.constant 0 : index
    %c0_31 = arith.constant 0 : index
    %69 = vector.load %arg13[%c0_28, %c0_29, %c0_30, %c0_31] : memref<1x1x8x16xbf16, #tpu.memory_space<vmem>>, vector<1x1x8x16xbf16>
    tpu.vector_store %arg13[%c0_28, %c0_29, %c0_30, %c0_31], %68 {strides = array<i32>} : memref<1x1x8x16xbf16, #tpu.memory_space<vmem>>, vector<1x1x8x16xbf16>,
    return
  }
  func.func @transform_0(%arg0: i32, %arg1: i32, %arg2: i32) -> (i32, i32, i32) {
    %c0_i32 = arith.constant 0 : i32
    %c0_i32_0 = arith.constant 0 : i32
    return %arg0, %arg1, %c0_i32 : i32, i32, i32
  }
  func.func @transform_1(%arg0: i32, %arg1: i32, %arg2: i32) -> (i32, i32, i32) {
    %c0_i32 = arith.constant 0 : i32
    %c0_i32_0 = arith.constant 0 : i32
    %c0_i32_1 = arith.constant 0 : i32
    return %arg0, %c0_i32, %c0_i32_0 : i32, i32, i32
  }
  func.func @transform_2(%arg0: i32, %arg1: i32, %arg2: i32) -> (i32, i32, i32) {
    %c0_i32 = arith.constant 0 : i32
    %c0_i32_0 = arith.constant 0 : i32
    %c0_i32_1 = arith.constant 0 : i32
    return %arg0, %c0_i32, %c0_i32_0 : i32, i32, i32
  }
  func.func @transform_3(%arg0: i32, %arg1: i32, %arg2: i32) -> (i32, i32, i32) {
    %c0_i32 = arith.constant 0 : i32
    %c0_i32_0 = arith.constant 0 : i32
    %c0_i32_1 = arith.constant 0 : i32
    return %arg2, %c0_i32, %c0_i32_0 : i32, i32, i32
  }
  func.func @transform_4(%arg0: i32, %arg1: i32, %arg2: i32) -> (i32, i32, i32) {
    %c0_i32 = arith.constant 0 : i32
    %c0_i32_0 = arith.constant 0 : i32
    %c0_i32_1 = arith.constant 0 : i32
    return %arg2, %c0_i32, %c0_i32_0 : i32, i32, i32
  }
  func.func @transform_5(%arg0: i32, %arg1: i32, %arg2: i32) -> (i32, i32) {
    %c0_i32 = arith.constant 0 : i32
    %c0_i32_0 = arith.constant 0 : i32
    %c0_i32_1 = arith.constant 0 : i32
    return %c0_i32, %c0_i32_0 : i32, i32
  }
  func.func @transform_6(%arg0: i32, %arg1: i32, %arg2: i32) -> (i32, i32) {
    %c1_i32 = arith.constant 1 : i32
    %0 = arith.addi %arg1, %c1_i32 : i32
    %c0_i32 = arith.constant 0 : i32
    %c0_i32_0 = arith.constant 0 : i32
    return %0, %c0_i32 : i32, i32
  }
  func.func @transform_7(%arg0: i32, %arg1: i32, %arg2: i32) -> (i32, i32) {
    %c1_i32 = arith.constant 1 : i32
    %0 = arith.addi %arg1, %c1_i32 : i32
    %c0_i32 = arith.constant 0 : i32
    %c0_i32_0 = arith.constant 0 : i32
    return %0, %c0_i32 : i32, i32
  }
  func.func @transform_8(%arg0: i32, %arg1: i32, %arg2: i32) -> (i32, i32, i32, i32) {
    %c0_i32 = arith.constant 0 : i32
    %c0_i32_0 = arith.constant 0 : i32
    return %arg0, %arg2, %arg1, %c0_i32 : i32, i32, i32, i32
  }
  func.func @transform_9(%arg0: i32, %arg1: i32, %arg2: i32) -> (i32, i32, i32, i32) {
    %c0_i32 = arith.constant 0 : i32
    %c0_i32_0 = arith.constant 0 : i32
    return %arg0, %arg2, %arg1, %c0_i32 : i32, i32, i32, i32
  }
  func.func @transform_10(%arg0: i32, %arg1: i32, %arg2: i32) -> (i32, i32, i32, i32) {
    %c0_i32 = arith.constant 0 : i32
    %c0_i32_0 = arith.constant 0 : i32
    return %arg0, %arg2, %arg1, %c0_i32 : i32, i32, i32, i32
  }
}

module attributes {stable_mosaic.version = 11 : i64} {
  func.func @_ln_mod_qkv_rope_kernel(%arg0: i32, %arg1: i32, %arg2: i32, %arg3: memref<1x8x32xf32, #tpu.memory_space<vmem>>, %arg4: memref<1x1x32xf32, #tpu.memory_space<vmem>>, %arg5: memref<1x1x32xf32, #tpu.memory_space<vmem>>, %arg6: memref<1x32x48xbf16, #tpu.memory_space<vmem>>, %arg7: memref<1x1x48xf32, #tpu.memory_space<vmem>>, %arg8: memref<2x16xf32, #tpu.memory_space<vmem>>, %arg9: memref<8x8xf32, #tpu.memory_space<vmem>>, %arg10: memref<8x8xf32, #tpu.memory_space<vmem>>, %arg11: memref<1x1x8x16xbf16, #tpu.memory_space<vmem>>, %arg12: memref<1x1x8x16xbf16, #tpu.memory_space<vmem>>, %arg13: memref<1x1x8x16xbf16, #tpu.memory_space<vmem>>, %arg14: memref<8x32xbf16, #tpu.memory_space<vmem>>) attributes {dimension_semantics = [#tpu.dimension_semantics<parallel>, #tpu.dimension_semantics<parallel>, #tpu.dimension_semantics<arbitrary>], iteration_bounds = array<i64: 2, 1, 2>, scalar_prefetch = 0 : i64, scratch_operands = 1 : i64, tpu.core_type = #tpu.core_type<tc>, window_params = [{transform_indices = @transform_0, window_bounds = array<i64: 1, 8, 32>}, {transform_indices = @transform_1, window_bounds = array<i64: 1, 1, 32>}, {transform_indices = @transform_2, window_bounds = array<i64: 1, 1, 32>}, {transform_indices = @transform_3, window_bounds = array<i64: 1, 32, 48>}, {transform_indices = @transform_4, window_bounds = array<i64: 1, 1, 48>}, {pipeline_mode = #tpu.pipeline_mode<synchronous>, transform_indices = @transform_5, window_bounds = array<i64: 2, 16>}, {transform_indices = @transform_6, window_bounds = array<i64: 8, 8>}, {transform_indices = @transform_7, window_bounds = array<i64: 8, 8>}, {transform_indices = @transform_8, window_bounds = array<i64: 1, 1, 8, 16>}, {transform_indices = @transform_9, window_bounds = array<i64: 1, 1, 8, 16>}, {transform_indices = @transform_10, window_bounds = array<i64: 1, 1, 8, 16>}]} {
    %c0_i32 = arith.constant 0 : i32
    %0 = arith.cmpi eq, %arg2, %c0_i32 : i32
    %1 = arith.extui %0 : i1 to i32
    %c0_i32_0 = arith.constant 0 : i32
    %2 = arith.cmpi ne, %1, %c0_i32_0 : i32
    scf.if %2 {
      %c0_32 = arith.constant 0 : index
      %c0_33 = arith.constant 0 : index
      %c0_34 = arith.constant 0 : index
      %70 = vector.load %arg3[%c0_32, %c0_33, %c0_34] : memref<1x8x32xf32, #tpu.memory_space<vmem>>, vector<1x8x32xf32>
      %71 = vector.shape_cast %70 : vector<1x8x32xf32> to vector<8x32xf32>
      %c0_35 = arith.constant 0 : index
      %c0_36 = arith.constant 0 : index
      %c0_37 = arith.constant 0 : index
      %72 = vector.load %arg4[%c0_35, %c0_36, %c0_37] : memref<1x1x32xf32, #tpu.memory_space<vmem>>, vector<1x1x32xf32>
      %73 = vector.shape_cast %72 : vector<1x1x32xf32> to vector<1x32xf32>
      %c0_38 = arith.constant 0 : index
      %c0_39 = arith.constant 0 : index
      %c0_40 = arith.constant 0 : index
      %74 = vector.load %arg5[%c0_38, %c0_39, %c0_40] : memref<1x1x32xf32, #tpu.memory_space<vmem>>, vector<1x1x32xf32>
      %75 = vector.shape_cast %74 : vector<1x1x32xf32> to vector<1x32xf32>
      %cst_41 = arith.constant dense<0.000000e+00> : vector<8xf32>
      %76 = vector.multi_reduction <add>, %71, %cst_41 [1] : vector<8x32xf32> to vector<8xf32>
      %77 = vector.shape_cast %76 : vector<8xf32> to vector<8x1xf32>
      %cst_42 = arith.constant 3.200000e+01 : f32
      %78 = vector.broadcast %cst_42 : f32 to vector<8x1xf32>
      %79 = arith.divf %77, %78 : vector<8x1xf32>
      %80 = vector.broadcast %79 : vector<8x1xf32> to vector<8x32xf32>
      %81 = arith.subf %71, %80 : vector<8x32xf32>
      %82 = arith.mulf %81, %81 : vector<8x32xf32>
      %cst_43 = arith.constant dense<0.000000e+00> : vector<8xf32>
      %83 = vector.multi_reduction <add>, %82, %cst_43 [1] : vector<8x32xf32> to vector<8xf32>
      %84 = vector.shape_cast %83 : vector<8xf32> to vector<8x1xf32>
      %cst_44 = arith.constant 3.200000e+01 : f32
      %85 = vector.broadcast %cst_44 : f32 to vector<8x1xf32>
      %86 = arith.divf %84, %85 : vector<8x1xf32>
      %87 = vector.broadcast %79 : vector<8x1xf32> to vector<8x32xf32>
      %88 = arith.subf %71, %87 : vector<8x32xf32>
      %cst_45 = arith.constant 9.99999997E-7 : f32
      %89 = vector.broadcast %cst_45 : f32 to vector<8x1xf32>
      %90 = arith.addf %86, %89 : vector<8x1xf32>
      %91 = math.rsqrt %90 : vector<8x1xf32>
      %92 = vector.broadcast %91 : vector<8x1xf32> to vector<8x32xf32>
      %93 = arith.mulf %88, %92 : vector<8x32xf32>
      %cst_46 = arith.constant 1.000000e+00 : f32
      %94 = vector.broadcast %cst_46 : f32 to vector<1x32xf32>
      %95 = arith.addf %94, %73 : vector<1x32xf32>
      %96 = vector.broadcast %95 : vector<1x32xf32> to vector<8x32xf32>
      %97 = arith.mulf %96, %93 : vector<8x32xf32>
      %98 = vector.broadcast %75 : vector<1x32xf32> to vector<8x32xf32>
      %99 = arith.addf %97, %98 : vector<8x32xf32>
      %100 = arith.truncf %99 : vector<8x32xf32> to vector<8x32xbf16>
      %c0_47 = arith.constant 0 : index
      %c0_48 = arith.constant 0 : index
      %101 = vector.load %arg14[%c0_47, %c0_48] : memref<8x32xbf16, #tpu.memory_space<vmem>>, vector<8x32xbf16>
      tpu.vector_store %arg14[%c0_47, %c0_48], %100 {strides = array<i32>} : memref<8x32xbf16, #tpu.memory_space<vmem>>, vector<8x32xbf16>,
    } else {
    }
    %c0 = arith.constant 0 : index
    %c0_1 = arith.constant 0 : index
    %3 = vector.load %arg14[%c0, %c0_1] : memref<8x32xbf16, #tpu.memory_space<vmem>>, vector<8x32xbf16>
    %c0_2 = arith.constant 0 : index
    %c0_3 = arith.constant 0 : index
    %c0_4 = arith.constant 0 : index
    %4 = vector.load %arg6[%c0_2, %c0_3, %c0_4] : memref<1x32x48xbf16, #tpu.memory_space<vmem>>, vector<1x32x48xbf16>
    %5 = vector.shape_cast %4 : vector<1x32x48xbf16> to vector<32x48xbf16>
    %cst = arith.constant dense<0.000000e+00> : vector<8x48xf32>
    %6 = tpu.matmul %3, %5, %cst {dimension_numbers = #tpu.dot_dimension_numbers<[1], [0], [0], [1], [0, 0, 1, 1], [], []>} : vector<8x32xbf16>, vector<32x48xbf16>, vector<8x48xf32> -> vector<8x48xf32>
    %c0_5 = arith.constant 0 : index
    %c0_6 = arith.constant 0 : index
    %c0_7 = arith.constant 0 : index
    %7 = vector.load %arg7[%c0_5, %c0_6, %c0_7] : memref<1x1x48xf32, #tpu.memory_space<vmem>>, vector<1x1x48xf32>
    %8 = vector.shape_cast %7 : vector<1x1x48xf32> to vector<1x48xf32>
    %9 = vector.broadcast %8 : vector<1x48xf32> to vector<8x48xf32>
    %10 = arith.addf %6, %9 : vector<8x48xf32>
    %11 = vector.extract_strided_slice %10 {offsets = [0, 0], sizes = [8, 16], strides = [1, 1]} : vector<8x48xf32> to vector<8x16xf32>
    %12 = vector.extract_strided_slice %10 {offsets = [0, 16], sizes = [8, 16], strides = [1, 1]} : vector<8x48xf32> to vector<8x16xf32>
    %13 = vector.extract_strided_slice %10 {offsets = [0, 32], sizes = [8, 16], strides = [1, 1]} : vector<8x48xf32> to vector<8x16xf32>
    %c0_8 = arith.constant 0 : index
    %c0_9 = arith.constant 0 : index
    %14 = vector.load %arg8[%c0_8, %c0_9] : memref<2x16xf32, #tpu.memory_space<vmem>>, vector<2x16xf32>
    %15 = arith.mulf %11, %11 : vector<8x16xf32>
    %cst_10 = arith.constant dense<0.000000e+00> : vector<8xf32>
    %16 = vector.multi_reduction <add>, %15, %cst_10 [1] : vector<8x16xf32> to vector<8xf32>
    %17 = vector.shape_cast %16 : vector<8xf32> to vector<8x1xf32>
    %cst_11 = arith.constant 1.600000e+01 : f32
    %18 = vector.broadcast %cst_11 : f32 to vector<8x1xf32>
    %19 = arith.divf %17, %18 : vector<8x1xf32>
    %cst_12 = arith.constant 9.99999997E-7 : f32
    %20 = vector.broadcast %cst_12 : f32 to vector<8x1xf32>
    %21 = arith.addf %19, %20 : vector<8x1xf32>
    %22 = math.rsqrt %21 : vector<8x1xf32>
    %23 = vector.broadcast %22 : vector<8x1xf32> to vector<8x16xf32>
    %24 = arith.mulf %11, %23 : vector<8x16xf32>
    %25 = vector.extract_strided_slice %14 {offsets = [0, 0], sizes = [1, 16], strides = [1, 1]} : vector<2x16xf32> to vector<1x16xf32>
    %26 = vector.broadcast %25 : vector<1x16xf32> to vector<8x16xf32>
    %27 = arith.mulf %24, %26 : vector<8x16xf32>
    %28 = arith.mulf %12, %12 : vector<8x16xf32>
    %cst_13 = arith.constant dense<0.000000e+00> : vector<8xf32>
    %29 = vector.multi_reduction <add>, %28, %cst_13 [1] : vector<8x16xf32> to vector<8xf32>
    %30 = vector.shape_cast %29 : vector<8xf32> to vector<8x1xf32>
    %cst_14 = arith.constant 1.600000e+01 : f32
    %31 = vector.broadcast %cst_14 : f32 to vector<8x1xf32>
    %32 = arith.divf %30, %31 : vector<8x1xf32>
    %cst_15 = arith.constant 9.99999997E-7 : f32
    %33 = vector.broadcast %cst_15 : f32 to vector<8x1xf32>
    %34 = arith.addf %32, %33 : vector<8x1xf32>
    %35 = math.rsqrt %34 : vector<8x1xf32>
    %36 = vector.broadcast %35 : vector<8x1xf32> to vector<8x16xf32>
    %37 = arith.mulf %12, %36 : vector<8x16xf32>
    %38 = vector.extract_strided_slice %14 {offsets = [1, 0], sizes = [1, 16], strides = [1, 1]} : vector<2x16xf32> to vector<1x16xf32>
    %39 = vector.broadcast %38 : vector<1x16xf32> to vector<8x16xf32>
    %40 = arith.mulf %37, %39 : vector<8x16xf32>
    %c0_16 = arith.constant 0 : index
    %c0_17 = arith.constant 0 : index
    %41 = vector.load %arg9[%c0_16, %c0_17] : memref<8x8xf32, #tpu.memory_space<vmem>>, vector<8x8xf32>
    %c0_18 = arith.constant 0 : index
    %c0_19 = arith.constant 0 : index
    %42 = vector.load %arg10[%c0_18, %c0_19] : memref<8x8xf32, #tpu.memory_space<vmem>>, vector<8x8xf32>
    %43 = vector.extract_strided_slice %27 {offsets = [0, 0], sizes = [8, 8], strides = [1, 1]} : vector<8x16xf32> to vector<8x8xf32>
    %44 = vector.extract_strided_slice %27 {offsets = [0, 8], sizes = [8, 8], strides = [1, 1]} : vector<8x16xf32> to vector<8x8xf32>
    %45 = vector.extract_strided_slice %40 {offsets = [0, 0], sizes = [8, 8], strides = [1, 1]} : vector<8x16xf32> to vector<8x8xf32>
    %46 = vector.extract_strided_slice %40 {offsets = [0, 8], sizes = [8, 8], strides = [1, 1]} : vector<8x16xf32> to vector<8x8xf32>
    %47 = arith.mulf %43, %41 : vector<8x8xf32>
    %48 = arith.mulf %44, %42 : vector<8x8xf32>
    %49 = arith.subf %47, %48 : vector<8x8xf32>
    %50 = arith.mulf %43, %42 : vector<8x8xf32>
    %51 = arith.mulf %44, %41 : vector<8x8xf32>
    %52 = arith.addf %50, %51 : vector<8x8xf32>
    %53 = tpu.concatenate %49, %52 in 1 : vector<8x8xf32>, vector<8x8xf32> -> vector<8x16xf32>
    %54 = arith.mulf %45, %41 : vector<8x8xf32>
    %55 = arith.mulf %46, %42 : vector<8x8xf32>
    %56 = arith.subf %54, %55 : vector<8x8xf32>
    %57 = arith.mulf %45, %42 : vector<8x8xf32>
    %58 = arith.mulf %46, %41 : vector<8x8xf32>
    %59 = arith.addf %57, %58 : vector<8x8xf32>
    %60 = tpu.concatenate %56, %59 in 1 : vector<8x8xf32>, vector<8x8xf32> -> vector<8x16xf32>
    %61 = vector.shape_cast %53 : vector<8x16xf32> to vector<1x1x8x16xf32>
    %62 = arith.truncf %61 : vector<1x1x8x16xf32> to vector<1x1x8x16xbf16>
    %c0_20 = arith.constant 0 : index
    %c0_21 = arith.constant 0 : index
    %c0_22 = arith.constant 0 : index
    %c0_23 = arith.constant 0 : index
    %63 = vector.load %arg11[%c0_20, %c0_21, %c0_22, %c0_23] : memref<1x1x8x16xbf16, #tpu.memory_space<vmem>>, vector<1x1x8x16xbf16>
    tpu.vector_store %arg11[%c0_20, %c0_21, %c0_22, %c0_23], %62 {strides = array<i32>} : memref<1x1x8x16xbf16, #tpu.memory_space<vmem>>, vector<1x1x8x16xbf16>,
    %64 = vector.shape_cast %60 : vector<8x16xf32> to vector<1x1x8x16xf32>
    %65 = arith.truncf %64 : vector<1x1x8x16xf32> to vector<1x1x8x16xbf16>
    %c0_24 = arith.constant 0 : index
    %c0_25 = arith.constant 0 : index
    %c0_26 = arith.constant 0 : index
    %c0_27 = arith.constant 0 : index
    %66 = vector.load %arg12[%c0_24, %c0_25, %c0_26, %c0_27] : memref<1x1x8x16xbf16, #tpu.memory_space<vmem>>, vector<1x1x8x16xbf16>
    tpu.vector_store %arg12[%c0_24, %c0_25, %c0_26, %c0_27], %65 {strides = array<i32>} : memref<1x1x8x16xbf16, #tpu.memory_space<vmem>>, vector<1x1x8x16xbf16>,
    %67 = vector.shape_cast %13 : vector<8x16xf32> to vector<1x1x8x16xf32>
    %68 = arith.truncf %67 : vector<1x1x8x16xf32> to vector<1x1x8x16xbf16>
    %c0_28 = arith.constant 0 : index
    %c0_29 = arith.constant 0 : index
    %c0_30 = arith.constant 0 : index
    %c0_31 = arith.constant 0 : index
    %69 = vector.load %arg13[%c0_28, %c0_29, %c0_30, %c0_31] : memref<1x1x8x16xbf16, #tpu.memory_space<vmem>>, vector<1x1x8x16xbf16>
    tpu.vector_store %arg13[%c0_28, %c0_29, %c0_30, %c0_31], %68 {strides = array<i32>} : memref<1x1x8x16xbf16, #tpu.memory_space<vmem>>, vector<1x1x8x16xbf16>,
    return
  }
  func.func @transform_0(%arg0: i32, %arg1: i32, %arg2: i32) -> (i32, i32, i32) {
    %c0_i32 = arith.constant 0 : i32
    %c0_i32_0 = arith.constant 0 : i32
    return %arg0, %arg1, %c0_i32 : i32, i32, i32
  }
  func.func @transform_1(%arg0: i32, %arg1: i32, %arg2: i32) -> (i32, i32, i32) {
    %c0_i32 = arith.constant 0 : i32
    %c0_i32_0 = arith.constant 0 : i32
    %c0_i32_1 = arith.constant 0 : i32
    return %arg0, %c0_i32, %c0_i32_0 : i32, i32, i32
  }
  func.func @transform_2(%arg0: i32, %arg1: i32, %arg2: i32) -> (i32, i32, i32) {
    %c0_i32 = arith.constant 0 : i32
    %c0_i32_0 = arith.constant 0 : i32
    %c0_i32_1 = arith.constant 0 : i32
    return %arg0, %c0_i32, %c0_i32_0 : i32, i32, i32
  }
  func.func @transform_3(%arg0: i32, %arg1: i32, %arg2: i32) -> (i32, i32, i32) {
    %c0_i32 = arith.constant 0 : i32
    %c0_i32_0 = arith.constant 0 : i32
    %c0_i32_1 = arith.constant 0 : i32
    return %arg2, %c0_i32, %c0_i32_0 : i32, i32, i32
  }
  func.func @transform_4(%arg0: i32, %arg1: i32, %arg2: i32) -> (i32, i32, i32) {
    %c0_i32 = arith.constant 0 : i32
    %c0_i32_0 = arith.constant 0 : i32
    %c0_i32_1 = arith.constant 0 : i32
    return %arg2, %c0_i32, %c0_i32_0 : i32, i32, i32
  }
  func.func @transform_5(%arg0: i32, %arg1: i32, %arg2: i32) -> (i32, i32) {
    %c0_i32 = arith.constant 0 : i32
    %c0_i32_0 = arith.constant 0 : i32
    %c0_i32_1 = arith.constant 0 : i32
    return %c0_i32, %c0_i32_0 : i32, i32
  }
  func.func @transform_6(%arg0: i32, %arg1: i32, %arg2: i32) -> (i32, i32) {
    %c0_i32 = arith.constant 0 : i32
    %0 = arith.addi %arg1, %c0_i32 : i32
    %c0_i32_0 = arith.constant 0 : i32
    %c0_i32_1 = arith.constant 0 : i32
    return %0, %c0_i32_0 : i32, i32
  }
  func.func @transform_7(%arg0: i32, %arg1: i32, %arg2: i32) -> (i32, i32) {
    %c0_i32 = arith.constant 0 : i32
    %0 = arith.addi %arg1, %c0_i32 : i32
    %c0_i32_0 = arith.constant 0 : i32
    %c0_i32_1 = arith.constant 0 : i32
    return %0, %c0_i32_0 : i32, i32
  }
  func.func @transform_8(%arg0: i32, %arg1: i32, %arg2: i32) -> (i32, i32, i32, i32) {
    %c0_i32 = arith.constant 0 : i32
    %c0_i32_0 = arith.constant 0 : i32
    return %arg0, %arg2, %arg1, %c0_i32 : i32, i32, i32, i32
  }
  func.func @transform_9(%arg0: i32, %arg1: i32, %arg2: i32) -> (i32, i32, i32, i32) {
    %c0_i32 = arith.constant 0 : i32
    %c0_i32_0 = arith.constant 0 : i32
    return %arg0, %arg2, %arg1, %c0_i32 : i32, i32, i32, i32
  }
  func.func @transform_10(%arg0: i32, %arg1: i32, %arg2: i32) -> (i32, i32, i32, i32) {
    %c0_i32 = arith.constant 0 : i32
    %c0_i32_0 = arith.constant 0 : i32
    return %arg0, %arg2, %arg1, %c0_i32 : i32, i32, i32, i32
  }
}

module attributes {stable_mosaic.version = 11 : i64} {
  func.func @_flash_attn_kernel(%arg0: i32, %arg1: i32, %arg2: i32, %arg3: i32, %arg4: memref<1x1x16x16xbf16, #tpu.memory_space<vmem>>, %arg5: memref<1x1x16x16xbf16, #tpu.memory_space<vmem>>, %arg6: memref<1x1x16x16xbf16, #tpu.memory_space<vmem>>, %arg7: memref<1x1x16x16xbf16, #tpu.memory_space<vmem>>, %arg8: memref<16x1xf32, #tpu.memory_space<vmem>>, %arg9: memref<16x1xf32, #tpu.memory_space<vmem>>, %arg10: memref<16x16xf32, #tpu.memory_space<vmem>>) attributes {dimension_semantics = [#tpu.dimension_semantics<parallel>, #tpu.dimension_semantics<parallel>, #tpu.dimension_semantics<parallel>, #tpu.dimension_semantics<arbitrary>], iteration_bounds = array<i64: 2, 2, 1, 1>, scalar_prefetch = 0 : i64, scratch_operands = 3 : i64, tpu.core_type = #tpu.core_type<tc>, window_params = [{transform_indices = @transform_0, window_bounds = array<i64: 1, 1, 16, 16>}, {transform_indices = @transform_1, window_bounds = array<i64: 1, 1, 16, 16>}, {transform_indices = @transform_2, window_bounds = array<i64: 1, 1, 16, 16>}, {transform_indices = @transform_3, window_bounds = array<i64: 1, 1, 16, 16>}]} {
    %c0_i32 = arith.constant 0 : i32
    %0 = arith.cmpi eq, %arg3, %c0_i32 : i32
    %1 = arith.extui %0 : i1 to i32
    %c0_i32_0 = arith.constant 0 : i32
    %2 = arith.cmpi ne, %1, %c0_i32_0 : i32
    scf.if %2 {
      %cst_29 = arith.constant 0xFF800000 : f32
      %36 = vector.broadcast %cst_29 : f32 to vector<16x1xf32>
      %c0_30 = arith.constant 0 : index
      %c0_31 = arith.constant 0 : index
      %37 = vector.load %arg8[%c0_30, %c0_31] : memref<16x1xf32, #tpu.memory_space<vmem>>, vector<16x1xf32>
      tpu.vector_store %arg8[%c0_30, %c0_31], %36 {strides = array<i32>} : memref<16x1xf32, #tpu.memory_space<vmem>>, vector<16x1xf32>,
      %cst_32 = arith.constant 0.000000e+00 : f32
      %38 = vector.broadcast %cst_32 : f32 to vector<16x1xf32>
      %c0_33 = arith.constant 0 : index
      %c0_34 = arith.constant 0 : index
      %39 = vector.load %arg9[%c0_33, %c0_34] : memref<16x1xf32, #tpu.memory_space<vmem>>, vector<16x1xf32>
      tpu.vector_store %arg9[%c0_33, %c0_34], %38 {strides = array<i32>} : memref<16x1xf32, #tpu.memory_space<vmem>>, vector<16x1xf32>,
      %cst_35 = arith.constant 0.000000e+00 : f32
      %40 = vector.broadcast %cst_35 : f32 to vector<16x16xf32>
      %c0_36 = arith.constant 0 : index
      %c0_37 = arith.constant 0 : index
      %41 = vector.load %arg10[%c0_36, %c0_37] : memref<16x16xf32, #tpu.memory_space<vmem>>, vector<16x16xf32>
      tpu.vector_store %arg10[%c0_36, %c0_37], %40 {strides = array<i32>} : memref<16x16xf32, #tpu.memory_space<vmem>>, vector<16x16xf32>,
    } else {
    }
    %c0 = arith.constant 0 : index
    %c0_1 = arith.constant 0 : index
    %c0_2 = arith.constant 0 : index
    %c0_3 = arith.constant 0 : index
    %3 = vector.load %arg4[%c0, %c0_1, %c0_2, %c0_3] : memref<1x1x16x16xbf16, #tpu.memory_space<vmem>>, vector<1x1x16x16xbf16>
    %4 = vector.shape_cast %3 : vector<1x1x16x16xbf16> to vector<16x16xbf16>
    %c0_4 = arith.constant 0 : index
    %c0_5 = arith.constant 0 : index
    %c0_6 = arith.constant 0 : index
    %c0_7 = arith.constant 0 : index
    %5 = vector.load %arg5[%c0_4, %c0_5, %c0_6, %c0_7] : memref<1x1x16x16xbf16, #tpu.memory_space<vmem>>, vector<1x1x16x16xbf16>
    %6 = vector.shape_cast %5 : vector<1x1x16x16xbf16> to vector<16x16xbf16>
    %cst = arith.constant dense<0.000000e+00> : vector<16x16xf32>
    %7 = tpu.matmul %4, %6, %cst {dimension_numbers = #tpu.dot_dimension_numbers<[1], [1], [0], [0], [0, 0, 1, 0], [], []>} : vector<16x16xbf16>, vector<16x16xbf16>, vector<16x16xf32> -> vector<16x16xf32>
    %c0_8 = arith.constant 0 : index
    %c0_9 = arith.constant 0 : index
    %8 = vector.load %arg8[%c0_8, %c0_9] : memref<16x1xf32, #tpu.memory_space<vmem>>, vector<16x1xf32>
    %cst_10 = arith.constant dense<0xFF800000> : vector<16xf32>
    %9 = vector.multi_reduction <maximumf>, %7, %cst_10 [1] : vector<16x16xf32> to vector<16xf32>
    %10 = vector.shape_cast %9 : vector<16xf32> to vector<16x1xf32>
    %11 = arith.maximumf %8, %10 : vector<16x1xf32>
    %12 = arith.subf %8, %11 : vector<16x1xf32>
    %13 = math.exp %12 : vector<16x1xf32>
    %14 = vector.broadcast %11 : vector<16x1xf32> to vector<16x16xf32>
    %15 = arith.subf %7, %14 : vector<16x16xf32>
    %16 = math.exp %15 : vector<16x16xf32>
    %c0_11 = arith.constant 0 : index
    %c0_12 = arith.constant 0 : index
    %17 = vector.load %arg9[%c0_11, %c0_12] : memref<16x1xf32, #tpu.memory_space<vmem>>, vector<16x1xf32>
    %18 = arith.mulf %13, %17 : vector<16x1xf32>
    %cst_13 = arith.constant dense<0.000000e+00> : vector<16xf32>
    %19 = vector.multi_reduction <add>, %16, %cst_13 [1] : vector<16x16xf32> to vector<16xf32>
    %20 = vector.shape_cast %19 : vector<16xf32> to vector<16x1xf32>
    %21 = arith.addf %18, %20 : vector<16x1xf32>
    %c0_14 = arith.constant 0 : index
    %c0_15 = arith.constant 0 : index
    %22 = vector.load %arg9[%c0_14, %c0_15] : memref<16x1xf32, #tpu.memory_space<vmem>>, vector<16x1xf32>
    tpu.vector_store %arg9[%c0_14, %c0_15], %21 {strides = array<i32>} : memref<16x1xf32, #tpu.memory_space<vmem>>, vector<16x1xf32>,
    %c0_16 = arith.constant 0 : index
    %c0_17 = arith.constant 0 : index
    %23 = vector.load %arg10[%c0_16, %c0_17] : memref<16x16xf32, #tpu.memory_space<vmem>>, vector<16x16xf32>
    %24 = vector.broadcast %13 : vector<16x1xf32> to vector<16x16xf32>
    %25 = arith.mulf %24, %23 : vector<16x16xf32>
    %26 = arith.truncf %16 : vector<16x16xf32> to vector<16x16xbf16>
    %c0_18 = arith.constant 0 : index
    %c0_19 = arith.constant 0 : index
    %c0_20 = arith.constant 0 : index
    %c0_21 = arith.constant 0 : index
    %27 = vector.load %arg6[%c0_18, %c0_19, %c0_20, %c0_21] : memref<1x1x16x16xbf16, #tpu.memory_space<vmem>>, vector<1x1x16x16xbf16>
    %28 = vector.shape_cast %27 : vector<1x1x16x16xbf16> to vector<16x16xbf16>
    %cst_22 = arith.constant dense<0.000000e+00> : vector<16x16xf32>
    %29 = tpu.matmul %26, %28, %cst_22 {dimension_numbers = #tpu.dot_dimension_numbers<[1], [0], [0], [1], [0, 0, 1, 1], [], []>} : vector<16x16xbf16>, vector<16x16xbf16>, vector<16x16xf32> -> vector<16x16xf32>
    %30 = arith.addf %25, %29 : vector<16x16xf32>
    %c0_23 = arith.constant 0 : index
    %c0_24 = arith.constant 0 : index
    %31 = vector.load %arg10[%c0_23, %c0_24] : memref<16x16xf32, #tpu.memory_space<vmem>>, vector<16x16xf32>
    tpu.vector_store %arg10[%c0_23, %c0_24], %30 {strides = array<i32>} : memref<16x16xf32, #tpu.memory_space<vmem>>, vector<16x16xf32>,
    %c0_25 = arith.constant 0 : index
    %c0_26 = arith.constant 0 : index
    %32 = vector.load %arg8[%c0_25, %c0_26] : memref<16x1xf32, #tpu.memory_space<vmem>>, vector<16x1xf32>
    tpu.vector_store %arg8[%c0_25, %c0_26], %11 {strides = array<i32>} : memref<16x1xf32, #tpu.memory_space<vmem>>, vector<16x1xf32>,
    %c0_i32_27 = arith.constant 0 : i32
    %33 = arith.cmpi eq, %arg3, %c0_i32_27 : i32
    %34 = arith.extui %33 : i1 to i32
    %c0_i32_28 = arith.constant 0 : i32
    %35 = arith.cmpi ne, %34, %c0_i32_28 : i32
    scf.if %35 {
      %c0_29 = arith.constant 0 : index
      %c0_30 = arith.constant 0 : index
      %36 = vector.load %arg9[%c0_29, %c0_30] : memref<16x1xf32, #tpu.memory_space<vmem>>, vector<16x1xf32>
      %37 = tpu.reciprocal %36 {approx = true} : vector<16x1xf32> -> vector<16x1xf32>
      %c0_31 = arith.constant 0 : index
      %c0_32 = arith.constant 0 : index
      %38 = vector.load %arg10[%c0_31, %c0_32] : memref<16x16xf32, #tpu.memory_space<vmem>>, vector<16x16xf32>
      %39 = vector.broadcast %37 : vector<16x1xf32> to vector<16x16xf32>
      %40 = arith.mulf %38, %39 : vector<16x16xf32>
      %41 = vector.shape_cast %40 : vector<16x16xf32> to vector<1x1x16x16xf32>
      %42 = arith.truncf %41 : vector<1x1x16x16xf32> to vector<1x1x16x16xbf16>
      %c0_33 = arith.constant 0 : index
      %c0_34 = arith.constant 0 : index
      %c0_35 = arith.constant 0 : index
      %c0_36 = arith.constant 0 : index
      %43 = vector.load %arg7[%c0_33, %c0_34, %c0_35, %c0_36] : memref<1x1x16x16xbf16, #tpu.memory_space<vmem>>, vector<1x1x16x16xbf16>
      tpu.vector_store %arg7[%c0_33, %c0_34, %c0_35, %c0_36], %42 {strides = array<i32>} : memref<1x1x16x16xbf16, #tpu.memory_space<vmem>>, vector<1x1x16x16xbf16>,
    } else {
    }
    return
  }
  func.func @transform_0(%arg0: i32, %arg1: i32, %arg2: i32, %arg3: i32) -> (i32, i32, i32, i32) {
    %c0_i32 = arith.constant 0 : i32
    %c0_i32_0 = arith.constant 0 : i32
    return %arg0, %arg1, %arg2, %c0_i32 : i32, i32, i32, i32
  }
  func.func @transform_1(%arg0: i32, %arg1: i32, %arg2: i32, %arg3: i32) -> (i32, i32, i32, i32) {
    %c0_i32 = arith.constant 0 : i32
    %c0_i32_0 = arith.constant 0 : i32
    return %arg0, %arg1, %arg3, %c0_i32 : i32, i32, i32, i32
  }
  func.func @transform_2(%arg0: i32, %arg1: i32, %arg2: i32, %arg3: i32) -> (i32, i32, i32, i32) {
    %c0_i32 = arith.constant 0 : i32
    %c0_i32_0 = arith.constant 0 : i32
    return %arg0, %arg1, %arg3, %c0_i32 : i32, i32, i32, i32
  }
  func.func @transform_3(%arg0: i32, %arg1: i32, %arg2: i32, %arg3: i32) -> (i32, i32, i32, i32) {
    %c0_i32 = arith.constant 0 : i32
    %c0_i32_0 = arith.constant 0 : i32
    return %arg0, %arg1, %arg2, %c0_i32 : i32, i32, i32, i32
  }
}

module attributes {stable_mosaic.version = 11 : i64} {
  func.func @_attn_proj_kernel(%arg0: i32, %arg1: i32, %arg2: i32, %arg3: memref<1x2x8x16xbf16, #tpu.memory_space<vmem>>, %arg4: memref<1x32x32xbf16, #tpu.memory_space<vmem>>, %arg5: memref<1x32xf32, #tpu.memory_space<vmem>>, %arg6: memref<1x1x32xf32, #tpu.memory_space<vmem>>, %arg7: memref<1x8x32xf32, #tpu.memory_space<vmem>>, %arg8: memref<1x8x32xf32, #tpu.memory_space<vmem>>) attributes {dimension_semantics = [#tpu.dimension_semantics<parallel>, #tpu.dimension_semantics<parallel>, #tpu.dimension_semantics<arbitrary>], iteration_bounds = array<i64: 2, 1, 1>, scalar_prefetch = 0 : i64, scratch_operands = 0 : i64, tpu.core_type = #tpu.core_type<tc>, window_params = [{transform_indices = @transform_0, window_bounds = array<i64: 1, 2, 8, 16>}, {transform_indices = @transform_1, window_bounds = array<i64: 1, 32, 32>}, {transform_indices = @transform_2, window_bounds = array<i64: 1, 32>}, {transform_indices = @transform_3, window_bounds = array<i64: 1, 1, 32>}, {transform_indices = @transform_4, window_bounds = array<i64: 1, 8, 32>}, {transform_indices = @transform_5, window_bounds = array<i64: 1, 8, 32>}]} {
    %cst = arith.constant 0.000000e+00 : f32
    %0 = vector.broadcast %cst : f32 to vector<8x32xf32>
    %c0 = arith.constant 0 : index
    %c0_0 = arith.constant 0 : index
    %c0_1 = arith.constant 0 : index
    %c0_2 = arith.constant 0 : index
    %1 = vector.load %arg3[%c0, %c0_0, %c0_1, %c0_2] : memref<1x2x8x16xbf16, #tpu.memory_space<vmem>>, vector<1x1x8x16xbf16>
    %2 = vector.shape_cast %1 : vector<1x1x8x16xbf16> to vector<8x16xbf16>
    %c0_3 = arith.constant 0 : index
    %c1 = arith.constant 1 : index
    %c0_4 = arith.constant 0 : index
    %c0_5 = arith.constant 0 : index
    %3 = vector.load %arg3[%c0_3, %c1, %c0_4, %c0_5] : memref<1x2x8x16xbf16, #tpu.memory_space<vmem>>, vector<1x1x8x16xbf16>
    %4 = vector.shape_cast %3 : vector<1x1x8x16xbf16> to vector<8x16xbf16>
    %5 = tpu.concatenate %2, %4 in 1 : vector<8x16xbf16>, vector<8x16xbf16> -> vector<8x32xbf16>
    %c0_6 = arith.constant 0 : index
    %c0_7 = arith.constant 0 : index
    %c0_8 = arith.constant 0 : index
    %6 = vector.load %arg4[%c0_6, %c0_7, %c0_8] : memref<1x32x32xbf16, #tpu.memory_space<vmem>>, vector<1x32x32xbf16>
    %7 = vector.shape_cast %6 : vector<1x32x32xbf16> to vector<32x32xbf16>
    %cst_9 = arith.constant dense<0.000000e+00> : vector<8x32xf32>
    %8 = tpu.matmul %5, %7, %cst_9 {dimension_numbers = #tpu.dot_dimension_numbers<[1], [0], [0], [1], [0, 0, 1, 1], [], []>} : vector<8x32xbf16>, vector<32x32xbf16>, vector<8x32xf32> -> vector<8x32xf32>
    %9 = arith.addf %0, %8 : vector<8x32xf32>
    %c0_10 = arith.constant 0 : index
    %c0_11 = arith.constant 0 : index
    %10 = vector.load %arg5[%c0_10, %c0_11] : memref<1x32xf32, #tpu.memory_space<vmem>>, vector<1x32xf32>
    %11 = vector.broadcast %10 : vector<1x32xf32> to vector<8x32xf32>
    %12 = arith.addf %9, %11 : vector<8x32xf32>
    %c0_12 = arith.constant 0 : index
    %c0_13 = arith.constant 0 : index
    %c0_14 = arith.constant 0 : index
    %13 = vector.load %arg7[%c0_12, %c0_13, %c0_14] : memref<1x8x32xf32, #tpu.memory_space<vmem>>, vector<1x8x32xf32>
    %14 = vector.shape_cast %13 : vector<1x8x32xf32> to vector<8x32xf32>
    %c0_15 = arith.constant 0 : index
    %c0_16 = arith.constant 0 : index
    %c0_17 = arith.constant 0 : index
    %15 = vector.load %arg6[%c0_15, %c0_16, %c0_17] : memref<1x1x32xf32, #tpu.memory_space<vmem>>, vector<1x1x32xf32>
    %16 = vector.shape_cast %15 : vector<1x1x32xf32> to vector<1x32xf32>
    %17 = vector.broadcast %16 : vector<1x32xf32> to vector<8x32xf32>
    %18 = arith.mulf %17, %12 : vector<8x32xf32>
    %19 = arith.addf %14, %18 : vector<8x32xf32>
    %20 = vector.shape_cast %19 : vector<8x32xf32> to vector<1x8x32xf32>
    %c0_18 = arith.constant 0 : index
    %c0_19 = arith.constant 0 : index
    %c0_20 = arith.constant 0 : index
    %21 = vector.load %arg8[%c0_18, %c0_19, %c0_20] : memref<1x8x32xf32, #tpu.memory_space<vmem>>, vector<1x8x32xf32>
    tpu.vector_store %arg8[%c0_18, %c0_19, %c0_20], %20 {strides = array<i32>} : memref<1x8x32xf32, #tpu.memory_space<vmem>>, vector<1x8x32xf32>,
    return
  }
  func.func @transform_0(%arg0: i32, %arg1: i32, %arg2: i32) -> (i32, i32, i32, i32) {
    %c0_i32 = arith.constant 0 : i32
    %0 = arith.addi %arg2, %c0_i32 : i32
    %c0_i32_0 = arith.constant 0 : i32
    %c0_i32_1 = arith.constant 0 : i32
    %c0_i32_2 = arith.constant 0 : i32
    return %arg0, %c0_i32_0, %0, %c0_i32_1 : i32, i32, i32, i32
  }
  func.func @transform_1(%arg0: i32, %arg1: i32, %arg2: i32) -> (i32, i32, i32) {
    %c0_i32 = arith.constant 0 : i32
    %c0_i32_0 = arith.constant 0 : i32
    %c0_i32_1 = arith.constant 0 : i32
    return %c0_i32, %c0_i32_0, %arg1 : i32, i32, i32
  }
  func.func @transform_2(%arg0: i32, %arg1: i32, %arg2: i32) -> (i32, i32) {
    %c0_i32 = arith.constant 0 : i32
    %c0_i32_0 = arith.constant 0 : i32
    return %c0_i32, %arg1 : i32, i32
  }
  func.func @transform_3(%arg0: i32, %arg1: i32, %arg2: i32) -> (i32, i32, i32) {
    %c0_i32 = arith.constant 0 : i32
    %c0_i32_0 = arith.constant 0 : i32
    return %arg0, %c0_i32, %arg1 : i32, i32, i32
  }
  func.func @transform_4(%arg0: i32, %arg1: i32, %arg2: i32) -> (i32, i32, i32) {
    %c0_i32 = arith.constant 0 : i32
    return %arg0, %arg2, %arg1 : i32, i32, i32
  }
  func.func @transform_5(%arg0: i32, %arg1: i32, %arg2: i32) -> (i32, i32, i32) {
    %c0_i32 = arith.constant 0 : i32
    return %arg0, %arg2, %arg1 : i32, i32, i32
  }
}

module attributes {stable_mosaic.version = 11 : i64} {
  func.func @_attn_proj_kernel(%arg0: i32, %arg1: i32, %arg2: i32, %arg3: memref<1x2x8x16xbf16, #tpu.memory_space<vmem>>, %arg4: memref<1x32x32xbf16, #tpu.memory_space<vmem>>, %arg5: memref<1x32xf32, #tpu.memory_space<vmem>>, %arg6: memref<1x1x32xf32, #tpu.memory_space<vmem>>, %arg7: memref<1x8x32xf32, #tpu.memory_space<vmem>>, %arg8: memref<1x8x32xf32, #tpu.memory_space<vmem>>) attributes {dimension_semantics = [#tpu.dimension_semantics<parallel>, #tpu.dimension_semantics<parallel>, #tpu.dimension_semantics<arbitrary>], iteration_bounds = array<i64: 2, 1, 1>, scalar_prefetch = 0 : i64, scratch_operands = 0 : i64, tpu.core_type = #tpu.core_type<tc>, window_params = [{transform_indices = @transform_0, window_bounds = array<i64: 1, 2, 8, 16>}, {transform_indices = @transform_1, window_bounds = array<i64: 1, 32, 32>}, {transform_indices = @transform_2, window_bounds = array<i64: 1, 32>}, {transform_indices = @transform_3, window_bounds = array<i64: 1, 1, 32>}, {transform_indices = @transform_4, window_bounds = array<i64: 1, 8, 32>}, {transform_indices = @transform_5, window_bounds = array<i64: 1, 8, 32>}]} {
    %cst = arith.constant 0.000000e+00 : f32
    %0 = vector.broadcast %cst : f32 to vector<8x32xf32>
    %c0 = arith.constant 0 : index
    %c0_0 = arith.constant 0 : index
    %c0_1 = arith.constant 0 : index
    %c0_2 = arith.constant 0 : index
    %1 = vector.load %arg3[%c0, %c0_0, %c0_1, %c0_2] : memref<1x2x8x16xbf16, #tpu.memory_space<vmem>>, vector<1x1x8x16xbf16>
    %2 = vector.shape_cast %1 : vector<1x1x8x16xbf16> to vector<8x16xbf16>
    %c0_3 = arith.constant 0 : index
    %c1 = arith.constant 1 : index
    %c0_4 = arith.constant 0 : index
    %c0_5 = arith.constant 0 : index
    %3 = vector.load %arg3[%c0_3, %c1, %c0_4, %c0_5] : memref<1x2x8x16xbf16, #tpu.memory_space<vmem>>, vector<1x1x8x16xbf16>
    %4 = vector.shape_cast %3 : vector<1x1x8x16xbf16> to vector<8x16xbf16>
    %5 = tpu.concatenate %2, %4 in 1 : vector<8x16xbf16>, vector<8x16xbf16> -> vector<8x32xbf16>
    %c0_6 = arith.constant 0 : index
    %c0_7 = arith.constant 0 : index
    %c0_8 = arith.constant 0 : index
    %6 = vector.load %arg4[%c0_6, %c0_7, %c0_8] : memref<1x32x32xbf16, #tpu.memory_space<vmem>>, vector<1x32x32xbf16>
    %7 = vector.shape_cast %6 : vector<1x32x32xbf16> to vector<32x32xbf16>
    %cst_9 = arith.constant dense<0.000000e+00> : vector<8x32xf32>
    %8 = tpu.matmul %5, %7, %cst_9 {dimension_numbers = #tpu.dot_dimension_numbers<[1], [0], [0], [1], [0, 0, 1, 1], [], []>} : vector<8x32xbf16>, vector<32x32xbf16>, vector<8x32xf32> -> vector<8x32xf32>
    %9 = arith.addf %0, %8 : vector<8x32xf32>
    %c0_10 = arith.constant 0 : index
    %c0_11 = arith.constant 0 : index
    %10 = vector.load %arg5[%c0_10, %c0_11] : memref<1x32xf32, #tpu.memory_space<vmem>>, vector<1x32xf32>
    %11 = vector.broadcast %10 : vector<1x32xf32> to vector<8x32xf32>
    %12 = arith.addf %9, %11 : vector<8x32xf32>
    %c0_12 = arith.constant 0 : index
    %c0_13 = arith.constant 0 : index
    %c0_14 = arith.constant 0 : index
    %13 = vector.load %arg7[%c0_12, %c0_13, %c0_14] : memref<1x8x32xf32, #tpu.memory_space<vmem>>, vector<1x8x32xf32>
    %14 = vector.shape_cast %13 : vector<1x8x32xf32> to vector<8x32xf32>
    %c0_15 = arith.constant 0 : index
    %c0_16 = arith.constant 0 : index
    %c0_17 = arith.constant 0 : index
    %15 = vector.load %arg6[%c0_15, %c0_16, %c0_17] : memref<1x1x32xf32, #tpu.memory_space<vmem>>, vector<1x1x32xf32>
    %16 = vector.shape_cast %15 : vector<1x1x32xf32> to vector<1x32xf32>
    %17 = vector.broadcast %16 : vector<1x32xf32> to vector<8x32xf32>
    %18 = arith.mulf %17, %12 : vector<8x32xf32>
    %19 = arith.addf %14, %18 : vector<8x32xf32>
    %20 = vector.shape_cast %19 : vector<8x32xf32> to vector<1x8x32xf32>
    %c0_18 = arith.constant 0 : index
    %c0_19 = arith.constant 0 : index
    %c0_20 = arith.constant 0 : index
    %21 = vector.load %arg8[%c0_18, %c0_19, %c0_20] : memref<1x8x32xf32, #tpu.memory_space<vmem>>, vector<1x8x32xf32>
    tpu.vector_store %arg8[%c0_18, %c0_19, %c0_20], %20 {strides = array<i32>} : memref<1x8x32xf32, #tpu.memory_space<vmem>>, vector<1x8x32xf32>,
    return
  }
  func.func @transform_0(%arg0: i32, %arg1: i32, %arg2: i32) -> (i32, i32, i32, i32) {
    %c1_i32 = arith.constant 1 : i32
    %0 = arith.addi %arg2, %c1_i32 : i32
    %c0_i32 = arith.constant 0 : i32
    %c0_i32_0 = arith.constant 0 : i32
    %c0_i32_1 = arith.constant 0 : i32
    return %arg0, %c0_i32, %0, %c0_i32_0 : i32, i32, i32, i32
  }
  func.func @transform_1(%arg0: i32, %arg1: i32, %arg2: i32) -> (i32, i32, i32) {
    %c0_i32 = arith.constant 0 : i32
    %c0_i32_0 = arith.constant 0 : i32
    %c0_i32_1 = arith.constant 0 : i32
    return %c0_i32, %c0_i32_0, %arg1 : i32, i32, i32
  }
  func.func @transform_2(%arg0: i32, %arg1: i32, %arg2: i32) -> (i32, i32) {
    %c0_i32 = arith.constant 0 : i32
    %c0_i32_0 = arith.constant 0 : i32
    return %c0_i32, %arg1 : i32, i32
  }
  func.func @transform_3(%arg0: i32, %arg1: i32, %arg2: i32) -> (i32, i32, i32) {
    %c0_i32 = arith.constant 0 : i32
    %c0_i32_0 = arith.constant 0 : i32
    return %arg0, %c0_i32, %arg1 : i32, i32, i32
  }
  func.func @transform_4(%arg0: i32, %arg1: i32, %arg2: i32) -> (i32, i32, i32) {
    %c0_i32 = arith.constant 0 : i32
    return %arg0, %arg2, %arg1 : i32, i32, i32
  }
  func.func @transform_5(%arg0: i32, %arg1: i32, %arg2: i32) -> (i32, i32, i32) {
    %c0_i32 = arith.constant 0 : i32
    return %arg0, %arg2, %arg1 : i32, i32, i32
  }
}

module attributes {stable_mosaic.version = 11 : i64} {
  func.func @_ln_mod_mlp1_kernel(%arg0: i32, %arg1: i32, %arg2: i32, %arg3: memref<1x8x32xf32, #tpu.memory_space<vmem>>, %arg4: memref<1x1x32xf32, #tpu.memory_space<vmem>>, %arg5: memref<1x1x32xf32, #tpu.memory_space<vmem>>, %arg6: memref<32x128xbf16, #tpu.memory_space<vmem>>, %arg7: memref<1x128xf32, #tpu.memory_space<vmem>>, %arg8: memref<1x8x128xbf16, #tpu.memory_space<vmem>>, %arg9: memref<8x32xbf16, #tpu.memory_space<vmem>>) attributes {dimension_semantics = [#tpu.dimension_semantics<parallel>, #tpu.dimension_semantics<parallel>, #tpu.dimension_semantics<arbitrary>], iteration_bounds = array<i64: 2, 1, 1>, scalar_prefetch = 0 : i64, scratch_operands = 1 : i64, tpu.core_type = #tpu.core_type<tc>, window_params = [{transform_indices = @transform_0, window_bounds = array<i64: 1, 8, 32>}, {transform_indices = @transform_1, window_bounds = array<i64: 1, 1, 32>}, {transform_indices = @transform_2, window_bounds = array<i64: 1, 1, 32>}, {transform_indices = @transform_3, window_bounds = array<i64: 32, 128>}, {transform_indices = @transform_4, window_bounds = array<i64: 1, 128>}, {transform_indices = @transform_5, window_bounds = array<i64: 1, 8, 128>}]} {
    %c0_i32 = arith.constant 0 : i32
    %0 = arith.cmpi eq, %arg2, %c0_i32 : i32
    %1 = arith.extui %0 : i1 to i32
    %c0_i32_0 = arith.constant 0 : i32
    %2 = arith.cmpi ne, %1, %c0_i32_0 : i32
    scf.if %2 {
      %c0_13 = arith.constant 0 : index
      %c0_14 = arith.constant 0 : index
      %c0_15 = arith.constant 0 : index
      %25 = vector.load %arg3[%c0_13, %c0_14, %c0_15] : memref<1x8x32xf32, #tpu.memory_space<vmem>>, vector<1x8x32xf32>
      %26 = vector.shape_cast %25 : vector<1x8x32xf32> to vector<8x32xf32>
      %c0_16 = arith.constant 0 : index
      %c0_17 = arith.constant 0 : index
      %c0_18 = arith.constant 0 : index
      %27 = vector.load %arg4[%c0_16, %c0_17, %c0_18] : memref<1x1x32xf32, #tpu.memory_space<vmem>>, vector<1x1x32xf32>
      %28 = vector.shape_cast %27 : vector<1x1x32xf32> to vector<1x32xf32>
      %c0_19 = arith.constant 0 : index
      %c0_20 = arith.constant 0 : index
      %c0_21 = arith.constant 0 : index
      %29 = vector.load %arg5[%c0_19, %c0_20, %c0_21] : memref<1x1x32xf32, #tpu.memory_space<vmem>>, vector<1x1x32xf32>
      %30 = vector.shape_cast %29 : vector<1x1x32xf32> to vector<1x32xf32>
      %cst_22 = arith.constant dense<0.000000e+00> : vector<8xf32>
      %31 = vector.multi_reduction <add>, %26, %cst_22 [1] : vector<8x32xf32> to vector<8xf32>
      %32 = vector.shape_cast %31 : vector<8xf32> to vector<8x1xf32>
      %cst_23 = arith.constant 3.200000e+01 : f32
      %33 = vector.broadcast %cst_23 : f32 to vector<8x1xf32>
      %34 = arith.divf %32, %33 : vector<8x1xf32>
      %35 = vector.broadcast %34 : vector<8x1xf32> to vector<8x32xf32>
      %36 = arith.subf %26, %35 : vector<8x32xf32>
      %37 = arith.mulf %36, %36 : vector<8x32xf32>
      %cst_24 = arith.constant dense<0.000000e+00> : vector<8xf32>
      %38 = vector.multi_reduction <add>, %37, %cst_24 [1] : vector<8x32xf32> to vector<8xf32>
      %39 = vector.shape_cast %38 : vector<8xf32> to vector<8x1xf32>
      %cst_25 = arith.constant 3.200000e+01 : f32
      %40 = vector.broadcast %cst_25 : f32 to vector<8x1xf32>
      %41 = arith.divf %39, %40 : vector<8x1xf32>
      %42 = vector.broadcast %34 : vector<8x1xf32> to vector<8x32xf32>
      %43 = arith.subf %26, %42 : vector<8x32xf32>
      %cst_26 = arith.constant 9.99999997E-7 : f32
      %44 = vector.broadcast %cst_26 : f32 to vector<8x1xf32>
      %45 = arith.addf %41, %44 : vector<8x1xf32>
      %46 = math.rsqrt %45 : vector<8x1xf32>
      %47 = vector.broadcast %46 : vector<8x1xf32> to vector<8x32xf32>
      %48 = arith.mulf %43, %47 : vector<8x32xf32>
      %cst_27 = arith.constant 1.000000e+00 : f32
      %49 = vector.broadcast %cst_27 : f32 to vector<1x32xf32>
      %50 = arith.addf %49, %28 : vector<1x32xf32>
      %51 = vector.broadcast %50 : vector<1x32xf32> to vector<8x32xf32>
      %52 = arith.mulf %51, %48 : vector<8x32xf32>
      %53 = vector.broadcast %30 : vector<1x32xf32> to vector<8x32xf32>
      %54 = arith.addf %52, %53 : vector<8x32xf32>
      %55 = arith.truncf %54 : vector<8x32xf32> to vector<8x32xbf16>
      %c0_28 = arith.constant 0 : index
      %c0_29 = arith.constant 0 : index
      %56 = vector.load %arg9[%c0_28, %c0_29] : memref<8x32xbf16, #tpu.memory_space<vmem>>, vector<8x32xbf16>
      tpu.vector_store %arg9[%c0_28, %c0_29], %55 {strides = array<i32>} : memref<8x32xbf16, #tpu.memory_space<vmem>>, vector<8x32xbf16>,
    } else {
    }
    %c0 = arith.constant 0 : index
    %c0_1 = arith.constant 0 : index
    %3 = vector.load %arg9[%c0, %c0_1] : memref<8x32xbf16, #tpu.memory_space<vmem>>, vector<8x32xbf16>
    %c0_2 = arith.constant 0 : index
    %c0_3 = arith.constant 0 : index
    %4 = vector.load %arg6[%c0_2, %c0_3] : memref<32x128xbf16, #tpu.memory_space<vmem>>, vector<32x128xbf16>
    %cst = arith.constant dense<0.000000e+00> : vector<8x128xf32>
    %5 = tpu.matmul %3, %4, %cst {dimension_numbers = #tpu.dot_dimension_numbers<[1], [0], [0], [1], [0, 0, 1, 1], [], []>} : vector<8x32xbf16>, vector<32x128xbf16>, vector<8x128xf32> -> vector<8x128xf32>
    %c0_4 = arith.constant 0 : index
    %c0_5 = arith.constant 0 : index
    %6 = vector.load %arg7[%c0_4, %c0_5] : memref<1x128xf32, #tpu.memory_space<vmem>>, vector<1x128xf32>
    %7 = vector.broadcast %6 : vector<1x128xf32> to vector<8x128xf32>
    %8 = arith.addf %5, %7 : vector<8x128xf32>
    %cst_6 = arith.constant 5.000000e-01 : f32
    %9 = vector.broadcast %cst_6 : f32 to vector<8x128xf32>
    %10 = arith.mulf %9, %8 : vector<8x128xf32>
    %cst_7 = arith.constant 4.471500e-02 : f32
    %11 = vector.broadcast %cst_7 : f32 to vector<8x128xf32>
    %12 = arith.mulf %11, %8 : vector<8x128xf32>
    %13 = arith.mulf %12, %8 : vector<8x128xf32>
    %14 = arith.mulf %13, %8 : vector<8x128xf32>
    %15 = arith.addf %8, %14 : vector<8x128xf32>
    %cst_8 = arith.constant 0.797884583 : f32
    %16 = vector.broadcast %cst_8 : f32 to vector<8x128xf32>
    %17 = arith.mulf %16, %15 : vector<8x128xf32>
    %18 = math.tanh %17 : vector<8x128xf32>
    %cst_9 = arith.constant 1.000000e+00 : f32
    %19 = vector.broadcast %cst_9 : f32 to vector<8x128xf32>
    %20 = arith.addf %19, %18 : vector<8x128xf32>
    %21 = arith.mulf %10, %20 : vector<8x128xf32>
    %22 = vector.shape_cast %21 : vector<8x128xf32> to vector<1x8x128xf32>
    %23 = arith.truncf %22 : vector<1x8x128xf32> to vector<1x8x128xbf16>
    %c0_10 = arith.constant 0 : index
    %c0_11 = arith.constant 0 : index
    %c0_12 = arith.constant 0 : index
    %24 = vector.load %arg8[%c0_10, %c0_11, %c0_12] : memref<1x8x128xbf16, #tpu.memory_space<vmem>>, vector<1x8x128xbf16>
    tpu.vector_store %arg8[%c0_10, %c0_11, %c0_12], %23 {strides = array<i32>} : memref<1x8x128xbf16, #tpu.memory_space<vmem>>, vector<1x8x128xbf16>,
    return
  }
  func.func @transform_0(%arg0: i32, %arg1: i32, %arg2: i32) -> (i32, i32, i32) {
    %c0_i32 = arith.constant 0 : i32
    %c0_i32_0 = arith.constant 0 : i32
    return %arg0, %arg1, %c0_i32 : i32, i32, i32
  }
  func.func @transform_1(%arg0: i32, %arg1: i32, %arg2: i32) -> (i32, i32, i32) {
    %c0_i32 = arith.constant 0 : i32
    %c0_i32_0 = arith.constant 0 : i32
    %c0_i32_1 = arith.constant 0 : i32
    return %arg0, %c0_i32, %c0_i32_0 : i32, i32, i32
  }
  func.func @transform_2(%arg0: i32, %arg1: i32, %arg2: i32) -> (i32, i32, i32) {
    %c0_i32 = arith.constant 0 : i32
    %c0_i32_0 = arith.constant 0 : i32
    %c0_i32_1 = arith.constant 0 : i32
    return %arg0, %c0_i32, %c0_i32_0 : i32, i32, i32
  }
  func.func @transform_3(%arg0: i32, %arg1: i32, %arg2: i32) -> (i32, i32) {
    %c0_i32 = arith.constant 0 : i32
    %c0_i32_0 = arith.constant 0 : i32
    return %c0_i32, %arg2 : i32, i32
  }
  func.func @transform_4(%arg0: i32, %arg1: i32, %arg2: i32) -> (i32, i32) {
    %c0_i32 = arith.constant 0 : i32
    %c0_i32_0 = arith.constant 0 : i32
    return %c0_i32, %arg2 : i32, i32
  }
  func.func @transform_5(%arg0: i32, %arg1: i32, %arg2: i32) -> (i32, i32, i32) {
    %c0_i32 = arith.constant 0 : i32
    return %arg0, %arg1, %arg2 : i32, i32, i32
  }
}

module attributes {stable_mosaic.version = 11 : i64} {
  func.func @_matmul_gated_res_kernel(%arg0: i32, %arg1: i32, %arg2: i32, %arg3: i32, %arg4: memref<1x8x128xbf16, #tpu.memory_space<vmem>>, %arg5: memref<128x32xbf16, #tpu.memory_space<vmem>>, %arg6: memref<1x32xf32, #tpu.memory_space<vmem>>, %arg7: memref<1x1x32xf32, #tpu.memory_space<vmem>>, %arg8: memref<1x8x32xf32, #tpu.memory_space<vmem>>, %arg9: memref<1x8x32xf32, #tpu.memory_space<vmem>>, %arg10: memref<8x32xf32, #tpu.memory_space<vmem>>) attributes {dimension_semantics = [#tpu.dimension_semantics<parallel>, #tpu.dimension_semantics<parallel>, #tpu.dimension_semantics<parallel>, #tpu.dimension_semantics<arbitrary>], iteration_bounds = array<i64: 2, 1, 1, 1>, scalar_prefetch = 0 : i64, scratch_operands = 1 : i64, tpu.core_type = #tpu.core_type<tc>, window_params = [{transform_indices = @transform_0, window_bounds = array<i64: 1, 8, 128>}, {transform_indices = @transform_1, window_bounds = array<i64: 128, 32>}, {transform_indices = @transform_2, window_bounds = array<i64: 1, 32>}, {transform_indices = @transform_3, window_bounds = array<i64: 1, 1, 32>}, {transform_indices = @transform_4, window_bounds = array<i64: 1, 8, 32>}, {transform_indices = @transform_5, window_bounds = array<i64: 1, 8, 32>}]} {
    %c0_i32 = arith.constant 0 : i32
    %0 = arith.cmpi eq, %arg3, %c0_i32 : i32
    %1 = arith.extui %0 : i1 to i32
    %c0_i32_0 = arith.constant 0 : i32
    %2 = arith.cmpi ne, %1, %c0_i32_0 : i32
    scf.if %2 {
      %cst_11 = arith.constant 0.000000e+00 : f32
      %13 = vector.broadcast %cst_11 : f32 to vector<8x32xf32>
      %c0_12 = arith.constant 0 : index
      %c0_13 = arith.constant 0 : index
      %14 = vector.load %arg10[%c0_12, %c0_13] : memref<8x32xf32, #tpu.memory_space<vmem>>, vector<8x32xf32>
      tpu.vector_store %arg10[%c0_12, %c0_13], %13 {strides = array<i32>} : memref<8x32xf32, #tpu.memory_space<vmem>>, vector<8x32xf32>,
    } else {
    }
    %c0 = arith.constant 0 : index
    %c0_1 = arith.constant 0 : index
    %3 = vector.load %arg10[%c0, %c0_1] : memref<8x32xf32, #tpu.memory_space<vmem>>, vector<8x32xf32>
    %c0_2 = arith.constant 0 : index
    %c0_3 = arith.constant 0 : index
    %c0_4 = arith.constant 0 : index
    %4 = vector.load %arg4[%c0_2, %c0_3, %c0_4] : memref<1x8x128xbf16, #tpu.memory_space<vmem>>, vector<1x8x128xbf16>
    %5 = vector.shape_cast %4 : vector<1x8x128xbf16> to vector<8x128xbf16>
    %c0_5 = arith.constant 0 : index
    %c0_6 = arith.constant 0 : index
    %6 = vector.load %arg5[%c0_5, %c0_6] : memref<128x32xbf16, #tpu.memory_space<vmem>>, vector<128x32xbf16>
    %cst = arith.constant dense<0.000000e+00> : vector<8x32xf32>
    %7 = tpu.matmul %5, %6, %cst {dimension_numbers = #tpu.dot_dimension_numbers<[1], [0], [0], [1], [0, 0, 1, 1], [], []>} : vector<8x128xbf16>, vector<128x32xbf16>, vector<8x32xf32> -> vector<8x32xf32>
    %8 = arith.addf %3, %7 : vector<8x32xf32>
    %c0_7 = arith.constant 0 : index
    %c0_8 = arith.constant 0 : index
    %9 = vector.load %arg10[%c0_7, %c0_8] : memref<8x32xf32, #tpu.memory_space<vmem>>, vector<8x32xf32>
    tpu.vector_store %arg10[%c0_7, %c0_8], %8 {strides = array<i32>} : memref<8x32xf32, #tpu.memory_space<vmem>>, vector<8x32xf32>,
    %c0_i32_9 = arith.constant 0 : i32
    %10 = arith.cmpi eq, %arg3, %c0_i32_9 : i32
    %11 = arith.extui %10 : i1 to i32
    %c0_i32_10 = arith.constant 0 : i32
    %12 = arith.cmpi ne, %11, %c0_i32_10 : i32
    scf.if %12 {
      %c0_11 = arith.constant 0 : index
      %c0_12 = arith.constant 0 : index
      %13 = vector.load %arg10[%c0_11, %c0_12] : memref<8x32xf32, #tpu.memory_space<vmem>>, vector<8x32xf32>
      %c0_13 = arith.constant 0 : index
      %c0_14 = arith.constant 0 : index
      %14 = vector.load %arg6[%c0_13, %c0_14] : memref<1x32xf32, #tpu.memory_space<vmem>>, vector<1x32xf32>
      %15 = vector.broadcast %14 : vector<1x32xf32> to vector<8x32xf32>
      %16 = arith.addf %13, %15 : vector<8x32xf32>
      %c0_15 = arith.constant 0 : index
      %c0_16 = arith.constant 0 : index
      %c0_17 = arith.constant 0 : index
      %17 = vector.load %arg8[%c0_15, %c0_16, %c0_17] : memref<1x8x32xf32, #tpu.memory_space<vmem>>, vector<1x8x32xf32>
      %18 = vector.shape_cast %17 : vector<1x8x32xf32> to vector<8x32xf32>
      %c0_18 = arith.constant 0 : index
      %c0_19 = arith.constant 0 : index
      %c0_20 = arith.constant 0 : index
      %19 = vector.load %arg7[%c0_18, %c0_19, %c0_20] : memref<1x1x32xf32, #tpu.memory_space<vmem>>, vector<1x1x32xf32>
      %20 = vector.shape_cast %19 : vector<1x1x32xf32> to vector<1x32xf32>
      %21 = vector.broadcast %20 : vector<1x32xf32> to vector<8x32xf32>
      %22 = arith.mulf %21, %16 : vector<8x32xf32>
      %23 = arith.addf %18, %22 : vector<8x32xf32>
      %24 = vector.shape_cast %23 : vector<8x32xf32> to vector<1x8x32xf32>
      %c0_21 = arith.constant 0 : index
      %c0_22 = arith.constant 0 : index
      %c0_23 = arith.constant 0 : index
      %25 = vector.load %arg9[%c0_21, %c0_22, %c0_23] : memref<1x8x32xf32, #tpu.memory_space<vmem>>, vector<1x8x32xf32>
      tpu.vector_store %arg9[%c0_21, %c0_22, %c0_23], %24 {strides = array<i32>} : memref<1x8x32xf32, #tpu.memory_space<vmem>>, vector<1x8x32xf32>,
    } else {
    }
    return
  }
  func.func @transform_0(%arg0: i32, %arg1: i32, %arg2: i32, %arg3: i32) -> (i32, i32, i32) {
    %c0_i32 = arith.constant 0 : i32
    return %arg0, %arg1, %arg3 : i32, i32, i32
  }
  func.func @transform_1(%arg0: i32, %arg1: i32, %arg2: i32, %arg3: i32) -> (i32, i32) {
    %c0_i32 = arith.constant 0 : i32
    return %arg3, %arg2 : i32, i32
  }
  func.func @transform_2(%arg0: i32, %arg1: i32, %arg2: i32, %arg3: i32) -> (i32, i32) {
    %c0_i32 = arith.constant 0 : i32
    %c0_i32_0 = arith.constant 0 : i32
    return %c0_i32, %arg2 : i32, i32
  }
  func.func @transform_3(%arg0: i32, %arg1: i32, %arg2: i32, %arg3: i32) -> (i32, i32, i32) {
    %c0_i32 = arith.constant 0 : i32
    %c0_i32_0 = arith.constant 0 : i32
    return %arg0, %c0_i32, %arg2 : i32, i32, i32
  }
  func.func @transform_4(%arg0: i32, %arg1: i32, %arg2: i32, %arg3: i32) -> (i32, i32, i32) {
    %c0_i32 = arith.constant 0 : i32
    return %arg0, %arg1, %arg2 : i32, i32, i32
  }
  func.func @transform_5(%arg0: i32, %arg1: i32, %arg2: i32, %arg3: i32) -> (i32, i32, i32) {
    %c0_i32 = arith.constant 0 : i32
    return %arg0, %arg1, %arg2 : i32, i32, i32
  }
}

</mosaic_0001>

<bundles_post_ra>
// kernel: double_stream_lora_forward.10
= control target key start
LH: loop header
LB: loop body
LE: loop exit
PB: predicated region body
PF: predicated region fallthrough
CT: control target
= control target key end

     0   :  { %8 = vsyncpa [#allocation3], 0  ;;  %s254_s12 = smov [#allocation2]   ;;  %s293_s0 = inlined_call_operand.vmem [shape: bf16[2,32], index: 0, kind: input, shape index: {}]   ;;  %s294_s1 = inlined_call_operand.hbm [shape: bf16[32,384], index: 1, kind: input, shape index: {}]   ;;  %s295_s2 = inlined_call_operand.vmem [shape: f32[1,384], index: 2, kind: input, shape index: {}]   ;;  %s296_s3 = inlined_call_operand.vmem [shape: f32[2,384], index: 3, kind: output, shape index: {}]  }
   0x1   :  { %s16_s13 = sshll.u32 %s254_s12, 4  ;;  %s17_s13 = int_to_ptr.vmem [resolvable:$true] %s16_s13 }
   0x2   :  { %s240_s14 = scalar_lea.vmem %s17_s13, 768  ;;  %p245_p1 = scmp.lt.s32.totalorder %s17_s13, %s17_s13 }
   0x3   :  { %p241_p0 = scmp.ne.s32.totalorder %s17_s13, %s240_s14  ;;  %p246_p2 = scmp.lt.s32.totalorder %s240_s14, %s240_s14 }
   0x5   :  { %p247_p3 = por %p246_p2, %p245_p1 }
   0x7   :  { %p248_p4 = pnand %p247_p3, %p241_p0 }
   0x9   :  { %251 = shalt.err (!%p248_p4)
}
   0xa   :  { %s255_s15 = smov 192   ;;  %s256_s16 = smov 12  }
   0xb   :  { %22 = dma.hbm_to_vmem [thread:$0]  %s294_s1, 768, %s17_s13, [#allocation3], %s255_s15, %s255_s15, %s256_s16  }
   0xc   :  { %252 = dma.done.wait [#allocation3], 768  }
   0xd   :  { %253 = vsyncadd [#allocation3], 4294966528  ;;  %v257_v0 = vmov 0.0   ;;  %vm258_vm0 = vmmov 0   ;;  %v259_v1 = vmov 0   ;;  %vm87_vm1 = vcmask 261120  }
   0xe   :  { %209 = vmatprep.subr.bf16.mxu1 %v257_v0  ;;  %213 = vmatprep.mubr.msk.bf16.mxu1 %vm258_vm0, %v257_v0  ;;  %v224_v2 = vld [vmem:[#allocation2 + $0x1c] ss:$12 sps:$4 sm:$0xff]   ;;  %v226_v3 = vld [vmem:[#allocation2 + $0x20] ss:$12 sps:$4 sm:$0xff]   ;;  %v227_v4 = vld [vmem:[#allocation2 + $0x18] ss:$12 sps:$4 sm:$0xff]   ;;  %v40_v9 = vlaneseq }
   0xf   :  { %123 = vmatprep.mubr.bf16.mxu0 %v259_v1  ;;  %103 = vmatprep.subr.bf16.mxu0 %v224_v2  ;;  %v228_v5 = vld [vmem:[#allocation2 + $0x4] ss:$12 sps:$4 sm:$0xff]   ;;  %v230_v6 = vld [vmem:[#allocation2 + $0x8] ss:$12 sps:$4 sm:$0xff]   ;;  %v231_v7 = vld [vmem:[#allocation2] ss:$12 sps:$4 sm:$0xff]  }
  0x10   :  { %210 = vmatpush3.bf16.msra.mxu1 %v226_v3  ;;  %104 = vmatpush1.bf16.msra.mxu0 %v227_v4  ;;  %v29_v8 = vld [vmem:[%s293_s0] sm:$0x1]  ;;  %v41_v10 = vshrl.u32 %v40_v9, 7  ;;  %v260_v12 = vmov 1983009808  }
  0x11   :  { %211 = vmatprep.subr.bf16.mxu1 %v257_v0  ;;  %105 = vmatprep.subr.bf16.mxu0 %v228_v5  ;;  %v177_v13 = vunpack.c.l.s4 %v260_v12  ;;  %v38_v16 = vld [vmem:[%s295_s2] sm:$0x7] }
  0x12   :  { %v50_v11 = vsub.s32 2, %v41_v10  ;;  %v42_v14 = vsub.s32 0, %v41_v10  ;;  %v46_v15 = vsub.s32 1, %v41_v10 }
  0x13   :  { %v178_v18 = vunpack.c.0.s8 %v177_v13 }
  0x14   :  { %212 = vmatpush3.bf16.msra.mxu1 %v230_v6  ;;  %106 = vmatpush1.bf16.msra.mxu0 %v231_v7  ;;  %v51_v17 = vrot.slane %v38_v16, %v50_v11  ;;  %v43_v20 = vrot.slane %v38_v16, %v42_v14  ;;  %v47_v21 = vrot.slane %v38_v16, %v46_v15 }
  0x15   :  { %v181_v24 = vsub.s32 %v178_v18, %v41_v10 }
  0x17   :  { %214 = vmatmul.mubr.msk.bf16.vlgmr.msra.gmra.mxu1 %vm87_vm1, %v29_v8  ;;  %204 = vmatmul.mubr.msk.bf16.vlgmr.msra.gmra.mxu0 %vm87_vm1, %v29_v8 }
  0xd7   :  { %v166_v19 = vpop.f32.mrf.mxu1  ;;  %v125_v22 = vpop.f32.mrf.mxu0 }
  0xd8   :  { %v167_v23 = vadd.f32 %v166_v19, %v51_v17  ;;  %v126_v27 = vadd.f32 %v125_v22, %v43_v20 }
  0xd9   :  { %v215_v25 = vpop.f32.mrf.mxu1  ;;  %v127_v26 = vpop.f32.mrf.mxu0 }
  0xda   :  { %v128_v28 = vadd.f32 %v127_v26, %v47_v21  ;;  %v189_v31 = vrot.slane %v167_v23, %v181_v24 }
  0xdb   :  { %v169_v29 = vpop.f32.mrf.mxu1  ;;  %v129_v30 = vpop.f32.mrf.mxu0 }
  0xdc   :  { %v175_v32 = vcombine.low %v126_v27, %v128_v28 }
  0xdd   :  { %v216_v33 = vpop.f32.mrf.mxu1  ;;  %v130_v34 = vpop.f32.mrf.mxu0 }
  0xde   :  { %v182_v35 = vrot.slane %v175_v32, %v181_v24 }
  0xe0   :  { %v190_v36 = vcombine.low %v182_v35, %v189_v31 }
  0xe2   :  { %192 = vst [vmem:[%s296_s3] sm:$0x3f] %v190_v36 }
  0xe3   :  { %197 = vsyncpa [#allocation3], 1 }

// kernel: double_stream_lora_forward.12
= control target key start
LH: loop header
LB: loop body
LE: loop exit
PB: predicated region body
PF: predicated region fallthrough
CT: control target
= control target key end

     0   :  { %s1272_s13 = smov 0   ;;  %s1274_s14 = smov 0   ;;  %s1416_s0 = inlined_call_operand.vmem [shape: f32[2,8,32], index: 0, kind: input, shape index: {}]   ;;  %s1417_s1 = inlined_call_operand.vmem [shape: f32[2,1,32], index: 1, kind: input, shape index: {}]   ;;  %s1418_s2 = inlined_call_operand.vmem [shape: f32[2,1,32], index: 2, kind: input, shape index: {}]   ;;  %s1419_s3 = inlined_call_operand.vmem [shape: bf16[2,32,48], index: 3, kind: input, shape index: {}]   ;;  %s1420_s4 = inlined_call_operand.vmem [shape: f32[2,1,48], index: 4, kind: input, shape index: {}]   ;;  %s1421_s5 = inlined_call_operand.vmem [shape: f32[2,16], index: 5, kind: input, shape index: {}]   ;;  %s1422_s6 = inlined_call_operand.vmem [shape: f32[16,8], index: 6, kind: input, shape index: {}]   ;;  %s1423_s7 = inlined_call_operand.vmem [shape: f32[16,8], index: 7, kind: input, shape index: {}]   ;;  %s1424_s8 = inlined_call_operand.vmem [shape: bf16[2,2,8,16], index: 8, kind: output, shape index: {0}]   ;;  %s1425_s9 = inlined_call_operand.vmem [shape: bf16[2,2,8,16], index: 9, kind: output, shape index: {1}]   ;;  %s1426_s10 = inlined_call_operand.vmem [shape: bf16[2,2,8,16], index: 10, kind: output, shape index: {2}]  }
   0x1   :  { %1430 = sst [smem:[#allocation8_spill]] %s1417_s1  ;;  %s1276_s15 = smov 0  }
   0x2   :  { %s1278_s16 = smov 0   ;;  %s1280_s17 = smov 0  }
   0x3 LB: > { %1431 = sst [smem:[#allocation3_spill]] %s1199_s15  ;;  %s33_s18 = sadd.s32 1, %s1199_s15  ;;  %s1207_s17 = sphi %s1280_s17, %s21_s17   ;;  %s1203_s16 = sphi %s1278_s16, %s1442_s16   ;;  %s1199_s15 = sphi %s1276_s15, %s1441_s15   ;;  %s1195_s14 = sphi %s1274_s14, %s1440_s14   ;;  %s1191_s13 = sphi %s1272_s13, %s1439_s13  }
   0x4   : > { %1432 = sst [smem:[#allocation4_spill]] %s1203_s16  ;;  %s40_s19 = sadd.s32 1, %s1203_s16 }
   0x5   : > { %1433 = sst [smem:[#allocation5_spill]] %s1207_s17  ;;  %p34_p0 = scmp.ge.s32.totalorder %s33_s18, 2 }
   0x6   : > { %p1079_p1 = scmp.ge.s32.totalorder %s1207_s17, 1  ;;  %p412_p2 = scmp.lt.s32.totalorder %s1207_s17, 5 }
   0x7   : > { %s1444_s18 = smov (%p34_p0, %s33_s18), 0  ;;  %s1446_s19 = smov (!%p34_p0, %s40_s19), %s1203_s16 }
   0x8   : > { %1434 = sst [smem:[#allocation6_spill]] %s1444_s18  ;;  %p413_p3 = pnand %p1079_p1, %p412_p2 }
   0x9   : > { %p42_p4 = scmp.ge.s32.totalorder %s1446_s19, 2  ;;  %p504_p5 = scmp.lt.s32.totalorder (!%p413_p3), %s1195_s14, 1 }
   0xa   : > { %416 = sbr.rel (%p413_p3) target bundleno = 1062 (0x426), region = 52  ;;  %p517_p6 = scmp.lt.s32.totalorder (!%p413_p3), %s1191_s13, 1 }
   0xb   : > { %s1448_s19 = smov (%p42_p4, %s1446_s19), 0  ;;  %s1436_s1 = sld [smem:[#allocation8_spill]] (!%p413_p3) }
   0xc   : > { %1435 = sst [smem:[#allocation7_spill]] %s1448_s19  ;;  %p1089_p7 = scmp.ne.s32.totalorder (!%p413_p3), %s1191_s13, 0 }
   0xf   : > { %s1450_s14 = smov (!%p504_p5, %s1195_s14), 1 }
  0x10   : > { %s1308_s20 = scalar_select %p517_p6, %s1191_s13, 1 }
  0x11   : > { %s1080_s21 = sshll.u32 %s1450_s14, 3  ;;  %s513_s24 = scalar_lea.vmem %s1436_s1, %s1450_s14 }
  0x12   : > { %s510_s27 = scalar_lea.vmem %s1416_s0, %s1080_s21  ;;  %s516_s30 = scalar_lea.vmem %s1418_s2, %s1450_s14 }
  0x13   : > { %s1100_s11 = sshll.u32 %s1308_s20, 4  ;;  %s1083_s22 = sshll.u32 %s1450_s14, 1 }
  0x14   : > { %s1330_s17 = scalar_lea.vmem %s1419_s3, %s1100_s11  ;;  %s545_s23 = sadd.s32 %s1083_s22, %s1308_s20 }
  0x15   : > { %s1334_s1 = sshll.u32 %s545_s23, 2  ;;  %574 = sbr.rel (%p1089_p7) target bundleno = 338 (0x152), region = 56 }
  0x16   : > { %s547_s26 = scalar_lea.vmem %s1424_s8, %s1334_s1  ;;  %s558_s19 = scalar_lea.vmem %s1425_s9, %s1334_s1 }
  0x17   : > { %s569_s15 = scalar_lea.vmem %s1426_s10, %s1334_s1 }
  0x1a   : > { %v575_v0 = vld [vmem:[%s510_s27] sm:$0xff]  ;;  %vm578_vm0 = vcmask 261120   ;;  %v595_v10 = vlaneseq  ;;  %vm609_vm1 = vcmask 257024  }
  0x1b   : > { %v579_v1 = vsel %vm578_vm0, %v575_v0, 0.0  ;;  %v576_v12 = vld [vmem:[%s513_s24] sm:$0x1] }
  0x1c   : > { %580 = vadd.xlane.f32.xlu0 %v579_v1  ;;  %v596_v11 = vshrl.u32 %v595_v10, 7  ;;  %v593_v13 = vadd.f32 1.0, %v576_v12  ;;  %v1090_v18 = vld [vmem:[%s516_s30] ss:$0 sm:$0xff] }
  0x1e   : > { %v597_v14 = vsub.s32 0, %v596_v11 }
  0x20   : > { %v598_v15 = vrot.slane %v593_v13, %v597_v14 }
  0xa5   : > { %v581_v2 = vpop.xlane.xlu0 %580 }
  0xa6   : > { %v583_v3 = vmul.f32 0.03125, %v581_v2 }
  0xa8   : > { %v584_v4 = vsub.f32 %v575_v0, %v583_v3 }
  0xaa   : > { %v585_v5 = vmul.f32 %v584_v4, %v584_v4 }
  0xac   : > { %v586_v6 = vsel %vm578_vm0, %v585_v5, 0.0 }
  0xad   : > { %587 = vadd.xlane.f32.xlu0 %v586_v6 }
 0x136   : > { %v588_v7 = vpop.xlane.xlu0 %587 }
 0x137   : > { %v589_v8 = vmul.f32 0.03125, %v588_v7 }
 0x139   : > { %v590_v9 = vadd.f32 1e-06, %v589_v8 }
 0x13b   : > { %1161 = vrsqrt.f32 %v590_v9 }
 0x148   : > { %v1162_v16 = vpop.eup %1161 }
 0x149   : > { %v592_v17 = vmul.f32 %v1162_v16, %v584_v4 }
 0x14b   : > { %v600_v19 = vmul.f32 %v598_v15, %v592_v17 }
 0x14d   : > { %v607_v20 = vadd.f32 %v1090_v18, %v600_v19 }
 0x14f   : > { %v608_v21 = vpack.c.bf16 %v607_v20, %v607_v20 }
 0x151   : > { %610 = vst.msk [vmem:[#allocation2] sm:$0xf] %vm609_vm1, %v608_v21 }
 0x152 PF: > { %v1163_v22 = vld [vmem:[%s1330_s17 + $0x8] sm:$0xff]   ;;  %v1209_v23 = vmov 0.0   ;;  %v1164_v24 = vld [vmem:[%s1330_s17] sm:$0xff]   ;;  %vm1210_vm2 = vmmov 0   ;;  %vm635_vm3 = vcmask 261120   ;;  %v690_v26 = vlaneseq  ;;  %s1211_s24 = smov 16   ;;  %s1437_s28 = scalar_lea.vmem %s1420_s4, %s1308_s20 }
 0x153   : > { %1105 = vmatprep.subr.bf16.mxu0 %v1209_v23  ;;  %1109 = vmatprep.mubr.msk.bf16.mxu0 %vm1210_vm2, %v1209_v23  ;;  %v679_v28 = vld [vmem:[%s1421_s5] sm:$0x3]  ;;  %v1362_v33 = vld [vmem:[%s1422_s6 + $0x8] sm:$0xff]  ;;  %s1212_s30 = smov 8   ;;  %s1213_s23 = smov 24   ;;  %vm681_vm4 = vcmask 130048  }
 0x154   : > { %1106 = vmatpush3.bf16.msra.mxu0 %v1163_v22  ;;  %v691_v27 = vshrl.u32 %v690_v26, 7  ;;  %v1096_v34 = vld [vmem:[%s1423_s7 + $0x8] sm:$0xff]  ;;  %v1091_v35 = vld [vmem:[%s1437_s28] ss:$0 sm:$0xff]  ;;  %s1214_s29 = smov 112   ;;  %s1215_s20 = smov 120  }
 0x155   : > { %1107 = vmatprep.subr.bf16.mxu0 %v1209_v23  ;;  %s1216_s12 = smov 96   ;;  %vm743_vm5 = vcmask 64512   ;;  %vm781_vm6 = vcmask 125952  }
 0x156   : > { %v692_v29 = vsub.s32 0, %v691_v27  ;;  %v708_v30 = vsub.s32 1, %v691_v27 }
 0x158   : > { %1108 = vmatpush3.bf16.msra.mxu0 %v1164_v24  ;;  %v611_v25 = vld [vmem:[#allocation2] sm:$0xf]  ;;  %v709_v31 = vrot.slane %v679_v28, %v708_v30  ;;  %v693_v32 = vrot.slane %v679_v28, %v692_v29 }
 0x15a   : > { %711 = vrot.lane.b32.xlu1 %v709_v31, %s1211_s24 }
 0x15b   : > { %1110 = vmatmul.mubr.msk.bf16.vlgmr.msra.gmra.mxu0 %vm635_vm3, %v611_v25 }
 0x15e   : > { %730 = vrot.lane.b32.xlu1 %v1362_v33, %s1212_s30 }
 0x162   : > { %749 = vrot.lane.b32.xlu1 %v1096_v34, %s1213_s23 }
 0x1cc   : > { %v712_v48 = vpop.permute.xlu1 %711 }
 0x1d0   : > { %v731_v51 = vpop.permute.xlu1 %730 }
 0x1d4   : > { %v750_v54 = vpop.permute.xlu1 %749 }
 0x21b   : > { %v673_v36 = vpop.f32.mrf.mxu0 }
 0x21c   : > { %v674_v37 = vadd.f32 %v1091_v35, %v673_v36 }
 0x21d   : > { %v1111_v38 = vpop.f32.mrf.mxu0 }
 0x21e   : > { %v680_v39 = vmul.f32 %v674_v37, %v674_v37  ;;  %v1101_v13 = vpack.c.bf16 %v674_v37, %v674_v37 }
 0x21f   : > { %v676_v40 = vpop.f32.mrf.mxu0 }
 0x220   : > { %696 = vrot.lane.b32.xlu0 %v680_v39, %s1214_s29  ;;  %v682_v42 = vsel %vm681_vm4, %v680_v39, 0.0 }
 0x221   : > { %v1112_v41 = vpop.f32.mrf.mxu0 }
 0x23f   : > { %683 = vadd.xlane.f32.xlu0 %v682_v42 }
 0x255   : > { %745 = vrot.lane.b32.xlu0 %v1362_v33, %s1211_s24 }
 0x292   : > { %v697_v43 = vpop.permute.xlu0 %696 }
 0x293   : > { %v699_v44 = vsel %vm681_vm4, %v697_v43, 0.0 }
 0x294   : > { %700 = vadd.xlane.f32.xlu1 %v699_v44 }
 0x2a5   : > { %762 = vrot.lane.b32.xlu1 %v1362_v33, %s1213_s23 }
 0x2a9   : > { %719 = vrot.lane.b32.xlu1 %v1096_v34, %s1212_s30 }
 0x2ad   : > { %758 = vrot.lane.b32.xlu1 %v1096_v34, %s1211_s24 }
 0x2c8   : > { %v684_v45 = vpop.xlane.xlu0 %683 }
 0x2c9   : > { %v686_v46 = vmul.f32 0.0625, %v684_v45 }
 0x2cb   : > { %v687_v47 = vadd.f32 1e-06, %v686_v46 }
 0x2cc   : > { %v746_v7 = vpop.permute.xlu0 %745 }
 0x2cd   : > { %1165 = vrsqrt.f32 %v687_v47 }
 0x2da   : > { %v1166_v49 = vpop.eup %1165 }
 0x2db   : > { %v689_v50 = vmul.f32 %v1166_v49, %v674_v37 }
 0x2dd   : > { %v694_v52 = vmul.f32 %v693_v32, %v689_v50 }
 0x2df   : > { %v733_v53 = vmul.f32 %v731_v51, %v694_v52  ;;  %v728_v4 = vmul.f32 %v1096_v34, %v694_v52  ;;  %v717_v15 = vmul.f32 %v1362_v33, %v694_v52 }
 0x2e1   : > { %735 = vrot.lane.b32.xlu1 %v733_v53, %s1215_s20 }
 0x31d   : > { %v701_v55 = vpop.xlane.xlu1 %700 }
 0x31e   : > { %v702_v56 = vmul.f32 0.0625, %v701_v55 }
 0x320   : > { %v703_v57 = vadd.f32 1e-06, %v702_v56 }
 0x321   : > { %v763_v58 = vpop.permute.xlu1 %762 }
 0x322   : > { %1167 = vrsqrt.f32 %v703_v57 }
 0x325   : > { %v720_v59 = vpop.permute.xlu1 %719 }
 0x326   : > { %v722_v3 = vmul.f32 %v720_v59, %v694_v52 }
 0x329   : > { %v759_v62 = vpop.permute.xlu1 %758 }
 0x32f   : > { %v1168_v60 = vpop.eup %1167 }
 0x330   : > { %v705_v61 = vmul.f32 %v1168_v60, %v674_v37 }
 0x332   : > { %v714_v63 = vmul.f32 %v712_v48, %v705_v61 }
 0x334   : > { %v761_v0 = vmul.f32 %v759_v62, %v714_v63  ;;  %v752_v1 = vmul.f32 %v750_v54, %v714_v63  ;;  %v765_v2 = vmul.f32 %v763_v58, %v714_v63  ;;  %v748_v8 = vmul.f32 %v746_v7, %v714_v63 }
 0x336   : > { %754 = vrot.lane.b32.xlu1 %v752_v1, %s1215_s20 }
 0x33a   : > { %767 = vrot.lane.b32.xlu1 %v765_v2, %s1215_s20 }
 0x33e   : > { %724 = vrot.lane.b32.xlu1 %v722_v3, %s1215_s20 }
 0x353   : > { %v736_v5 = vpop.permute.xlu1 %735 }
 0x354   : > { %v738_v6 = vadd.f32 %v736_v5, %v728_v4 }
 0x356   : > { %740 = vrot.lane.b32.xlu0 %v738_v6, %s1212_s30 }
 0x3a8   : > { %v755_v9 = vpop.permute.xlu1 %754 }
 0x3a9   : > { %v757_v10 = vsub.f32 %v748_v8, %v755_v9 }
 0x3ab   : > { %772 = vrot.lane.b32.xlu1 %v757_v10, %s1214_s29 }
 0x3ac   : > { %v768_v11 = vpop.permute.xlu1 %767 }
 0x3ad   : > { %v770_v12 = vadd.f32 %v768_v11, %v761_v0 }
 0x3af   : > { %776 = vrot.lane.b32.xlu0 %v770_v12, %s1215_s20  ;;  %789 = vrot.lane.b32.xlu1 %v1101_v13, %s1216_s12 }
 0x3b0   : > { %v725_v14 = vpop.permute.xlu1 %724 }
 0x3b1   : > { %v727_v16 = vsub.f32 %v717_v15, %v725_v14 }
 0x3c8   : > { %v741_v17 = vpop.permute.xlu0 %740 }
 0x3c9   : > { %v744_v18 = vsel %vm743_vm5, %v727_v16, %v741_v17 }
 0x3ca   : > { %v780_v19 = vpack.c.bf16 %v744_v18, %v744_v18 }
 0x3cc   : > { %782 = vst.msk [vmem:[%s547_s26] sm:$0xf] %vm781_vm6, %v780_v19 }
 0x41d   : > { %v773_v20 = vpop.permute.xlu1 %772 }
 0x421   : > { %v790_v21 = vpop.permute.xlu1 %789  ;;  %v777_v22 = vpop.permute.xlu0 %776 }
 0x422   : > { %792 = vst.msk [vmem:[%s569_s15] sm:$0xf] %vm781_vm6, %v790_v21  ;;  %v779_v23 = vsel %vm743_vm5, %v773_v20, %v777_v22 }
 0x423   : > { %v783_v24 = vpack.c.bf16 %v779_v23, %v779_v23 }
 0x425   : > { %784 = vst.msk [vmem:[%s558_s19] sm:$0xf] %vm781_vm6, %v783_v24 }
 0x426 PF: > { %s1438_s27 = sld [smem:[#allocation5_spill]] }
 0x427   : > { %s1439_s13 = sld [smem:[#allocation3_spill]] }
 0x428   : > { %s1440_s14 = sld [smem:[#allocation4_spill]] }
 0x429   : > { %s1441_s15 = sld [smem:[#allocation6_spill]] }
 0x42a   : > { %s1442_s16 = sld [smem:[#allocation7_spill]] }
 0x42c   : > { %s21_s17 = sadd.s32 1, %s1438_s27  }
 0x42d   : > { %p18_p8 = scmp.ge.s32.totalorder %s21_s17, 6  }
 0x42f   :  { %20 = sbr.rel (!%p18_p8) target bundleno = 3 (0x3), region = 128 }

// kernel: double_stream_lora_forward.11
= control target key start
LH: loop header
LB: loop body
LE: loop exit
PB: predicated region body
PF: predicated region fallthrough
CT: control target
= control target key end

     0   :  { %s1256_s13 = smov 0   ;;  %s1258_s14 = smov 0   ;;  %s1400_s0 = inlined_call_operand.vmem [shape: f32[2,8,32], index: 0, kind: input, shape index: {}]   ;;  %s1401_s1 = inlined_call_operand.vmem [shape: f32[2,1,32], index: 1, kind: input, shape index: {}]   ;;  %s1402_s2 = inlined_call_operand.vmem [shape: f32[2,1,32], index: 2, kind: input, shape index: {}]   ;;  %s1403_s3 = inlined_call_operand.vmem [shape: bf16[2,32,48], index: 3, kind: input, shape index: {}]   ;;  %s1404_s4 = inlined_call_operand.vmem [shape: f32[2,1,48], index: 4, kind: input, shape index: {}]   ;;  %s1405_s5 = inlined_call_operand.vmem [shape: f32[2,16], index: 5, kind: input, shape index: {}]   ;;  %s1406_s6 = inlined_call_operand.vmem [shape: f32[16,8], index: 6, kind: input, shape index: {}]   ;;  %s1407_s7 = inlined_call_operand.vmem [shape: f32[16,8], index: 7, kind: input, shape index: {}]   ;;  %s1408_s8 = inlined_call_operand.vmem [shape: bf16[2,2,8,16], index: 8, kind: output, shape index: {0}]   ;;  %s1409_s9 = inlined_call_operand.vmem [shape: bf16[2,2,8,16], index: 9, kind: output, shape index: {1}]   ;;  %s1410_s10 = inlined_call_operand.vmem [shape: bf16[2,2,8,16], index: 10, kind: output, shape index: {2}]  }
   0x1   :  { %1414 = sst [smem:[#allocation8_spill]] %s1401_s1  ;;  %s1260_s15 = smov 0  }
   0x2   :  { %s1262_s16 = smov 0   ;;  %s1264_s17 = smov 0  }
   0x3 LB: > { %1415 = sst [smem:[#allocation3_spill]] %s1183_s15  ;;  %s33_s18 = sadd.s32 1, %s1183_s15  ;;  %s1191_s17 = sphi %s1264_s17, %s21_s17   ;;  %s1187_s16 = sphi %s1262_s16, %s1426_s16   ;;  %s1183_s15 = sphi %s1260_s15, %s1425_s15   ;;  %s1179_s14 = sphi %s1258_s14, %s1424_s14   ;;  %s1175_s13 = sphi %s1256_s13, %s1423_s13  }
   0x4   : > { %1416 = sst [smem:[#allocation4_spill]] %s1187_s16  ;;  %s40_s19 = sadd.s32 1, %s1187_s16 }
   0x5   : > { %1417 = sst [smem:[#allocation5_spill]] %s1191_s17  ;;  %p34_p0 = scmp.ge.s32.totalorder %s33_s18, 2 }
   0x6   : > { %p1065_p1 = scmp.ge.s32.totalorder %s1191_s17, 1  ;;  %p404_p2 = scmp.lt.s32.totalorder %s1191_s17, 5 }
   0x7   : > { %s1428_s18 = smov (%p34_p0, %s33_s18), 0  ;;  %s1430_s19 = smov (!%p34_p0, %s40_s19), %s1187_s16 }
   0x8   : > { %1418 = sst [smem:[#allocation6_spill]] %s1428_s18  ;;  %p405_p3 = pnand %p1065_p1, %p404_p2 }
   0x9   : > { %p42_p4 = scmp.ge.s32.totalorder %s1430_s19, 2  ;;  %p494_p5 = scmp.lt.s32.totalorder (!%p405_p3), %s1179_s14, 1 }
   0xa   : > { %408 = sbr.rel (%p405_p3) target bundleno = 1062 (0x426), region = 52  ;;  %p507_p6 = scmp.lt.s32.totalorder (!%p405_p3), %s1175_s13, 1 }
   0xb   : > { %s1432_s19 = smov (%p42_p4, %s1430_s19), 0  ;;  %s1420_s1 = sld [smem:[#allocation8_spill]] (!%p405_p3) }
   0xc   : > { %1419 = sst [smem:[#allocation7_spill]] %s1432_s19  ;;  %p1075_p7 = scmp.ne.s32.totalorder (!%p405_p3), %s1175_s13, 0 }
   0xf   : > { %s1434_s14 = smov (!%p494_p5, %s1179_s14), 1 }
  0x10   : > { %s1292_s20 = scalar_select %p507_p6, %s1175_s13, 1 }
  0x11   : > { %s1066_s21 = sshll.u32 %s1434_s14, 3  ;;  %s503_s24 = scalar_lea.vmem %s1420_s1, %s1434_s14 }
  0x12   : > { %s500_s27 = scalar_lea.vmem %s1400_s0, %s1066_s21  ;;  %s506_s30 = scalar_lea.vmem %s1402_s2, %s1434_s14 }
  0x13   : > { %s1084_s11 = sshll.u32 %s1292_s20, 4  ;;  %s1069_s22 = sshll.u32 %s1434_s14, 1 }
  0x14   : > { %s1314_s17 = scalar_lea.vmem %s1403_s3, %s1084_s11  ;;  %s531_s23 = sadd.s32 %s1069_s22, %s1292_s20 }
  0x15   : > { %s1318_s1 = sshll.u32 %s531_s23, 2  ;;  %560 = sbr.rel (%p1075_p7) target bundleno = 338 (0x152), region = 56 }
  0x16   : > { %s533_s26 = scalar_lea.vmem %s1408_s8, %s1318_s1  ;;  %s544_s19 = scalar_lea.vmem %s1409_s9, %s1318_s1 }
  0x17   : > { %s555_s15 = scalar_lea.vmem %s1410_s10, %s1318_s1 }
  0x1a   : > { %v561_v0 = vld [vmem:[%s500_s27] sm:$0xff]  ;;  %vm564_vm0 = vcmask 261120   ;;  %v581_v10 = vlaneseq  ;;  %vm595_vm1 = vcmask 257024  }
  0x1b   : > { %v565_v1 = vsel %vm564_vm0, %v561_v0, 0.0  ;;  %v562_v12 = vld [vmem:[%s503_s24] sm:$0x1] }
  0x1c   : > { %566 = vadd.xlane.f32.xlu0 %v565_v1  ;;  %v582_v11 = vshrl.u32 %v581_v10, 7  ;;  %v579_v13 = vadd.f32 1.0, %v562_v12  ;;  %v1076_v18 = vld [vmem:[%s506_s30] ss:$0 sm:$0xff] }
  0x1e   : > { %v583_v14 = vsub.s32 0, %v582_v11 }
  0x20   : > { %v584_v15 = vrot.slane %v579_v13, %v583_v14 }
  0xa5   : > { %v567_v2 = vpop.xlane.xlu0 %566 }
  0xa6   : > { %v569_v3 = vmul.f32 0.03125, %v567_v2 }
  0xa8   : > { %v570_v4 = vsub.f32 %v561_v0, %v569_v3 }
  0xaa   : > { %v571_v5 = vmul.f32 %v570_v4, %v570_v4 }
  0xac   : > { %v572_v6 = vsel %vm564_vm0, %v571_v5, 0.0 }
  0xad   : > { %573 = vadd.xlane.f32.xlu0 %v572_v6 }
 0x136   : > { %v574_v7 = vpop.xlane.xlu0 %573 }
 0x137   : > { %v575_v8 = vmul.f32 0.03125, %v574_v7 }
 0x139   : > { %v576_v9 = vadd.f32 1e-06, %v575_v8 }
 0x13b   : > { %1145 = vrsqrt.f32 %v576_v9 }
 0x148   : > { %v1146_v16 = vpop.eup %1145 }
 0x149   : > { %v578_v17 = vmul.f32 %v1146_v16, %v570_v4 }
 0x14b   : > { %v586_v19 = vmul.f32 %v584_v15, %v578_v17 }
 0x14d   : > { %v593_v20 = vadd.f32 %v1076_v18, %v586_v19 }
 0x14f   : > { %v594_v21 = vpack.c.bf16 %v593_v20, %v593_v20 }
 0x151   : > { %596 = vst.msk [vmem:[#allocation2] sm:$0xf] %vm595_vm1, %v594_v21 }
 0x152 PF: > { %v1147_v22 = vld [vmem:[%s1314_s17 + $0x8] sm:$0xff]   ;;  %v1193_v23 = vmov 0.0   ;;  %v1148_v24 = vld [vmem:[%s1314_s17] sm:$0xff]   ;;  %vm1194_vm2 = vmmov 0   ;;  %vm621_vm3 = vcmask 261120   ;;  %v676_v26 = vlaneseq  ;;  %s1195_s24 = smov 16   ;;  %s1421_s28 = scalar_lea.vmem %s1404_s4, %s1292_s20 }
 0x153   : > { %1089 = vmatprep.subr.bf16.mxu0 %v1193_v23  ;;  %1093 = vmatprep.mubr.msk.bf16.mxu0 %vm1194_vm2, %v1193_v23  ;;  %v665_v28 = vld [vmem:[%s1405_s5] sm:$0x3]  ;;  %s1196_s30 = smov 8   ;;  %s1197_s23 = smov 24   ;;  %vm667_vm4 = vcmask 130048   ;;  %vm729_vm5 = vcmask 64512  }
 0x154   : > { %1090 = vmatpush3.bf16.msra.mxu0 %v1147_v22  ;;  %v677_v27 = vshrl.u32 %v676_v26, 7  ;;  %v1346_v33 = vld [vmem:[%s1406_s6] sm:$0xff]  ;;  %s1198_s29 = smov 112   ;;  %s1199_s20 = smov 120   ;;  %vm767_vm6 = vcmask 125952  }
 0x155   : > { %1091 = vmatprep.subr.bf16.mxu0 %v1193_v23  ;;  %v702_v34 = vld [vmem:[%s1407_s7] sm:$0xff]  ;;  %s1200_s12 = smov 96  }
 0x156   : > { %v678_v29 = vsub.s32 0, %v677_v27  ;;  %v694_v30 = vsub.s32 1, %v677_v27  ;;  %v1077_v35 = vld [vmem:[%s1421_s28] ss:$0 sm:$0xff] }
 0x158   : > { %1092 = vmatpush3.bf16.msra.mxu0 %v1148_v24  ;;  %v597_v25 = vld [vmem:[#allocation2] sm:$0xf]  ;;  %v695_v31 = vrot.slane %v665_v28, %v694_v30  ;;  %v679_v32 = vrot.slane %v665_v28, %v678_v29 }
 0x15a   : > { %697 = vrot.lane.b32.xlu1 %v695_v31, %s1195_s24 }
 0x15b   : > { %1094 = vmatmul.mubr.msk.bf16.vlgmr.msra.gmra.mxu0 %vm621_vm3, %v597_v25 }
 0x15e   : > { %716 = vrot.lane.b32.xlu1 %v1346_v33, %s1196_s30 }
 0x162   : > { %735 = vrot.lane.b32.xlu1 %v702_v34, %s1197_s23 }
 0x1cc   : > { %v698_v48 = vpop.permute.xlu1 %697 }
 0x1d0   : > { %v717_v51 = vpop.permute.xlu1 %716 }
 0x1d4   : > { %v736_v54 = vpop.permute.xlu1 %735 }
 0x21b   : > { %v659_v36 = vpop.f32.mrf.mxu0 }
 0x21c   : > { %v660_v37 = vadd.f32 %v1077_v35, %v659_v36 }
 0x21d   : > { %v1095_v38 = vpop.f32.mrf.mxu0 }
 0x21e   : > { %v666_v39 = vmul.f32 %v660_v37, %v660_v37  ;;  %v1085_v13 = vpack.c.bf16 %v660_v37, %v660_v37 }
 0x21f   : > { %v662_v40 = vpop.f32.mrf.mxu0 }
 0x220   : > { %682 = vrot.lane.b32.xlu0 %v666_v39, %s1198_s29  ;;  %v668_v42 = vsel %vm667_vm4, %v666_v39, 0.0 }
 0x221   : > { %v1096_v41 = vpop.f32.mrf.mxu0 }
 0x23f   : > { %669 = vadd.xlane.f32.xlu0 %v668_v42 }
 0x255   : > { %731 = vrot.lane.b32.xlu0 %v1346_v33, %s1195_s24 }
 0x292   : > { %v683_v43 = vpop.permute.xlu0 %682 }
 0x293   : > { %v685_v44 = vsel %vm667_vm4, %v683_v43, 0.0 }
 0x294   : > { %686 = vadd.xlane.f32.xlu1 %v685_v44 }
 0x2a5   : > { %748 = vrot.lane.b32.xlu1 %v1346_v33, %s1197_s23 }
 0x2a9   : > { %705 = vrot.lane.b32.xlu1 %v702_v34, %s1196_s30 }
 0x2ad   : > { %744 = vrot.lane.b32.xlu1 %v702_v34, %s1195_s24 }
 0x2c8   : > { %v670_v45 = vpop.xlane.xlu0 %669 }
 0x2c9   : > { %v672_v46 = vmul.f32 0.0625, %v670_v45 }
 0x2cb   : > { %v673_v47 = vadd.f32 1e-06, %v672_v46 }
 0x2cc   : > { %v732_v7 = vpop.permute.xlu0 %731 }
 0x2cd   : > { %1149 = vrsqrt.f32 %v673_v47 }
 0x2da   : > { %v1150_v49 = vpop.eup %1149 }
 0x2db   : > { %v675_v50 = vmul.f32 %v1150_v49, %v660_v37 }
 0x2dd   : > { %v680_v52 = vmul.f32 %v679_v32, %v675_v50 }
 0x2df   : > { %v719_v53 = vmul.f32 %v717_v51, %v680_v52  ;;  %v714_v4 = vmul.f32 %v702_v34, %v680_v52  ;;  %v703_v15 = vmul.f32 %v1346_v33, %v680_v52 }
 0x2e1   : > { %721 = vrot.lane.b32.xlu1 %v719_v53, %s1199_s20 }
 0x31d   : > { %v687_v55 = vpop.xlane.xlu1 %686 }
 0x31e   : > { %v688_v56 = vmul.f32 0.0625, %v687_v55 }
 0x320   : > { %v689_v57 = vadd.f32 1e-06, %v688_v56 }
 0x321   : > { %v749_v58 = vpop.permute.xlu1 %748 }
 0x322   : > { %1151 = vrsqrt.f32 %v689_v57 }
 0x325   : > { %v706_v59 = vpop.permute.xlu1 %705 }
 0x326   : > { %v708_v3 = vmul.f32 %v706_v59, %v680_v52 }
 0x329   : > { %v745_v62 = vpop.permute.xlu1 %744 }
 0x32f   : > { %v1152_v60 = vpop.eup %1151 }
 0x330   : > { %v691_v61 = vmul.f32 %v1152_v60, %v660_v37 }
 0x332   : > { %v700_v63 = vmul.f32 %v698_v48, %v691_v61 }
 0x334   : > { %v747_v0 = vmul.f32 %v745_v62, %v700_v63  ;;  %v738_v1 = vmul.f32 %v736_v54, %v700_v63  ;;  %v751_v2 = vmul.f32 %v749_v58, %v700_v63  ;;  %v734_v8 = vmul.f32 %v732_v7, %v700_v63 }
 0x336   : > { %740 = vrot.lane.b32.xlu1 %v738_v1, %s1199_s20 }
 0x33a   : > { %753 = vrot.lane.b32.xlu1 %v751_v2, %s1199_s20 }
 0x33e   : > { %710 = vrot.lane.b32.xlu1 %v708_v3, %s1199_s20 }
 0x353   : > { %v722_v5 = vpop.permute.xlu1 %721 }
 0x354   : > { %v724_v6 = vadd.f32 %v722_v5, %v714_v4 }
 0x356   : > { %726 = vrot.lane.b32.xlu0 %v724_v6, %s1196_s30 }
 0x3a8   : > { %v741_v9 = vpop.permute.xlu1 %740 }
 0x3a9   : > { %v743_v10 = vsub.f32 %v734_v8, %v741_v9 }
 0x3ab   : > { %758 = vrot.lane.b32.xlu1 %v743_v10, %s1198_s29 }
 0x3ac   : > { %v754_v11 = vpop.permute.xlu1 %753 }
 0x3ad   : > { %v756_v12 = vadd.f32 %v754_v11, %v747_v0 }
 0x3af   : > { %762 = vrot.lane.b32.xlu0 %v756_v12, %s1199_s20  ;;  %775 = vrot.lane.b32.xlu1 %v1085_v13, %s1200_s12 }
 0x3b0   : > { %v711_v14 = vpop.permute.xlu1 %710 }
 0x3b1   : > { %v713_v16 = vsub.f32 %v703_v15, %v711_v14 }
 0x3c8   : > { %v727_v17 = vpop.permute.xlu0 %726 }
 0x3c9   : > { %v730_v18 = vsel %vm729_vm5, %v713_v16, %v727_v17 }
 0x3ca   : > { %v766_v19 = vpack.c.bf16 %v730_v18, %v730_v18 }
 0x3cc   : > { %768 = vst.msk [vmem:[%s533_s26] sm:$0xf] %vm767_vm6, %v766_v19 }
 0x41d   : > { %v759_v20 = vpop.permute.xlu1 %758 }
 0x421   : > { %v776_v21 = vpop.permute.xlu1 %775  ;;  %v763_v22 = vpop.permute.xlu0 %762 }
 0x422   : > { %778 = vst.msk [vmem:[%s555_s15] sm:$0xf] %vm767_vm6, %v776_v21  ;;  %v765_v23 = vsel %vm729_vm5, %v759_v20, %v763_v22 }
 0x423   : > { %v769_v24 = vpack.c.bf16 %v765_v23, %v765_v23 }
 0x425   : > { %770 = vst.msk [vmem:[%s544_s19] sm:$0xf] %vm767_vm6, %v769_v24 }
 0x426 PF: > { %s1422_s27 = sld [smem:[#allocation5_spill]] }
 0x427   : > { %s1423_s13 = sld [smem:[#allocation3_spill]] }
 0x428   : > { %s1424_s14 = sld [smem:[#allocation4_spill]] }
 0x429   : > { %s1425_s15 = sld [smem:[#allocation6_spill]] }
 0x42a   : > { %s1426_s16 = sld [smem:[#allocation7_spill]] }
 0x42c   : > { %s21_s17 = sadd.s32 1, %s1422_s27  }
 0x42d   : > { %p18_p8 = scmp.ge.s32.totalorder %s21_s17, 6  }
 0x42f   :  { %20 = sbr.rel (!%p18_p8) target bundleno = 3 (0x3), region = 128 }

// kernel: double_stream_lora_forward.13
= control target key start
LH: loop header
LB: loop body
LE: loop exit
PB: predicated region body
PF: predicated region fallthrough
CT: control target
= control target key end

     0   :  { %s910_s12 = smov 0   ;;  %s912_s13 = smov 0   ;;  %s992_s0 = inlined_call_operand.vmem [shape: bf16[2,2,16,16], index: 0, kind: input, shape index: {}]   ;;  %s993_s1 = inlined_call_operand.vmem [shape: bf16[2,2,16,16], index: 1, kind: input, shape index: {}]   ;;  %s994_s2 = inlined_call_operand.vmem [shape: bf16[2,2,16,16], index: 2, kind: input, shape index: {}]   ;;  %s995_s3 = inlined_call_operand.vmem [shape: bf16[2,2,16,16], index: 3, kind: output, shape index: {}]  }
   0x1   :  { %s914_s14 = smov 0   ;;  %s916_s15 = smov 0  }
   0x2   :  { %s918_s16 = smov 0  }
   0x3 LB: > { %s35_s17 = sadd.s32 1, %s876_s14  ;;  %s39_s18 = sadd.s32 1, %s880_s15  ;;  %s884_s16 = sphi %s918_s16, %s13_s16   ;;  %s880_s15 = sphi %s916_s15, %s999_s15   ;;  %s876_s14 = sphi %s914_s14, %s998_s14   ;;  %s872_s13 = sphi %s912_s13, %s997_s13   ;;  %s868_s12 = sphi %s910_s12, %s996_s12  }
   0x4   : > { %p37_p0 = scmp.ge.s32.totalorder %s35_s17, 2  ;;  %p745_p1 = scmp.ge.s32.totalorder %s884_s16, 1 }
   0x5   : > { %p226_p2 = scmp.lt.s32.totalorder %s884_s16, 5 }
   0x6   : > { %s1001_s17 = smov (%p37_p0, %s35_s17), 0  ;;  %s1003_s18 = smov (!%p37_p0, %s39_s18), %s880_s15 }
   0x7   : > { %p227_p3 = pnand %p745_p1, %p226_p2  ;;  %p41_p4 = scmp.ge.s32.totalorder %s1003_s18, 2 }
   0x8   : > { %p293_p5 = scmp.lt.s32.totalorder (!%p227_p3), %s872_s13, 1  ;;  %p295_p6 = scmp.lt.s32.totalorder (!%p227_p3), %s868_s12, 1 }
   0x9   : > { %s1005_s18 = smov (%p41_p4, %s1003_s18), 0  ;;  %230 = sbr.rel (%p227_p3) target bundleno = 800 (0x320), region = 32 }
   0xe   : > { %vm358_vm0 = vcmask 130048   ;;  %v886_v0 = vmov 0.0   ;;  %vm887_vm1 = vmmov 0   ;;  %s1007_s13 = smov (!%p293_p5, %s872_s13), 1  ;;  %s1009_s12 = smov (!%p295_p6, %s868_s12), 1  ;;  %vm353_vm2 = vcmask 7168  }
   0xf   : > { %773 = vmatprep.subr.bf16.mxu0 %v886_v0  ;;  %359 = vst.msk [vmem:[#allocation4] sm:$0xff] %vm358_vm0, %v886_v0  ;;  %360 = vst.msk [vmem:[#allocation4 + $0x8] sm:$0xff] %vm358_vm0, %v886_v0  ;;  %775 = vmatprep.mubr.msk.bf16.mxu0 %vm887_vm1, %v886_v0  ;;  %s747_s19 = sshll.u32 %s1007_s13, 2  ;;  %s746_s20 = sshll.u32 %s1009_s12, 1  ;;  %v888_v4 = vmov -inf   ;;  %v889_v11 = vmov 0  }
  0x10   : > { %779 = vmatprep.subr.bf16.mxu1 %v886_v0  ;;  %781 = vmatprep.mubr.msk.bf16.mxu1 %vm887_vm1, %v886_v0  ;;  %s302_s21 = sadd.s32 %s747_s19, %s746_s20  ;;  %354 = vst.msk [vmem:[#allocation2] sm:$0xff] %vm353_vm2, %v888_v4  ;;  %355 = vst.msk [vmem:[#allocation2 + $0x8] sm:$0xff] %vm353_vm2, %v888_v4  ;;  %vm572_vm3 = vcmask 125952  }
  0x11   : > { %s942_s22 = sshll.u32 %s302_s21, 2  ;;  %356 = vst.msk [vmem:[#allocation3] sm:$0xff] %vm353_vm2, %v886_v0  ;;  %357 = vst.msk [vmem:[#allocation3 + $0x8] sm:$0xff] %vm353_vm2, %v886_v0  ;;  %829 = vset.pattern.permute.xlu1 %v889_v11  ;;  %830 = vset.pattern.permute.xlu0 %v889_v11 }
  0x12   : > { %s318_s25 = scalar_lea.vmem %s993_s1, %s942_s22  ;;  %s304_s28 = scalar_lea.vmem %s992_s0, %s942_s22 }
  0x13   : > { %v831_v1 = vld [vmem:[%s318_s25] sm:$0xff]   ;;  %s332_s4 = scalar_lea.vmem %s994_s2, %s942_s22  ;;  %s346_s7 = scalar_lea.vmem %s995_s3, %s942_s22 }
  0x14   : > { %v380_v2 = vsel %vm358_vm0, %v831_v1, 0  ;;  %v832_v3 = vld [vmem:[%s304_s28] sm:$0xff]  }
  0x15   : > { %774 = vmatpush3.bf16.xpose.msra.mxu0 %v380_v2  ;;  %v833_v20 = vld [vmem:[%s332_s4] sm:$0xff]  }
  0x16   : > { %780 = vmatpush3.bf16.msra.mxu1 %v833_v20  ;;  %v470_v48 = vld [vmem:[#allocation4] sm:$0xff]  ;;  %v471_v51 = vld [vmem:[#allocation4 + $0x8] sm:$0xff] }
  0x17   : > { %v423_v12 = vld [vmem:[#allocation2] sm:$0xff]  ;;  %v424_v15 = vld [vmem:[#allocation2 + $0x8] sm:$0xff] }
  0x18   : > { %v455_v36 = vld [vmem:[#allocation3] sm:$0xff]  ;;  %v456_v39 = vld [vmem:[#allocation3 + $0x8] sm:$0xff] }
  0x1c   : > { %776 = vmatmul.mubr.msk.bf16.vlgmr.msra.gmra.mxu0 %vm358_vm0, %v832_v3 }
  0xdc   : > { %v416_v5 = vpop.f32.mrf.mxu0 }
  0xdd   : > { %v425_v6 = vsel %vm358_vm0, %v416_v5, -inf }
  0xde   : > { %426 = vmax.xlane.f32.xlu0 %v425_v6  ;;  %v777_v7 = vpop.f32.mrf.mxu0 }
  0xe0   : > { %v419_v8 = vpop.f32.mrf.mxu0 }
  0xe1   : > { %v428_v9 = vsel %vm358_vm0, %v419_v8, -inf }
  0xe2   : > { %429 = vmax.xlane.f32.xlu0 %v428_v9  ;;  %v778_v10 = vpop.f32.mrf.mxu0 }
 0x167   : > { %v427_v13 = vpop.xlane.xlu0 %426 }
 0x168   : > { %v431_v14 = vmax.f32 %v423_v12, %v427_v13 }
 0x16a   : > { %v433_v16 = vsub.f32 %v423_v12, %v431_v14  ;;  %541 = vst.msk [vmem:[#allocation2] sm:$0xff] %vm353_vm2, %v431_v14  ;;  %441 = vperm.xlu1 %829, %v431_v14  }
 0x16b   : > { %v430_v17 = vpop.xlane.xlu0 %429 }
 0x16c   : > { %v432_v18 = vmax.f32 %v424_v15, %v430_v17  ;;  %v435_v33 = vmul.f32 1.442695, %v433_v16 }
 0x16e   : > { %v434_v19 = vsub.f32 %v424_v15, %v432_v18  ;;  %542 = vst.msk [vmem:[#allocation2 + $0x8] sm:$0xff] %vm353_vm2, %v432_v18  ;;  %446 = vperm.xlu1 %829, %v432_v18  }
 0x170   : > { %v437_v30 = vmul.f32 1.442695, %v434_v19 }
 0x1e5   : > { %v442_v21 = vpop.permute.xlu1 %441 }
 0x1e6   : > { %v449_v22 = vsub.f32 %v416_v5, %v442_v21 }
 0x1e8   : > { %v451_v23 = vmul.f32 1.442695, %v449_v22 }
 0x1e9   : > { %v447_v24 = vpop.permute.xlu1 %446 }
 0x1ea   : > { %834 = vpow2.f32 %v451_v23  ;;  %v450_v25 = vsub.f32 %v419_v8, %v447_v24 }
 0x1ec   : > { %v453_v26 = vmul.f32 1.442695, %v450_v25 }
 0x1ee   : > { %836 = vpow2.f32 %v453_v26 }
 0x1ef   : > { %838 = vpow2.f32 %v437_v30 }
 0x1f0   : > { %840 = vpow2.f32 %v435_v33 }
 0x1f7   : > { %v835_v27 = vpop.eup %834 }
 0x1f8   : > { %v459_v28 = vsel %vm358_vm0, %v835_v27, 0.0 }
 0x1f9   : > { %460 = vadd.xlane.f32.xlu0 %v459_v28 }
 0x1fb   : > { %v837_v29 = vpop.eup %836 }
 0x1fc   : > { %v462_v31 = vsel %vm358_vm0, %v837_v29, 0.0  ;;  %v484_v32 = vpack.c.bf16 %v837_v29, %v835_v27  ;;  %v839_v34 = vpop.eup %838 }
 0x1fd   : > { %463 = vadd.xlane.f32.xlu1 %v462_v31  ;;  %v841_v35 = vpop.eup %840  ;;  %v458_v41 = vmul.f32 %v839_v34, %v456_v39 }
 0x1fe   : > { %782 = vmatmul.mubr.msk.bf16.vlgmr.msra.gmra.mxu1 %vm358_vm0, %v484_v32  ;;  %v457_v37 = vmul.f32 %v841_v35, %v455_v36 }
 0x20e   : > { %479 = vperm.xlu1 %829, %v839_v34  }
 0x20f   : > { %474 = vperm.xlu0 %830, %v841_v35  }
 0x282   : > { %v461_v38 = vpop.xlane.xlu0 %460 }
 0x283   : > { %v465_v40 = vadd.f32 %v461_v38, %v457_v37 }
 0x285   : > { %468 = vst.msk [vmem:[#allocation3] sm:$0xff] %vm353_vm2, %v465_v40 }
 0x286   : > { %v464_v42 = vpop.xlane.xlu1 %463 }
 0x287   : > { %v466_v43 = vadd.f32 %v464_v42, %v458_v41 }
 0x289   : > { %469 = vst.msk [vmem:[#allocation3 + $0x8] sm:$0xff] %vm353_vm2, %v466_v43 }
 0x28a   : > { %v475_v49 = vpop.permute.xlu0 %474  ;;  %v480_v52 = vpop.permute.xlu1 %479 }
 0x28b   : > { %v482_v50 = vmul.f32 %v475_v49, %v470_v48  ;;  %v483_v56 = vmul.f32 %v480_v52, %v471_v51 }
 0x28c   : > { %v546_v44 = vld [vmem:[#allocation3] sm:$0xff] }
 0x28d   : > { %842 = vrcp.f32 %v546_v44 }
 0x290   : > { %v547_v45 = vld [vmem:[#allocation3 + $0x8] sm:$0xff] }
 0x291   : > { %844 = vrcp.f32 %v547_v45 }
 0x29a   : > { %v843_v46 = vpop.eup %842 }
 0x29b   : > { %554 = vperm.xlu0 %830, %v843_v46  }
 0x29e   : > { %v845_v47 = vpop.eup %844 }
 0x29f   : > { %559 = vperm.xlu0 %830, %v845_v47  }
 0x2be   : > { %v530_v53 = vpop.f32.mrf.mxu1 }
 0x2bf   : > { %v537_v54 = vadd.f32 %v530_v53, %v482_v50 }
 0x2c0   : > { %v783_v55 = vpop.f32.mrf.mxu1 }
 0x2c1   : > { %539 = vst.msk [vmem:[#allocation4] sm:$0xff] %vm358_vm0, %v537_v54 }
 0x2c2   : > { %v533_v57 = vpop.f32.mrf.mxu1 }
 0x2c3   : > { %v538_v58 = vadd.f32 %v533_v57, %v483_v56 }
 0x2c4   : > { %v784_v59 = vpop.f32.mrf.mxu1 }
 0x2c5   : > { %540 = vst.msk [vmem:[#allocation4 + $0x8] sm:$0xff] %vm358_vm0, %v538_v58 }
 0x2c8   : > { %v550_v60 = vld [vmem:[#allocation4] sm:$0xff] }
 0x2cc   : > { %v551_v0 = vld [vmem:[#allocation4 + $0x8] sm:$0xff] }
 0x316   : > { %v555_v61 = vpop.permute.xlu0 %554 }
 0x317   : > { %v562_v62 = vmul.f32 %v555_v61, %v550_v60 }
 0x319   : > { %v767_v63 = vpack.c.bf16 %v562_v62, %v562_v62 }
 0x31a   : > { %v560_v1 = vpop.permute.xlu0 %559 }
 0x31b   : > { %573 = vst.msk [vmem:[%s346_s7] sm:$0xf] %vm572_vm3, %v767_v63  ;;  %v563_v2 = vmul.f32 %v560_v1, %v551_v0 }
 0x31d   : > { %v768_v3 = vpack.c.bf16 %v563_v2, %v563_v2 }
 0x31f   : > { %574 = vst.msk [vmem:[%s346_s7 + $0x4] sm:$0xf] %vm572_vm3, %v768_v3 }
 0x320 PF: > { %s13_s16 = sadd.s32 1, %s884_s16   ;;  %s996_s12 = smov %s876_s14 }
 0x321   : > { %p10_p7 = scmp.ge.s32.totalorder %s13_s16, 6   ;;  %s997_s13 = smov %s880_s15 }
 0x322   : > { %s998_s14 = smov %s1001_s17  ;;  %s999_s15 = smov %s1005_s18 }
 0x323   :  { %12 = sbr.rel (!%p10_p7) target bundleno = 3 (0x3), region = 76 }

// kernel: double_stream_lora_forward.17
= control target key start
LH: loop header
LB: loop body
LE: loop exit
PB: predicated region body
PF: predicated region fallthrough
CT: control target
= control target key end

     0   :  { %s797_s18 = smov 0   ;;  %s799_s19 = smov 0   ;;  %s880_s0 = inlined_call_operand.vmem [shape: bf16[2,2,16,16], index: 0, kind: input, shape index: {}]   ;;  %s881_s1 = inlined_call_operand.vmem [shape: bf16[1,32,32], index: 1, kind: input, shape index: {}]   ;;  %s882_s2 = inlined_call_operand.vmem [shape: f32[1,32], index: 2, kind: input, shape index: {}]   ;;  %s883_s3 = inlined_call_operand.vmem [shape: f32[2,1,32], index: 3, kind: input, shape index: {}]   ;;  %s884_s4 = inlined_call_operand.vmem [shape: f32[2,8,32], index: 4, kind: input, shape index: {}]   ;;  %s885_s5 = inlined_call_operand.vmem [shape: f32[2,8,32], index: 5, kind: output, shape index: {}]  }
   0x1   :  { %s801_s20 = smov 0   ;;  %s803_s21 = smov 0  }
   0x2   :  { %s805_s22 = smov 0  }
   0x3 LB: > { %s34_s23 = sadd.s32 1, %s758_s21  ;;  %p50_p1 = scmp.ne.s32.totalorder %s750_s19, %s746_s18  ;;  %s762_s22 = sphi %s805_s22, %s15_s22   ;;  %s758_s21 = sphi %s803_s21, %s889_s21   ;;  %s754_s20 = sphi %s801_s20, %s888_s20   ;;  %s750_s19 = sphi %s799_s19, %s887_s19   ;;  %s746_s18 = sphi %s797_s18, %s886_s18  }
   0x4   : > { %p36_p0 = scmp.ge.s32.totalorder %s34_s23, 2  ;;  %p51_p2 = scmp.eq.s32.totalorder %s762_s22, 0 }
   0x5   : > { %s43_s25 = sadd.s32 1, %s750_s19  ;;  %p649_p5 = scmp.ge.s32.totalorder %s762_s22, 2 }
   0x6   : > { %s891_s23 = smov (%p36_p0, %s34_s23), 0  ;;  %p52_p3 = por %p51_p2, %p50_p1 }
   0x7   : > { %s38_s24 = ssub.s32 %s758_s21, %s891_s23  ;;  %229 = sbr.rel (%p649_p5) target bundleno = 17 (0x11), region = 24 }
   0x8   : > { %p41_p4 = scmp.eq.s32.totalorder %s38_s24, 0 }
   0xa   : > { %s832_s26 = scalar_select %p41_p4, %s750_s19, %s43_s25  }
   0xc   : > { %232 = sbr.rel (!%p52_p3) target bundleno = 17 (0x11), region = 28  ;;  %s234_s27 = sand.u32 (%p52_p3), 1, %s750_s19  }
   0xd   : > { %s666_s28 = sshll.u32 (%p52_p3), %s758_s21, 4  ;;  %s650_s29 = sshll.u32 (%p52_p3), %s234_s27, 3 }
   0xe   : > { %s240_s7 = scalar_lea.vmem (%p52_p3), %s880_s0, %s666_s28  ;;  %s236_s8 = scalar_lea.vmem (%p52_p3), [#allocation2], %s650_s29 }
   0xf   : > { %v257_v0 = vld [vmem:[%s240_s7] sm:$0xf] (%p52_p3)  ;;  %v259_v1 = vld [vmem:[%s240_s7 + $0x8] sm:$0xf] (%p52_p3) }
  0x10   : > { %258 = vst [vmem:[%s236_s8] sm:$0xf] (%p52_p3), %v257_v0  ;;  %260 = vst [vmem:[%s236_s8 + $0x4] sm:$0xf] (%p52_p3), %v259_v1 }
  0x11 PF: > { %p653_p6 = scmp.ge.s32.totalorder %s762_s22, 1  ;;  %p309_p7 = scmp.lt.s32.totalorder %s762_s22, 3 }
  0x13   : > { %p310_p8 = pnand %p653_p6, %p309_p7 }
  0x14   : > { %s316_s9 = sand.u32 (!%p310_p8), 1, %s746_s18   ;;  %s766_s16 = smov (!%p310_p8), 16  }
  0x15   : > { %313 = sbr.rel (%p310_p8) target bundleno = 344 (0x158), region = 77  ;;  %s654_s12 = sshll.u32 (!%p310_p8), %s316_s9, 3 }
  0x16   : > { %s318_s15 = scalar_lea.vmem (!%p310_p8), [#allocation2], %s654_s12  ;;  %p378_p9 = scmp.lt.s32.totalorder (!%p310_p8), %s754_s20, 1 }
  0x1a   : > { %v722_v2 = vld [vmem:[%s881_s1 + $0x8] sm:$0xff]   ;;  %v764_v3 = vmov 0.0   ;;  %v723_v4 = vld [vmem:[%s881_s1] sm:$0xff]   ;;  %vm765_vm0 = vmmov 0   ;;  %vm413_vm1 = vcmask 130048   ;;  %vm440_vm2 = vcmask 261120  }
  0x1b   : > { %670 = vmatprep.subr.bf16.mxu0 %v764_v3  ;;  %v721_v5 = vld [vmem:[%s318_s15 + $0x4] ss:$0 sps:$4 sm:$0xff]   ;;  %674 = vmatprep.mubr.msk.bf16.mxu0 %vm765_vm0, %v764_v3  ;;  %v405_v6 = vld [vmem:[%s318_s15] sm:$0xf]  ;;  %s893_s20 = smov (!%p378_p9, %s754_s20), 1 }
  0x1c   : > { %671 = vmatpush3.bf16.msra.mxu0 %v722_v2  ;;  %411 = vrot.lane.b32.xlu0 %v721_v5, %s766_s16  ;;  %s655_s17 = sshll.u32 %s893_s20, 3  ;;  %s383_s25 = scalar_lea.vmem %s883_s3, %s893_s20  ;;  %v659_v9 = vld [vmem:[%s882_s2] ss:$0 sm:$0xff] }
  0x1d   : > { %672 = vmatprep.subr.bf16.mxu0 %v764_v3  ;;  %s393_s6 = scalar_lea.vmem %s884_s4, %s655_s17  ;;  %v663_v11 = vld [vmem:[%s383_s25] ss:$0 sm:$0xff]  ;;  %s403_s9 = scalar_lea.vmem %s885_s5, %s655_s17 }
  0x1e   : > { %v483_v13 = vld [vmem:[%s393_s6] sm:$0xff] }
  0x20   : > { %673 = vmatpush3.bf16.msra.mxu0 %v723_v4 }
  0x8e   : > { %v412_v7 = vpop.permute.xlu0 %411 }
  0x8f   : > { %v416_v8 = vsel %vm413_vm1, %v405_v6, %v412_v7 }
  0x90   : > { %675 = vmatmul.mubr.msk.bf16.vlgmr.msra.gmra.mxu0 %vm440_vm2, %v416_v8 }
 0x150   : > { %v477_v10 = vpop.f32.mrf.mxu0 }
 0x151   : > { %v478_v12 = vadd.f32 %v659_v9, %v477_v10 }
 0x152   : > { %v676_v14 = vpop.f32.mrf.mxu0 }
 0x153   : > { %v491_v15 = vmul.f32 %v663_v11, %v478_v12 }
 0x154   : > { %v480_v16 = vpop.f32.mrf.mxu0 }
 0x155   : > { %v492_v17 = vadd.f32 %v491_v15, %v483_v13 }
 0x156   : > { %v677_v18 = vpop.f32.mrf.mxu0 }
 0x157   : > { %493 = vst.msk [vmem:[%s403_s9] sm:$0xff] %vm440_vm2, %v492_v17 }
 0x158 PF: > { %s15_s22 = sadd.s32 1, %s762_s22   ;;  %s886_s18 = smov %s750_s19 }
 0x159   : > { %p12_p10 = scmp.ge.s32.totalorder %s15_s22, 4   ;;  %s887_s19 = smov %s832_s26 }
 0x15a   : > { %s888_s20 = smov %s758_s21  ;;  %s889_s21 = smov %s891_s23 }
 0x15b   :  { %14 = sbr.rel (!%p12_p10) target bundleno = 3 (0x3), region = 129 }

// kernel: double_stream_lora_forward.14
= control target key start
LH: loop header
LB: loop body
LE: loop exit
PB: predicated region body
PF: predicated region fallthrough
CT: control target
= control target key end

     0   :  { %s804_s18 = smov 0   ;;  %s806_s19 = smov 0   ;;  %s887_s0 = inlined_call_operand.vmem [shape: bf16[2,2,16,16], index: 0, kind: input, shape index: {}]   ;;  %s888_s1 = inlined_call_operand.vmem [shape: bf16[1,32,32], index: 1, kind: input, shape index: {}]   ;;  %s889_s2 = inlined_call_operand.vmem [shape: f32[1,32], index: 2, kind: input, shape index: {}]   ;;  %s890_s3 = inlined_call_operand.vmem [shape: f32[2,1,32], index: 3, kind: input, shape index: {}]   ;;  %s891_s4 = inlined_call_operand.vmem [shape: f32[2,8,32], index: 4, kind: input, shape index: {}]   ;;  %s892_s5 = inlined_call_operand.vmem [shape: f32[2,8,32], index: 5, kind: output, shape index: {}]  }
   0x1   :  { %s808_s20 = smov 0   ;;  %s810_s21 = smov 0  }
   0x2   :  { %s812_s22 = smov 0  }
   0x3 LB: > { %s34_s23 = sadd.s32 1, %s765_s21  ;;  %p52_p1 = scmp.ne.s32.totalorder %s757_s19, %s753_s18  ;;  %s769_s22 = sphi %s812_s22, %s15_s22   ;;  %s765_s21 = sphi %s810_s21, %s896_s21   ;;  %s761_s20 = sphi %s808_s20, %s895_s20   ;;  %s757_s19 = sphi %s806_s19, %s894_s19   ;;  %s753_s18 = sphi %s804_s18, %s893_s18  }
   0x4   : > { %p36_p0 = scmp.ge.s32.totalorder %s34_s23, 2  ;;  %p53_p2 = scmp.eq.s32.totalorder %s769_s22, 0 }
   0x5   : > { %s45_s25 = sadd.s32 1, %s757_s19  ;;  %p654_p5 = scmp.ge.s32.totalorder %s769_s22, 2 }
   0x6   : > { %s898_s23 = smov (%p36_p0, %s34_s23), 0  ;;  %p54_p3 = por %p53_p2, %p52_p1 }
   0x7   : > { %s40_s24 = ssub.s32 %s765_s21, %s898_s23  ;;  %231 = sbr.rel (%p654_p5) target bundleno = 17 (0x11), region = 24 }
   0x8   : > { %p43_p4 = scmp.eq.s32.totalorder %s40_s24, 0 }
   0xa   : > { %s839_s26 = scalar_select %p43_p4, %s757_s19, %s45_s25  }
   0xc   : > { %234 = sbr.rel (!%p54_p3) target bundleno = 17 (0x11), region = 28  ;;  %s236_s27 = sand.u32 (%p54_p3), 1, %s757_s19  }
   0xd   : > { %s673_s28 = sshll.u32 (%p54_p3), %s765_s21, 4  ;;  %s655_s29 = sshll.u32 (%p54_p3), %s236_s27, 3 }
   0xe   : > { %s537_s7 = scalar_lea.vmem (%p54_p3), %s887_s0, %s673_s28  ;;  %s238_s8 = scalar_lea.vmem (%p54_p3), [#allocation2], %s655_s29 }
   0xf   : > { %v658_v0 = vld [vmem:[%s537_s7 + $0x4] sm:$0xf] (%p54_p3)  ;;  %v659_v1 = vld [vmem:[%s537_s7 + $0xc] sm:$0xf] (%p54_p3) }
  0x10   : > { %261 = vst [vmem:[%s238_s8] sm:$0xf] (%p54_p3), %v658_v0  ;;  %263 = vst [vmem:[%s238_s8 + $0x4] sm:$0xf] (%p54_p3), %v659_v1 }
  0x11 PF: > { %p660_p6 = scmp.ge.s32.totalorder %s769_s22, 1  ;;  %p312_p7 = scmp.lt.s32.totalorder %s769_s22, 3 }
  0x13   : > { %p313_p8 = pnand %p660_p6, %p312_p7 }
  0x14   : > { %s319_s9 = sand.u32 (!%p313_p8), 1, %s753_s18   ;;  %s773_s16 = smov (!%p313_p8), 16  }
  0x15   : > { %316 = sbr.rel (%p313_p8) target bundleno = 344 (0x158), region = 77  ;;  %s661_s12 = sshll.u32 (!%p313_p8), %s319_s9, 3 }
  0x16   : > { %s321_s15 = scalar_lea.vmem (!%p313_p8), [#allocation2], %s661_s12  ;;  %p382_p9 = scmp.lt.s32.totalorder (!%p313_p8), %s761_s20, 1 }
  0x1a   : > { %v729_v2 = vld [vmem:[%s888_s1 + $0x8] sm:$0xff]   ;;  %v771_v3 = vmov 0.0   ;;  %v730_v4 = vld [vmem:[%s888_s1] sm:$0xff]   ;;  %vm772_vm0 = vmmov 0   ;;  %vm417_vm1 = vcmask 130048   ;;  %vm444_vm2 = vcmask 261120  }
  0x1b   : > { %677 = vmatprep.subr.bf16.mxu0 %v771_v3  ;;  %v728_v5 = vld [vmem:[%s321_s15 + $0x4] ss:$0 sps:$4 sm:$0xff]   ;;  %681 = vmatprep.mubr.msk.bf16.mxu0 %vm772_vm0, %v771_v3  ;;  %v409_v6 = vld [vmem:[%s321_s15] sm:$0xf]  ;;  %s900_s20 = smov (!%p382_p9, %s761_s20), 1 }
  0x1c   : > { %678 = vmatpush3.bf16.msra.mxu0 %v729_v2  ;;  %415 = vrot.lane.b32.xlu0 %v728_v5, %s773_s16  ;;  %s662_s17 = sshll.u32 %s900_s20, 3  ;;  %s387_s25 = scalar_lea.vmem %s890_s3, %s900_s20  ;;  %v666_v9 = vld [vmem:[%s889_s2] ss:$0 sm:$0xff] }
  0x1d   : > { %679 = vmatprep.subr.bf16.mxu0 %v771_v3  ;;  %s397_s6 = scalar_lea.vmem %s891_s4, %s662_s17  ;;  %v670_v11 = vld [vmem:[%s387_s25] ss:$0 sm:$0xff]  ;;  %s407_s9 = scalar_lea.vmem %s892_s5, %s662_s17 }
  0x1e   : > { %v487_v13 = vld [vmem:[%s397_s6] sm:$0xff] }
  0x20   : > { %680 = vmatpush3.bf16.msra.mxu0 %v730_v4 }
  0x8e   : > { %v416_v7 = vpop.permute.xlu0 %415 }
  0x8f   : > { %v420_v8 = vsel %vm417_vm1, %v409_v6, %v416_v7 }
  0x90   : > { %682 = vmatmul.mubr.msk.bf16.vlgmr.msra.gmra.mxu0 %vm444_vm2, %v420_v8 }
 0x150   : > { %v481_v10 = vpop.f32.mrf.mxu0 }
 0x151   : > { %v482_v12 = vadd.f32 %v666_v9, %v481_v10 }
 0x152   : > { %v683_v14 = vpop.f32.mrf.mxu0 }
 0x153   : > { %v495_v15 = vmul.f32 %v670_v11, %v482_v12 }
 0x154   : > { %v484_v16 = vpop.f32.mrf.mxu0 }
 0x155   : > { %v496_v17 = vadd.f32 %v495_v15, %v487_v13 }
 0x156   : > { %v684_v18 = vpop.f32.mrf.mxu0 }
 0x157   : > { %497 = vst.msk [vmem:[%s407_s9] sm:$0xff] %vm444_vm2, %v496_v17 }
 0x158 PF: > { %s15_s22 = sadd.s32 1, %s769_s22   ;;  %s893_s18 = smov %s757_s19 }
 0x159   : > { %p12_p10 = scmp.ge.s32.totalorder %s15_s22, 4   ;;  %s894_s19 = smov %s839_s26 }
 0x15a   : > { %s895_s20 = smov %s765_s21  ;;  %s896_s21 = smov %s898_s23 }
 0x15b   :  { %14 = sbr.rel (!%p12_p10) target bundleno = 3 (0x3), region = 129 }

// kernel: double_stream_lora_forward.15
= control target key start
LH: loop header
LB: loop body
LE: loop exit
PB: predicated region body
PF: predicated region fallthrough
CT: control target
= control target key end

     0   :  { %s693_s18 = smov 0   ;;  %s695_s19 = smov 0   ;;  %s750_s0 = inlined_call_operand.vmem [shape: f32[2,8,32], index: 0, kind: input, shape index: {}]   ;;  %s751_s1 = inlined_call_operand.vmem [shape: f32[2,1,32], index: 1, kind: input, shape index: {}]   ;;  %s752_s2 = inlined_call_operand.vmem [shape: f32[2,1,32], index: 2, kind: input, shape index: {}]   ;;  %s753_s3 = inlined_call_operand.vmem [shape: bf16[32,128], index: 3, kind: input, shape index: {}]   ;;  %s754_s4 = inlined_call_operand.vmem [shape: f32[1,128], index: 4, kind: input, shape index: {}]   ;;  %s755_s5 = inlined_call_operand.vmem [shape: bf16[2,8,128], index: 5, kind: output, shape index: {}]  }
   0x1   :  { %s697_s20 = smov 0  }
   0x2 LB: > { %s34_s21 = sadd.s32 1, %s655_s19  ;;  %p584_p0 = scmp.ge.s32.totalorder %s659_s20, 1  ;;  %s659_s20 = sphi %s697_s20, %s15_s20   ;;  %s655_s19 = sphi %s695_s19, %s757_s19   ;;  %s651_s18 = sphi %s693_s18, %s756_s18  }
   0x3   : > { %p36_p1 = scmp.ge.s32.totalorder %s34_s21, 2  ;;  %p247_p2 = scmp.lt.s32.totalorder %s659_s20, 3 }
   0x5   : > { %s759_s21 = smov (%p36_p1, %s34_s21), 0  ;;  %p248_p3 = pnand %p584_p0, %p247_p2 }
   0x6   : > { %p295_p4 = scmp.lt.s32.totalorder (!%p248_p3), %s651_s18, 1 }
   0x7   : > { %251 = sbr.rel (%p248_p3) target bundleno = 560 (0x230), region = 40 }
   0xc   : > { %s761_s18 = smov (!%p295_p4, %s651_s18), 1  ;;  %vm333_vm0 = vcmask 261120   ;;  %v631_v7 = vld [vmem:[%s753_s3 + $0x8] sm:$0xff]   ;;  %v661_v8 = vmov 0.0   ;;  %v632_v9 = vld [vmem:[%s753_s3] sm:$0xff]   ;;  %vm662_vm1 = vmmov 0   ;;  %v350_v13 = vlaneseq }
   0xd   : > { %s585_s22 = sshll.u32 %s761_s18, 3  ;;  %597 = vmatprep.subr.bf16.mxu0 %v661_v8  ;;  %601 = vmatprep.mubr.msk.bf16.mxu0 %vm662_vm1, %v661_v8  ;;  %s304_s7 = scalar_lea.vmem %s751_s1, %s761_s18  ;;  %vm364_vm2 = vcmask 257024   ;;  %v588_v26 = vld [vmem:[%s754_s4] ss:$0 sm:$0xff] }
   0xe   : > { %s301_s25 = scalar_lea.vmem %s750_s0, %s585_s22  ;;  %598 = vmatpush3.bf16.msra.mxu0 %v631_v7  ;;  %v351_v14 = vshrl.u32 %v350_v13, 7  ;;  %v331_v15 = vld [vmem:[%s304_s7] sm:$0x1]  ;;  %s307_s10 = scalar_lea.vmem %s752_s2, %s761_s18 }
   0xf   : > { %v330_v0 = vld [vmem:[%s301_s25] sm:$0xff]  ;;  %599 = vmatprep.subr.bf16.mxu0 %v661_v8  ;;  %v348_v16 = vadd.f32 1.0, %v331_v15  ;;  %s586_s13 = sshll.u32 %s761_s18, 2 }
  0x10   : > { %v334_v1 = vsel %vm333_vm0, %v330_v0, 0.0  ;;  %v352_v17 = vsub.s32 0, %v351_v14  ;;  %v587_v21 = vld [vmem:[%s307_s10] ss:$0 sm:$0xff]  ;;  %s324_s16 = scalar_lea.vmem %s755_s5, %s586_s13 }
  0x11   : > { %335 = vadd.xlane.f32.xlu0 %v334_v1 }
  0x12   : > { %600 = vmatpush3.bf16.msra.mxu0 %v632_v9  ;;  %v353_v18 = vrot.slane %v348_v16, %v352_v17 }
  0x9a   : > { %v336_v2 = vpop.xlane.xlu0 %335 }
  0x9b   : > { %v338_v3 = vmul.f32 0.03125, %v336_v2 }
  0x9d   : > { %v339_v4 = vsub.f32 %v330_v0, %v338_v3 }
  0x9f   : > { %v340_v5 = vmul.f32 %v339_v4, %v339_v4 }
  0xa1   : > { %v341_v6 = vsel %vm333_vm0, %v340_v5, 0.0 }
  0xa2   : > { %342 = vadd.xlane.f32.xlu0 %v341_v6 }
 0x12b   : > { %v343_v10 = vpop.xlane.xlu0 %342 }
 0x12c   : > { %v344_v11 = vmul.f32 0.03125, %v343_v10 }
 0x12e   : > { %v345_v12 = vadd.f32 1e-06, %v344_v11 }
 0x130   : > { %633 = vrsqrt.f32 %v345_v12 }
 0x13d   : > { %v634_v19 = vpop.eup %633 }
 0x13e   : > { %v347_v20 = vmul.f32 %v634_v19, %v339_v4 }
 0x140   : > { %v355_v22 = vmul.f32 %v353_v18, %v347_v20 }
 0x142   : > { %v362_v23 = vadd.f32 %v587_v21, %v355_v22 }
 0x144   : > { %v363_v24 = vpack.c.bf16 %v362_v23, %v362_v23 }
 0x146   : > { %365 = vst.msk [vmem:[#allocation2] sm:$0xf] %vm364_vm2, %v363_v24 }
 0x14d   : > { %v366_v25 = vld [vmem:[#allocation2] sm:$0xf] }
 0x14e   : > { %602 = vmatmul.mubr.msk.bf16.vlgmr.msra.gmra.mxu0 %vm333_vm0, %v366_v25 }
 0x20e   : > { %v428_v27 = vpop.f32.mrf.mxu0 }
 0x20f   : > { %v429_v28 = vadd.f32 %v588_v26, %v428_v27 }
 0x210   : > { %v603_v29 = vpop.f32.mrf.mxu0 }
 0x211   : > { %v435_v30 = vmul.f32 0.044715, %v429_v28  ;;  %v434_v38 = vmul.f32 0.5, %v429_v28 }
 0x212   : > { %v431_v31 = vpop.f32.mrf.mxu0 }
 0x213   : > { %v436_v32 = vmul.f32 %v435_v30, %v429_v28 }
 0x214   : > { %v604_v33 = vpop.f32.mrf.mxu0 }
 0x215   : > { %v437_v34 = vmul.f32 %v436_v32, %v429_v28 }
 0x217   : > { %v438_v35 = vadd.f32 %v437_v34, %v429_v28 }
 0x219   : > { %v439_v36 = vmul.f32 0.7978846, %v438_v35 }
 0x21b   : > { %635 = vtanh.f32 %v439_v36 }
 0x228   : > { %v636_v37 = vpop.eup %635 }
 0x229   : > { %v441_v39 = vadd.f32 1.0, %v636_v37 }
 0x22b   : > { %v442_v40 = vmul.f32 %v441_v39, %v434_v38 }
 0x22d   : > { %v443_v41 = vpack.c.bf16 %v442_v40, %v442_v40 }
 0x22f   : > { %444 = vst [vmem:[%s324_s16] sm:$0xf] %v443_v41 }
 0x230 PF: > { %s15_s20 = sadd.s32 1, %s659_s20   ;;  %s756_s18 = smov %s655_s19 }
 0x231   : > { %p12_p5 = scmp.ge.s32.totalorder %s15_s20, 4   ;;  %s757_s19 = smov %s759_s21 }
 0x233   :  { %14 = sbr.rel (!%p12_p5) target bundleno = 2 (0x2), region = 86 }

// kernel: double_stream_lora_forward.16
= control target key start
LH: loop header
LB: loop body
LE: loop exit
PB: predicated region body
PF: predicated region fallthrough
CT: control target
= control target key end

     0   :  { %10 = vsyncpa [#allocation4], 0  ;;  %s1043_s0 = inlined_call_operand.vmem [shape: bf16[2,8,128], index: 0, kind: input, shape index: {}]   ;;  %s1044_s1 = inlined_call_operand.vmem [shape: bf16[128,32], index: 1, kind: input, shape index: {}]   ;;  %s1045_s2 = inlined_call_operand.vmem [shape: f32[1,32], index: 2, kind: input, shape index: {}]   ;;  %s1046_s3 = inlined_call_operand.vmem [shape: f32[2,1,32], index: 3, kind: input, shape index: {}]   ;;  %s1047_s4 = inlined_call_operand.vmem [shape: f32[2,8,32], index: 4, kind: input, shape index: {}]   ;;  %s1048_s5 = inlined_call_operand.hbm [shape: f32[2,8,32], index: 5, kind: output, shape index: {}]  }
   0x1   :  { %12 = vsyncpa [#allocation4 + $0x1], 0  ;;  %s908_s18 = smov 0   ;;  %s910_s19 = smov 0  }
   0x2   :  { %s912_s20 = smov 0   ;;  %s914_s21 = smov 0  }
   0x3   :  { %s916_s22 = smov 0   ;;  %s918_s23 = smov 0  }
   0x4 LB: > { %s679_s24 = sadd.s32 4294967295, %s873_s23   ;;  %s680_s25 = sadd.s32 4294967294, %s873_s23   ;;  %s873_s23 = sphi %s918_s23, %s18_s23   ;;  %s869_s22 = sphi %s916_s22, %s1055_s22   ;;  %s865_s21 = sphi %s914_s21, %s1054_s21   ;;  %s861_s20 = sphi %s912_s20, %s1053_s20   ;;  %s857_s19 = sphi %s910_s19, %s1052_s19   ;;  %s853_s18 = sphi %s908_s18, %s1051_s18  }
   0x5   : > { %s44_s26 = sadd.s32 1, %s869_s22  ;;  %s197_s27 = sadd.s32 1, %s861_s20 }
   0x6   : > { %p46_p0 = scmp.ge.s32.totalorder %s44_s26, 2  ;;  %p207_p1 = scmp.ne.s32.totalorder %s861_s20, %s857_s19 }
   0x7   : > { %p208_p2 = scmp.eq.s32.totalorder %s679_s24, 1  ;;  %p213_p3 = scmp.ne.s32.totalorder %s857_s19, %s853_s18 }
   0x8   : > { %s1057_s26 = smov (%p46_p0, %s44_s26), 0  ;;  %p214_p5 = scmp.eq.s32.totalorder %s680_s25, 1 }
   0x9   : > { %p948_p4 = por %p208_p2, %p207_p1  ;;  %s190_s29 = ssub.s32 %s869_s22, %s1057_s26 }
   0xa   : > { %p685_p6 = scmp.ge.s32.totalorder %s873_s23, 1  ;;  %p195_p7 = scmp.eq.s32.totalorder %s190_s29, 0 }
   0xb   : > { %p955_p8 = por %p214_p5, %p213_p3  ;;  %p285_p9 = scmp.lt.s32.totalorder %s873_s23, 3 }
   0xc   : > { %s961_s6 = scalar_select %p195_p7, %s861_s20, %s197_s27  }
   0xd   : > { %p286_p10 = pnand %p685_p6, %p285_p9 }
   0xe   : > { %p345_p11 = scmp.lt.s32.totalorder (!%p286_p10), %s865_s21, 1  ;;  %s342_s13 = sand.u32 (!%p286_p10), 1, %s857_s19  }
   0xf   : > { %289 = sbr.rel (%p286_p10) target bundleno = 275 (0x113), region = 40  ;;  %s686_s14 = sshll.u32 (!%p286_p10), %s342_s13, 3 }
  0x10   : > { %s700_s10 = sshll.u32 (!%p286_p10), %s865_s21, 7  ;;  %s344_s11 = scalar_lea.vmem (!%p286_p10), [#allocation3], %s686_s14 }
  0x11   : > { %s536_s17 = scalar_lea.hbm (!%p286_p10), %s1048_s5, %s700_s10  ;;  %s523_s27 = scalar_lea.sflag (!%p286_p10), [#allocation4], %s342_s13 }
  0x14   : > { %v789_v0 = vld [vmem:[%s1044_s1 + $0x38] sm:$0xff]   ;;  %v875_v1 = vmov 0.0   ;;  %v790_v2 = vld [vmem:[%s1044_s1 + $0x30] sm:$0xff]   ;;  %vm876_vm0 = vmmov 0   ;;  %vm388_vm1 = vcmask 261120   ;;  %v791_v3 = vld [vmem:[%s1044_s1 + $0x28] sm:$0xff]  }
  0x15   : > { %712 = vmatprep.subr.bf16.mxu0 %v875_v1  ;;  %728 = vmatprep.mubr.msk.bf16.mxu0 %vm876_vm0, %v875_v1  ;;  %389 = vst.msk [vmem:[#allocation2] sm:$0xff] %vm388_vm1, %v875_v1  ;;  %v792_v4 = vld [vmem:[%s1044_s1 + $0x20] sm:$0xff]   ;;  %v793_v5 = vld [vmem:[%s1044_s1 + $0x18] sm:$0xff]   ;;  %v794_v6 = vld [vmem:[%s1044_s1 + $0x10] sm:$0xff]   ;;  %s346_s25 = scalar_select %p345_p11, %s865_s21, 1 }
  0x16   : > { %713 = vmatpush3.bf16.msra.mxu0 %v789_v0  ;;  %v795_v7 = vld [vmem:[%s1044_s1 + $0x8] sm:$0xff]   ;;  %v796_v8 = vld [vmem:[%s1044_s1] sm:$0xff]  }
  0x17   : > { %714 = vmatprep.subr.bf16.mxu0 %v875_v1  ;;  %s687_s7 = sshll.u32 %s346_s25, 2  ;;  %s688_s15 = sshll.u32 %s346_s25, 3  ;;  %v697_v16 = vld [vmem:[%s1045_s2] ss:$0 sm:$0xff] }
  0x18   : > { %s354_s12 = scalar_lea.vmem %s1043_s0, %s687_s7  ;;  %s372_s24 = scalar_lea.vmem %s1046_s3, %s346_s25 }
  0x19   : > { %v391_v9 = vld [vmem:[%s354_s12] sm:$0xf]  ;;  %s382_s9 = scalar_lea.vmem %s1047_s4, %s688_s15  ;;  %s538_s12 = sshll.u32 %s344_s11, 4  ;;  %s539_s12 = int_to_ptr.vmem [resolvable:$true] %s538_s12 }
  0x1a   : > { %715 = vmatpush3.bf16.msra.mxu0 %v790_v2  ;;  %v698_v18 = vld [vmem:[%s372_s24] ss:$0 sm:$0xff]  ;;  %s797_s29 = scalar_lea.vmem %s539_s12, 128  ;;  %s877_s15 = smov [#allocation3]  }
  0x1b   : > { %716 = vmatprep.subr.bf16.mxu0 %v875_v1  ;;  %v511_v20 = vld [vmem:[%s382_s9] sm:$0xff]  ;;  %p798_p12 = scmp.ne.s32.totalorder %s539_s12, %s797_s29  ;;  %s801_s24 = sshll.u32 %s877_s15, 4  ;;  %s802_s24 = int_to_ptr.vmem [resolvable:$false] %s801_s24 }
  0x1c   : > { %v390_v10 = vld [vmem:[#allocation2] sm:$0xff]  ;;  %s803_s21 = scalar_lea.vmem %s802_s24, 256  ;;  %p804_p1 = scmp.lt.s32.totalorder %s539_s12, %s802_s24 }
  0x1d   : > { %p799_p13 = pnand %p798_p12, %p948_p4  ;;  %p805_p2 = scmp.lt.s32.totalorder %s803_s21, %s797_s29 }
  0x1e   : > { %717 = vmatpush3.bf16.msra.mxu0 %v791_v3 }
  0x1f   : > { %718 = vmatprep.subr.bf16.mxu0 %v875_v1  ;;  %p800_p0 = pneg %p799_p13  ;;  %p806_p3 = por %p805_p2, %p804_p1 }
  0x21   : > { %p807_p5 = pnand %p806_p3, %p800_p0 }
  0x22   : > { %719 = vmatpush3.bf16.msra.mxu0 %v792_v4 }
  0x23   : > { %720 = vmatprep.subr.bf16.mxu0 %v875_v1 }
  0x26   : > { %721 = vmatpush3.bf16.msra.mxu0 %v793_v5 }
  0x27   : > { %722 = vmatprep.subr.bf16.mxu0 %v875_v1 }
  0x2a   : > { %723 = vmatpush3.bf16.msra.mxu0 %v794_v6 }
  0x2b   : > { %724 = vmatprep.subr.bf16.mxu0 %v875_v1 }
  0x2e   : > { %725 = vmatpush3.bf16.msra.mxu0 %v795_v7 }
  0x2f   : > { %726 = vmatprep.subr.bf16.mxu0 %v875_v1 }
  0x32   : > { %727 = vmatpush3.bf16.msra.mxu0 %v796_v8 }
  0x35   : > { %729 = vmatmul.mubr.bf16.vlgmr.msra.gmra.mxu0 %v391_v9 }
  0xf5   : > { %v490_v11 = vpop.f32.mrf.mxu0 }
  0xf6   : > { %v496_v12 = vadd.f32 %v490_v11, %v390_v10 }
  0xf7   : > { %v730_v13 = vpop.f32.mrf.mxu0 }
  0xf8   : > { %498 = vst.msk [vmem:[#allocation2] sm:$0xff] %vm388_vm1, %v496_v12 }
  0xf9   : > { %v493_v14 = vpop.f32.mrf.mxu0 }
  0xfb   : > { %v731_v15 = vpop.f32.mrf.mxu0 }
  0xff   : > { %v502_v17 = vld [vmem:[#allocation2] sm:$0xff] }
 0x100   : > { %v510_v19 = vadd.f32 %v697_v16, %v502_v17 }
 0x102   : > { %v519_v21 = vmul.f32 %v698_v18, %v510_v19 }
 0x104   : > { %v520_v22 = vadd.f32 %v519_v21, %v511_v20 }
 0x106   : > { %521 = vst.msk [vmem:[%s344_s11] sm:$0xff] %vm388_vm1, %v520_v22 }
 0x107   : > { %810 = shalt.err (!%p807_p5)
}
 0x108   : > { %s811_s14 = scalar_lea.hbm %s536_s17, 128  ;;  %s815_s8 = scalar_lea.hbm %s1048_s5, 256 }
 0x109   : > { %p812_p6 = scmp.ne.s32.totalorder %s536_s17, %s811_s14  ;;  %p816_p10 = scmp.lt.s32.totalorder %s536_s17, %s1048_s5 }
 0x10a   : > { %p817_p11 = scmp.lt.s32.totalorder %s815_s8, %s811_s14 }
 0x10b   : > { %p813_p7 = pnand %p812_p6, %p948_p4 }
 0x10c   : > { %p818_p12 = por %p817_p11, %p816_p10 }
 0x10d   : > { %p814_p9 = pneg %p813_p7 }
 0x10f   : > { %p819_p13 = pnand %p818_p12, %p814_p9 }
 0x111   : > { %822 = shalt.err (!%p819_p13)
}
 0x112   : > { %732 = dma.vmem_to_hbm [thread:$0]  (%p948_p4), %s539_s12, 128, %s536_s17, %s523_s27  }
 0x113 PF: > { %p738_p0 = scmp.ge.s32.totalorder %s873_s23, 2  ;;  %s550_s11 = sand.u32 1, %s853_s18  }
 0x114   : > { %s551_s16 = scalar_lea.sflag [#allocation4], %s550_s11 }
 0x115   : > { %p735_p1 = pnand %p738_p0, %p955_p8 }
 0x117   : > { %p736_p2 = pneg %p735_p1 }
 0x119   : > { %848 = dma.done.wait (%p736_p2), %s551_s16, 128  }
 0x11a   : > { %850 = vsyncadd (%p736_p2), %s551_s16, 4294967168  ;;  %s18_s23 = sadd.s32 1, %s873_s23   ;;  %s1051_s18 = smov %s857_s19 }
 0x11b   : > { %p15_p3 = scmp.ge.s32.totalorder %s18_s23, 4   ;;  %s1052_s19 = smov %s861_s20 }
 0x11c   : > { %s1053_s20 = smov %s961_s6  ;;  %s1054_s21 = smov %s869_s22 }
 0x11d   : > { %s1055_s22 = smov %s1057_s26  ;;  %17 = sbr.rel (!%p15_p3) target bundleno = 4 (0x4), region = 95 }
 0x122   :  { %556 = vsyncpa [#allocation4], 1 }
 0x123   :  { %558 = vsyncpa [#allocation4 + $0x1], 1 }

</bundles_post_ra>
